<compile_context>
chip_gen: v6e
topology: v6e:2x2x1
jax: 0.10.0
libtpu: 0.0.40
codegen_flags: <defaults>
</compile_context>

<pallas_src>
import functools

import jax
import jax.numpy as jnp
from jax import lax
from jax.experimental import pallas as pl
from jax.experimental.pallas import tpu as pltpu


# ---------------------------------------------------------------------------
# Fused encoder kernel: single invocation, everything resident in VMEM.
# ---------------------------------------------------------------------------

def _encoder_kernel(
    x_ref,                        # (T, D)    all S*N tokens, sequence-major
    lin_w_ref, lin_b_ref,         # (D, E), (1, E)
    wq_ref, bq_ref,               # (Lyr, H, E, dh), (Lyr, H, 1, dh)
    wk_ref, bk_ref,               # (Lyr, H, E, dh), (Lyr, H, 1, dh)
    wv_ref, bv_ref,               # (Lyr, H, E, dh), (Lyr, H, 1, dh)
    wo_ref, bo_ref,               # (Lyr, H, dh, E), (Lyr, 1, E)
    ln1_g_ref, ln1_b_ref,         # (Lyr, 1, E) x2
    w1_ref, b1_ref,               # (Lyr, E, F), (Lyr, 1, F)
    w2_ref, b2_ref,               # (Lyr, F, E), (Lyr, 1, E)
    ln2_g_ref, ln2_b_ref,         # (Lyr, 1, E) x2
    wmu_ref, bmu_ref,             # (E, L), (1, L)
    wlv_ref, blv_ref,             # (E, L), (1, L)
    enc_ref,                      # (T, E)
    mu_ref, logvar_ref, std_ref,  # (T, L) x3
    *, nhead, batch,
):
    f32 = jnp.float32
    T = x_ref.shape[0]
    E = lin_w_ref.shape[1]
    dh = E // nhead
    num_layers = wq_ref.shape[0]
    scale = 1.0 / float(dh) ** 0.5

    def layer_norm(y, g, b):
        mean = jnp.mean(y, axis=-1, keepdims=True)
        cen = y - mean
        var = jnp.mean(cen * cen, axis=-1, keepdims=True)
        return cen * lax.rsqrt(var + 1e-5) * g + b

    # Block-diagonal batch mask: the (S, N, D) input was flattened row-major
    # to (T, D), so token t belongs to batch item (t % N).  Cross-batch
    # attention scores get a large negative bias (exp -> 0 exactly).
    row_b = lax.broadcasted_iota(jnp.int32, (T, T), 0) % batch
    col_b = lax.broadcasted_iota(jnp.int32, (T, T), 1) % batch
    mask_bias = jnp.where(row_b == col_b, 0.0, -1e30).astype(f32)

    # ---- input projection: (T, D) @ (D, E) ----
    h = jnp.dot(x_ref[...], lin_w_ref[...], preferred_element_type=f32) + lin_b_ref[...]

    # ---- transformer encoder layers (statically unrolled) ----
    for l in range(num_layers):
        attn = bo_ref[l]                           # (1, E) bias, broadcasts to (T, E)
        for hd in range(nhead):
            # Per-head projections from per-head weight slabs: outputs start
            # at lane 0, no activation slicing and no transposes needed.
            q_h = (jnp.dot(h, wq_ref[l, hd], preferred_element_type=f32)
                   + bq_ref[l, hd]) * scale                              # (T, dh)
            k_h = jnp.dot(h, wk_ref[l, hd], preferred_element_type=f32) + bk_ref[l, hd]
            v_h = jnp.dot(h, wv_ref[l, hd], preferred_element_type=f32) + bv_ref[l, hd]

            # scores = q_h @ k_h.T  (native MXU form: contract last dims)
            s = lax.dot_general(q_h, k_h, (((1,), (1,)), ((), ())),
                                preferred_element_type=f32)              # (T, T)
            s = s + mask_bias
            s = s - jnp.max(s, axis=-1, keepdims=True)
            p = jnp.exp(s)
            p = p / jnp.sum(p, axis=-1, keepdims=True)                   # exact softmax

            o_h = jnp.dot(p, v_h, preferred_element_type=f32)            # (T, dh)
            # concat(heads) @ W_out  ==  sum_h head_h @ W_out[h]
            attn = attn + jnp.dot(o_h, wo_ref[l, hd], preferred_element_type=f32)

        h = layer_norm(h + attn, ln1_g_ref[l], ln1_b_ref[l])

        # feed-forward (ReLU)
        f = jnp.dot(h, w1_ref[l], preferred_element_type=f32) + b1_ref[l]
        f = jnp.maximum(f, 0.0)
        f = jnp.dot(f, w2_ref[l], preferred_element_type=f32) + b2_ref[l]
        h = layer_norm(h + f, ln2_g_ref[l], ln2_b_ref[l])

    # ---- heads: separate lane-contiguous outputs, no concat / no slices ----
    enc_ref[...] = h
    mu_ref[...] = jnp.dot(h, wmu_ref[...], preferred_element_type=f32) + bmu_ref[...]
    lv = jnp.dot(h, wlv_ref[...], preferred_element_type=f32) + blv_ref[...]
    logvar_ref[...] = lv
    std_ref[...] = jnp.exp(0.5 * lv)


# ---------------------------------------------------------------------------
# Wrapper (reshape-only I/O; no transposes, no slicing)
# ---------------------------------------------------------------------------

def encoder_t_forward(x, params, nhead):
    """x: (S, N, input_dim) sequence-major.  Returns (mu, std, logvar, enc)."""
    S, N, D = x.shape
    E = params["lin_w"].shape[1]
    L = params["w_mu"].shape[1]
    assert E % nhead == 0
    T = S * N

    xf = x.reshape(T, D)      # contiguous flatten: free, stays sequence-major

    weights = (
        params["lin_w"], params["lin_b"],
        params["wq"], params["bq"],
        params["wk"], params["bk"],
        params["wv"], params["bv"],
        params["wo"], params["bo"],
        params["ln1_g"], params["ln1_b"],
        params["w1"], params["b1"],
        params["w2"], params["b2"],
        params["ln2_g"], params["ln2_b"],
        params["w_mu"], params["b_mu"],
        params["w_lv"], params["b_lv"],
    )

    # Single invocation (grid=()), whole (tiny) operands resident in VMEM.
    # If S*N / E / F grow, tile the token dim with a grid + BlockSpecs and set
    # vmem_limit_bytes / Buffered(1) on the constant weight specs (v7x VMEM).
    enc, mu, logvar, std = pl.pallas_call(
        functools.partial(_encoder_kernel, nhead=nhead, batch=N),
        out_shape=(
            jax.ShapeDtypeStruct((T, E), jnp.float32),
            jax.ShapeDtypeStruct((T, L), jnp.float32),
            jax.ShapeDtypeStruct((T, L), jnp.float32),
            jax.ShapeDtypeStruct((T, L), jnp.float32),
        ),
    )(xf, *weights)

    # Free reshapes back to the module's (S, N, .) layout.
    return (mu.reshape(S, N, L), std.reshape(S, N, L),
            logvar.reshape(S, N, L), enc.reshape(S, N, E))


# ---------------------------------------------------------------------------
# Pure-JAX reference (structurally different: batched einsum attention)
# ---------------------------------------------------------------------------

def encoder_t_reference(x, params, nhead):
    S, N, D = x.shape
    E = params["lin_w"].shape[1]
    dh = E // nhead
    scale = 1.0 / float(dh) ** 0.5

    def ln(y, g, b):
        m = jnp.mean(y, -1, keepdims=True)
        v = jnp.mean((y - m) ** 2, -1, keepdims=True)
        return (y - m) * lax.rsqrt(v + 1e-5) * g + b

    h = x @ params["lin_w"] + params["lin_b"]                      # (S, N, E)
    for l in range(params["wq"].shape[0]):
        q = (jnp.einsum("sne,hed->snhd", h, params["wq"][l])
             + params["bq"][l][:, 0, :]) * scale
        k = jnp.einsum("sne,hed->snhd", h, params["wk"][l]) + params["bk"][l][:, 0, :]
        v = jnp.einsum("sne,hed->snhd", h, params["wv"][l]) + params["bv"][l][:, 0, :]
        logits = jnp.einsum("snhd,tnhd->nhst", q, k)
        p = jax.nn.softmax(logits, axis=-1)
        o = jnp.einsum("nhst,tnhd->snhd", p, v)
        a = jnp.einsum("snhd,hde->sne", o, params["wo"][l]) + params["bo"][l]
        h = ln(h + a, params["ln1_g"][l], params["ln1_b"][l])
        f = jnp.maximum(h @ params["w1"][l] + params["b1"][l], 0.0)
        f = f @ params["w2"][l] + params["b2"][l]
        h = ln(h + f, params["ln2_g"][l], params["ln2_b"][l])

    mu = h @ params["w_mu"] + params["b_mu"]
    logvar = h @ params["w_lv"] + params["b_lv"]
    std = jnp.exp(0.5 * logvar)
    return mu, std, logvar, h


# ---------------------------------------------------------------------------
# Deterministic parameter construction (per-layer, per-head split weights)
# ---------------------------------------------------------------------------

def init_params(key, input_dim, latent_dim, embedding_dim, nhead,
                dim_feedforward, num_layers):
    E, F, L, H = embedding_dim, dim_feedforward, latent_dim, nhead
    dh = E // H

    def nrm(k, shape, scale=0.05):
        return (scale * jax.random.normal(k, shape)).astype(jnp.float32)

    keys = iter(jax.random.split(key, 64))
    params = {
        "lin_w": nrm(next(keys), (input_dim, E)),
        "lin_b": nrm(next(keys), (1, E)),
        "w_mu": nrm(next(keys), (E, L)),
        "b_mu": nrm(next(keys), (1, L)),
        "w_lv": nrm(next(keys), (E, L)),
        "b_lv": nrm(next(keys), (1, L)),
    }
    names = ("wq", "bq", "wk", "bk", "wv", "bv", "wo", "bo",
             "ln1_g", "ln1_b", "w1", "b1", "w2", "b2", "ln2_g", "ln2_b")
    per_layer = {n: [] for n in names}
    for _ in range(num_layers):
        # in_proj pre-split per head (head h uses output columns h*dh:(h+1)*dh)
        per_layer["wq"].append(nrm(next(keys), (H, E, dh)))
        per_layer["bq"].append(nrm(next(keys), (H, 1, dh)))
        per_layer["wk"].append(nrm(next(keys), (H, E, dh)))
        per_layer["bk"].append(nrm(next(keys), (H, 1, dh)))
        per_layer["wv"].append(nrm(next(keys), (H, E, dh)))
        per_layer["bv"].append(nrm(next(keys), (H, 1, dh)))
        # out_proj split along its input (head) axis: (H, dh, E)
        per_layer["wo"].append(nrm(next(keys), (H, dh, E)))
        per_layer["bo"].append(nrm(next(keys), (1, E)))
        per_layer["ln1_g"].append(jnp.ones((1, E), jnp.float32))
        per_layer["ln1_b"].append(jnp.zeros((1, E), jnp.float32))
        per_layer["w1"].append(nrm(next(keys), (E, F)))
        per_layer["b1"].append(nrm(next(keys), (1, F)))
        per_layer["w2"].append(nrm(next(keys), (F, E)))
        per_layer["b2"].append(nrm(next(keys), (1, E)))
        per_layer["ln2_g"].append(jnp.ones((1, E), jnp.float32))
        per_layer["ln2_b"].append(jnp.zeros((1, E), jnp.float32))
    for n in names:
        params[n] = jnp.stack(per_layer[n])                      # (num_layers, ...)
    return params


if __name__ == "__main__":
    # Small shapes consistent with the module.
    SEQ, BATCH = 8, 2
    INPUT_DIM, EMBED_DIM, LATENT_DIM = 16, 32, 8
    NHEAD, DIM_FF, NUM_LAYERS = 4, 64, 2

    key = jax.random.PRNGKey(0)
    k_x, k_p = jax.random.split(key)
    x = jax.random.normal(k_x, (SEQ, BATCH, INPUT_DIM), dtype=jnp.float32)
    params = init_params(k_p, INPUT_DIM, LATENT_DIM, EMBED_DIM, NHEAD,
                         DIM_FF, NUM_LAYERS)

    fwd = jax.jit(functools.partial(encoder_t_forward, nhead=NHEAD))
    mu, std, logvar, enc_output = fwd(x, params)
    jax.block_until_ready((mu, std, logvar, enc_output))

    assert mu.shape == (SEQ, BATCH, LATENT_DIM)
    assert std.shape == (SEQ, BATCH, LATENT_DIM)
    assert logvar.shape == (SEQ, BATCH, LATENT_DIM)
    assert enc_output.shape == (SEQ, BATCH, EMBED_DIM)
    assert bool(jnp.all(jnp.isfinite(enc_output)))
    assert bool(jnp.allclose(std, jnp.exp(0.5 * logvar), rtol=1e-5, atol=1e-6))

    # Tight reference check (exact softmax in-kernel now).
    mu_r, std_r, lv_r, enc_r = encoder_t_reference(x, params, NHEAD)
    assert bool(jnp.allclose(enc_output, enc_r, rtol=1e-4, atol=1e-4))
    assert bool(jnp.allclose(mu, mu_r, rtol=1e-4, atol=1e-4))
    assert bool(jnp.allclose(logvar, lv_r, rtol=1e-4, atol=1e-4))
    assert bool(jnp.allclose(std, std_r, rtol=1e-4, atol=1e-4))

    print("KERNEL_OK")
</pallas_src>

<mosaic_0001>
module attributes {stable_mosaic.version = 11 : i64} {
  func.func @_encoder_kernel(%arg0: memref<16x16xf32, #tpu.memory_space<vmem>>, %arg1: memref<16x32xf32, #tpu.memory_space<vmem>>, %arg2: memref<1x32xf32, #tpu.memory_space<vmem>>, %arg3: memref<2x4x32x8xf32, #tpu.memory_space<vmem>>, %arg4: memref<2x4x1x8xf32, #tpu.memory_space<vmem>>, %arg5: memref<2x4x32x8xf32, #tpu.memory_space<vmem>>, %arg6: memref<2x4x1x8xf32, #tpu.memory_space<vmem>>, %arg7: memref<2x4x32x8xf32, #tpu.memory_space<vmem>>, %arg8: memref<2x4x1x8xf32, #tpu.memory_space<vmem>>, %arg9: memref<2x4x8x32xf32, #tpu.memory_space<vmem>>, %arg10: memref<2x1x32xf32, #tpu.memory_space<vmem>>, %arg11: memref<2x1x32xf32, #tpu.memory_space<vmem>>, %arg12: memref<2x1x32xf32, #tpu.memory_space<vmem>>, %arg13: memref<2x32x64xf32, #tpu.memory_space<vmem>>, %arg14: memref<2x1x64xf32, #tpu.memory_space<vmem>>, %arg15: memref<2x64x32xf32, #tpu.memory_space<vmem>>, %arg16: memref<2x1x32xf32, #tpu.memory_space<vmem>>, %arg17: memref<2x1x32xf32, #tpu.memory_space<vmem>>, %arg18: memref<2x1x32xf32, #tpu.memory_space<vmem>>, %arg19: memref<32x8xf32, #tpu.memory_space<vmem>>, %arg20: memref<1x8xf32, #tpu.memory_space<vmem>>, %arg21: memref<32x8xf32, #tpu.memory_space<vmem>>, %arg22: memref<1x8xf32, #tpu.memory_space<vmem>>, %arg23: memref<16x32xf32, #tpu.memory_space<vmem>>, %arg24: memref<16x8xf32, #tpu.memory_space<vmem>>, %arg25: memref<16x8xf32, #tpu.memory_space<vmem>>, %arg26: memref<16x8xf32, #tpu.memory_space<vmem>>) attributes {dimension_semantics = [], scalar_prefetch = 0 : i64, scratch_operands = 0 : i64, tpu.core_type = #tpu.core_type<tc>} {
    %0 = tpu.iota {dimensions = array<i32: 0>} : vector<16x16xi32>
    %c2_i32 = arith.constant 2 : i32
    %c0_i32 = arith.constant 0 : i32
    %1 = arith.cmpi eq, %c2_i32, %c0_i32 : i32
    %c1_i32 = arith.constant 1 : i32
    %2 = arith.select %1, %c1_i32, %c2_i32 : i32
    %3 = vector.broadcast %2 : i32 to vector<16x16xi32>
    %4 = arith.remsi %0, %3 : vector<16x16xi32>
    %c0_i32_0 = arith.constant 0 : i32
    %5 = vector.broadcast %c0_i32_0 : i32 to vector<16x16xi32>
    %6 = arith.cmpi ne, %4, %5 : vector<16x16xi32>
    %c0_i32_1 = arith.constant 0 : i32
    %7 = vector.broadcast %c0_i32_1 : i32 to vector<16x16xi32>
    %8 = arith.cmpi slt, %4, %7 : vector<16x16xi32>
    %c0_i32_2 = arith.constant 0 : i32
    %9 = arith.cmpi slt, %2, %c0_i32_2 : i32
    %10 = vector.broadcast %9 : i1 to vector<16x16xi1>
    %11 = vector.broadcast %10 : vector<16x16xi1> to vector<16x16xi1>
    %12 = arith.xori %8, %11 : vector<16x16xi1>
    %13 = arith.andi %12, %6 : vector<16x16xi1>
    %14 = vector.broadcast %2 : i32 to vector<16x16xi32>
    %15 = arith.addi %4, %14 : vector<16x16xi32>
    %16 = arith.select %13, %15, %4 : vector<16x16xi1>, vector<16x16xi32>
    %17 = tpu.iota {dimensions = array<i32: 1>} : vector<16x16xi32>
    %c2_i32_3 = arith.constant 2 : i32
    %c0_i32_4 = arith.constant 0 : i32
    %18 = arith.cmpi eq, %c2_i32_3, %c0_i32_4 : i32
    %c1_i32_5 = arith.constant 1 : i32
    %19 = arith.select %18, %c1_i32_5, %c2_i32_3 : i32
    %20 = vector.broadcast %19 : i32 to vector<16x16xi32>
    %21 = arith.remsi %17, %20 : vector<16x16xi32>
    %c0_i32_6 = arith.constant 0 : i32
    %22 = vector.broadcast %c0_i32_6 : i32 to vector<16x16xi32>
    %23 = arith.cmpi ne, %21, %22 : vector<16x16xi32>
    %c0_i32_7 = arith.constant 0 : i32
    %24 = vector.broadcast %c0_i32_7 : i32 to vector<16x16xi32>
    %25 = arith.cmpi slt, %21, %24 : vector<16x16xi32>
    %c0_i32_8 = arith.constant 0 : i32
    %26 = arith.cmpi slt, %19, %c0_i32_8 : i32
    %27 = vector.broadcast %26 : i1 to vector<16x16xi1>
    %28 = vector.broadcast %27 : vector<16x16xi1> to vector<16x16xi1>
    %29 = arith.xori %25, %28 : vector<16x16xi1>
    %30 = arith.andi %29, %23 : vector<16x16xi1>
    %31 = vector.broadcast %19 : i32 to vector<16x16xi32>
    %32 = arith.addi %21, %31 : vector<16x16xi32>
    %33 = arith.select %30, %32, %21 : vector<16x16xi1>, vector<16x16xi32>
    %34 = arith.cmpi eq, %16, %33 : vector<16x16xi32>
    %cst = arith.constant 0.000000e+00 : f32
    %cst_9 = arith.constant -1.000000e+30 : f32
    %35 = vector.broadcast %cst : f32 to vector<16x16xf32>
    %36 = vector.broadcast %cst_9 : f32 to vector<16x16xf32>
    %37 = arith.select %34, %35, %36 : vector<16x16xi1>, vector<16x16xf32>
    %c0 = arith.constant 0 : index
    %c0_10 = arith.constant 0 : index
    %38 = vector.load %arg0[%c0, %c0_10] : memref<16x16xf32, #tpu.memory_space<vmem>>, vector<16x16xf32>
    %c0_11 = arith.constant 0 : index
    %c0_12 = arith.constant 0 : index
    %39 = vector.load %arg1[%c0_11, %c0_12] : memref<16x32xf32, #tpu.memory_space<vmem>>, vector<16x32xf32>
    %cst_13 = arith.constant dense<0.000000e+00> : vector<16x32xf32>
    %40 = tpu.matmul %38, %39, %cst_13 {dimension_numbers = #tpu.dot_dimension_numbers<[1], [0], [0], [1], [0, 0, 1, 1], [], []>} : vector<16x16xf32>, vector<16x32xf32>, vector<16x32xf32> -> vector<16x32xf32>
    %c0_14 = arith.constant 0 : index
    %c0_15 = arith.constant 0 : index
    %41 = vector.load %arg2[%c0_14, %c0_15] : memref<1x32xf32, #tpu.memory_space<vmem>>, vector<1x32xf32>
    %42 = vector.broadcast %41 : vector<1x32xf32> to vector<16x32xf32>
    %43 = arith.addf %40, %42 : vector<16x32xf32>
    %c0_16 = arith.constant 0 : index
    %c0_17 = arith.constant 0 : index
    %c0_18 = arith.constant 0 : index
    %44 = vector.load %arg10[%c0_16, %c0_17, %c0_18] : memref<2x1x32xf32, #tpu.memory_space<vmem>>, vector<1x1x32xf32>
    %45 = vector.shape_cast %44 : vector<1x1x32xf32> to vector<1x32xf32>
    %c0_19 = arith.constant 0 : index
    %c0_20 = arith.constant 0 : index
    %c0_21 = arith.constant 0 : index
    %c0_22 = arith.constant 0 : index
    %46 = vector.load %arg3[%c0_19, %c0_20, %c0_21, %c0_22] : memref<2x4x32x8xf32, #tpu.memory_space<vmem>>, vector<1x1x32x8xf32>
    %47 = vector.shape_cast %46 : vector<1x1x32x8xf32> to vector<32x8xf32>
    %cst_23 = arith.constant dense<0.000000e+00> : vector<16x8xf32>
    %48 = tpu.matmul %43, %47, %cst_23 {dimension_numbers = #tpu.dot_dimension_numbers<[1], [0], [0], [1], [0, 0, 1, 1], [], []>} : vector<16x32xf32>, vector<32x8xf32>, vector<16x8xf32> -> vector<16x8xf32>
    %c0_24 = arith.constant 0 : index
    %c0_25 = arith.constant 0 : index
    %c0_26 = arith.constant 0 : index
    %c0_27 = arith.constant 0 : index
    %49 = vector.load %arg4[%c0_24, %c0_25, %c0_26, %c0_27] : memref<2x4x1x8xf32, #tpu.memory_space<vmem>>, vector<1x1x1x8xf32>
    %50 = vector.shape_cast %49 : vector<1x1x1x8xf32> to vector<1x8xf32>
    %51 = vector.broadcast %50 : vector<1x8xf32> to vector<16x8xf32>
    %52 = arith.addf %48, %51 : vector<16x8xf32>
    %cst_28 = arith.constant 0.353553385 : f32
    %53 = vector.broadcast %cst_28 : f32 to vector<16x8xf32>
    %54 = arith.mulf %52, %53 : vector<16x8xf32>
    %c0_29 = arith.constant 0 : index
    %c0_30 = arith.constant 0 : index
    %c0_31 = arith.constant 0 : index
    %c0_32 = arith.constant 0 : index
    %55 = vector.load %arg5[%c0_29, %c0_30, %c0_31, %c0_32] : memref<2x4x32x8xf32, #tpu.memory_space<vmem>>, vector<1x1x32x8xf32>
    %56 = vector.shape_cast %55 : vector<1x1x32x8xf32> to vector<32x8xf32>
    %cst_33 = arith.constant dense<0.000000e+00> : vector<16x8xf32>
    %57 = tpu.matmul %43, %56, %cst_33 {dimension_numbers = #tpu.dot_dimension_numbers<[1], [0], [0], [1], [0, 0, 1, 1], [], []>} : vector<16x32xf32>, vector<32x8xf32>, vector<16x8xf32> -> vector<16x8xf32>
    %c0_34 = arith.constant 0 : index
    %c0_35 = arith.constant 0 : index
    %c0_36 = arith.constant 0 : index
    %c0_37 = arith.constant 0 : index
    %58 = vector.load %arg6[%c0_34, %c0_35, %c0_36, %c0_37] : memref<2x4x1x8xf32, #tpu.memory_space<vmem>>, vector<1x1x1x8xf32>
    %59 = vector.shape_cast %58 : vector<1x1x1x8xf32> to vector<1x8xf32>
    %60 = vector.broadcast %59 : vector<1x8xf32> to vector<16x8xf32>
    %61 = arith.addf %57, %60 : vector<16x8xf32>
    %c0_38 = arith.constant 0 : index
    %c0_39 = arith.constant 0 : index
    %c0_40 = arith.constant 0 : index
    %c0_41 = arith.constant 0 : index
    %62 = vector.load %arg7[%c0_38, %c0_39, %c0_40, %c0_41] : memref<2x4x32x8xf32, #tpu.memory_space<vmem>>, vector<1x1x32x8xf32>
    %63 = vector.shape_cast %62 : vector<1x1x32x8xf32> to vector<32x8xf32>
    %cst_42 = arith.constant dense<0.000000e+00> : vector<16x8xf32>
    %64 = tpu.matmul %43, %63, %cst_42 {dimension_numbers = #tpu.dot_dimension_numbers<[1], [0], [0], [1], [0, 0, 1, 1], [], []>} : vector<16x32xf32>, vector<32x8xf32>, vector<16x8xf32> -> vector<16x8xf32>
    %c0_43 = arith.constant 0 : index
    %c0_44 = arith.constant 0 : index
    %c0_45 = arith.constant 0 : index
    %c0_46 = arith.constant 0 : index
    %65 = vector.load %arg8[%c0_43, %c0_44, %c0_45, %c0_46] : memref<2x4x1x8xf32, #tpu.memory_space<vmem>>, vector<1x1x1x8xf32>
    %66 = vector.shape_cast %65 : vector<1x1x1x8xf32> to vector<1x8xf32>
    %67 = vector.broadcast %66 : vector<1x8xf32> to vector<16x8xf32>
    %68 = arith.addf %64, %67 : vector<16x8xf32>
    %cst_47 = arith.constant dense<0.000000e+00> : vector<16x16xf32>
    %69 = tpu.matmul %54, %61, %cst_47 {dimension_numbers = #tpu.dot_dimension_numbers<[1], [1], [0], [0], [0, 0, 1, 0], [], []>} : vector<16x8xf32>, vector<16x8xf32>, vector<16x16xf32> -> vector<16x16xf32>
    %70 = arith.addf %69, %37 : vector<16x16xf32>
    %cst_48 = arith.constant dense<0xFF800000> : vector<16xf32>
    %71 = vector.multi_reduction <maximumf>, %70, %cst_48 [1] : vector<16x16xf32> to vector<16xf32>
    %72 = vector.shape_cast %71 : vector<16xf32> to vector<16x1xf32>
    %73 = vector.broadcast %72 : vector<16x1xf32> to vector<16x16xf32>
    %74 = arith.subf %70, %73 : vector<16x16xf32>
    %75 = math.exp %74 : vector<16x16xf32>
    %cst_49 = arith.constant dense<0.000000e+00> : vector<16xf32>
    %76 = vector.multi_reduction <add>, %75, %cst_49 [1] : vector<16x16xf32> to vector<16xf32>
    %77 = vector.shape_cast %76 : vector<16xf32> to vector<16x1xf32>
    %78 = vector.broadcast %77 : vector<16x1xf32> to vector<16x16xf32>
    %79 = arith.divf %75, %78 : vector<16x16xf32>
    %cst_50 = arith.constant dense<0.000000e+00> : vector<16x8xf32>
    %80 = tpu.matmul %79, %68, %cst_50 {dimension_numbers = #tpu.dot_dimension_numbers<[1], [0], [0], [1], [0, 0, 1, 1], [], []>} : vector<16x16xf32>, vector<16x8xf32>, vector<16x8xf32> -> vector<16x8xf32>
    %c0_51 = arith.constant 0 : index
    %c0_52 = arith.constant 0 : index
    %c0_53 = arith.constant 0 : index
    %c0_54 = arith.constant 0 : index
    %81 = vector.load %arg9[%c0_51, %c0_52, %c0_53, %c0_54] : memref<2x4x8x32xf32, #tpu.memory_space<vmem>>, vector<1x1x8x32xf32>
    %82 = vector.shape_cast %81 : vector<1x1x8x32xf32> to vector<8x32xf32>
    %cst_55 = arith.constant dense<0.000000e+00> : vector<16x32xf32>
    %83 = tpu.matmul %80, %82, %cst_55 {dimension_numbers = #tpu.dot_dimension_numbers<[1], [0], [0], [1], [0, 0, 1, 1], [], []>} : vector<16x8xf32>, vector<8x32xf32>, vector<16x32xf32> -> vector<16x32xf32>
    %84 = vector.broadcast %45 : vector<1x32xf32> to vector<16x32xf32>
    %85 = arith.addf %84, %83 : vector<16x32xf32>
    %c0_56 = arith.constant 0 : index
    %c1 = arith.constant 1 : index
    %c0_57 = arith.constant 0 : index
    %c0_58 = arith.constant 0 : index
    %86 = vector.load %arg3[%c0_56, %c1, %c0_57, %c0_58] : memref<2x4x32x8xf32, #tpu.memory_space<vmem>>, vector<1x1x32x8xf32>
    %87 = vector.shape_cast %86 : vector<1x1x32x8xf32> to vector<32x8xf32>
    %cst_59 = arith.constant dense<0.000000e+00> : vector<16x8xf32>
    %88 = tpu.matmul %43, %87, %cst_59 {dimension_numbers = #tpu.dot_dimension_numbers<[1], [0], [0], [1], [0, 0, 1, 1], [], []>} : vector<16x32xf32>, vector<32x8xf32>, vector<16x8xf32> -> vector<16x8xf32>
    %c0_60 = arith.constant 0 : index
    %c1_61 = arith.constant 1 : index
    %c0_62 = arith.constant 0 : index
    %c0_63 = arith.constant 0 : index
    %89 = vector.load %arg4[%c0_60, %c1_61, %c0_62, %c0_63] : memref<2x4x1x8xf32, #tpu.memory_space<vmem>>, vector<1x1x1x8xf32>
    %90 = vector.shape_cast %89 : vector<1x1x1x8xf32> to vector<1x8xf32>
    %91 = vector.broadcast %90 : vector<1x8xf32> to vector<16x8xf32>
    %92 = arith.addf %88, %91 : vector<16x8xf32>
    %cst_64 = arith.constant 0.353553385 : f32
    %93 = vector.broadcast %cst_64 : f32 to vector<16x8xf32>
    %94 = arith.mulf %92, %93 : vector<16x8xf32>
    %c0_65 = arith.constant 0 : index
    %c1_66 = arith.constant 1 : index
    %c0_67 = arith.constant 0 : index
    %c0_68 = arith.constant 0 : index
    %95 = vector.load %arg5[%c0_65, %c1_66, %c0_67, %c0_68] : memref<2x4x32x8xf32, #tpu.memory_space<vmem>>, vector<1x1x32x8xf32>
    %96 = vector.shape_cast %95 : vector<1x1x32x8xf32> to vector<32x8xf32>
    %cst_69 = arith.constant dense<0.000000e+00> : vector<16x8xf32>
    %97 = tpu.matmul %43, %96, %cst_69 {dimension_numbers = #tpu.dot_dimension_numbers<[1], [0], [0], [1], [0, 0, 1, 1], [], []>} : vector<16x32xf32>, vector<32x8xf32>, vector<16x8xf32> -> vector<16x8xf32>
    %c0_70 = arith.constant 0 : index
    %c1_71 = arith.constant 1 : index
    %c0_72 = arith.constant 0 : index
    %c0_73 = arith.constant 0 : index
    %98 = vector.load %arg6[%c0_70, %c1_71, %c0_72, %c0_73] : memref<2x4x1x8xf32, #tpu.memory_space<vmem>>, vector<1x1x1x8xf32>
    %99 = vector.shape_cast %98 : vector<1x1x1x8xf32> to vector<1x8xf32>
    %100 = vector.broadcast %99 : vector<1x8xf32> to vector<16x8xf32>
    %101 = arith.addf %97, %100 : vector<16x8xf32>
    %c0_74 = arith.constant 0 : index
    %c1_75 = arith.constant 1 : index
    %c0_76 = arith.constant 0 : index
    %c0_77 = arith.constant 0 : index
    %102 = vector.load %arg7[%c0_74, %c1_75, %c0_76, %c0_77] : memref<2x4x32x8xf32, #tpu.memory_space<vmem>>, vector<1x1x32x8xf32>
    %103 = vector.shape_cast %102 : vector<1x1x32x8xf32> to vector<32x8xf32>
    %cst_78 = arith.constant dense<0.000000e+00> : vector<16x8xf32>
    %104 = tpu.matmul %43, %103, %cst_78 {dimension_numbers = #tpu.dot_dimension_numbers<[1], [0], [0], [1], [0, 0, 1, 1], [], []>} : vector<16x32xf32>, vector<32x8xf32>, vector<16x8xf32> -> vector<16x8xf32>
    %c0_79 = arith.constant 0 : index
    %c1_80 = arith.constant 1 : index
    %c0_81 = arith.constant 0 : index
    %c0_82 = arith.constant 0 : index
    %105 = vector.load %arg8[%c0_79, %c1_80, %c0_81, %c0_82] : memref<2x4x1x8xf32, #tpu.memory_space<vmem>>, vector<1x1x1x8xf32>
    %106 = vector.shape_cast %105 : vector<1x1x1x8xf32> to vector<1x8xf32>
    %107 = vector.broadcast %106 : vector<1x8xf32> to vector<16x8xf32>
    %108 = arith.addf %104, %107 : vector<16x8xf32>
    %cst_83 = arith.constant dense<0.000000e+00> : vector<16x16xf32>
    %109 = tpu.matmul %94, %101, %cst_83 {dimension_numbers = #tpu.dot_dimension_numbers<[1], [1], [0], [0], [0, 0, 1, 0], [], []>} : vector<16x8xf32>, vector<16x8xf32>, vector<16x16xf32> -> vector<16x16xf32>
    %110 = arith.addf %109, %37 : vector<16x16xf32>
    %cst_84 = arith.constant dense<0xFF800000> : vector<16xf32>
    %111 = vector.multi_reduction <maximumf>, %110, %cst_84 [1] : vector<16x16xf32> to vector<16xf32>
    %112 = vector.shape_cast %111 : vector<16xf32> to vector<16x1xf32>
    %113 = vector.broadcast %112 : vector<16x1xf32> to vector<16x16xf32>
    %114 = arith.subf %110, %113 : vector<16x16xf32>
    %115 = math.exp %114 : vector<16x16xf32>
    %cst_85 = arith.constant dense<0.000000e+00> : vector<16xf32>
    %116 = vector.multi_reduction <add>, %115, %cst_85 [1] : vector<16x16xf32> to vector<16xf32>
    %117 = vector.shape_cast %116 : vector<16xf32> to vector<16x1xf32>
    %118 = vector.broadcast %117 : vector<16x1xf32> to vector<16x16xf32>
    %119 = arith.divf %115, %118 : vector<16x16xf32>
    %cst_86 = arith.constant dense<0.000000e+00> : vector<16x8xf32>
    %120 = tpu.matmul %119, %108, %cst_86 {dimension_numbers = #tpu.dot_dimension_numbers<[1], [0], [0], [1], [0, 0, 1, 1], [], []>} : vector<16x16xf32>, vector<16x8xf32>, vector<16x8xf32> -> vector<16x8xf32>
    %c0_87 = arith.constant 0 : index
    %c1_88 = arith.constant 1 : index
    %c0_89 = arith.constant 0 : index
    %c0_90 = arith.constant 0 : index
    %121 = vector.load %arg9[%c0_87, %c1_88, %c0_89, %c0_90] : memref<2x4x8x32xf32, #tpu.memory_space<vmem>>, vector<1x1x8x32xf32>
    %122 = vector.shape_cast %121 : vector<1x1x8x32xf32> to vector<8x32xf32>
    %cst_91 = arith.constant dense<0.000000e+00> : vector<16x32xf32>
    %123 = tpu.matmul %120, %122, %cst_91 {dimension_numbers = #tpu.dot_dimension_numbers<[1], [0], [0], [1], [0, 0, 1, 1], [], []>} : vector<16x8xf32>, vector<8x32xf32>, vector<16x32xf32> -> vector<16x32xf32>
    %124 = arith.addf %85, %123 : vector<16x32xf32>
    %c0_92 = arith.constant 0 : index
    %c2 = arith.constant 2 : index
    %c0_93 = arith.constant 0 : index
    %c0_94 = arith.constant 0 : index
    %125 = vector.load %arg3[%c0_92, %c2, %c0_93, %c0_94] : memref<2x4x32x8xf32, #tpu.memory_space<vmem>>, vector<1x1x32x8xf32>
    %126 = vector.shape_cast %125 : vector<1x1x32x8xf32> to vector<32x8xf32>
    %cst_95 = arith.constant dense<0.000000e+00> : vector<16x8xf32>
    %127 = tpu.matmul %43, %126, %cst_95 {dimension_numbers = #tpu.dot_dimension_numbers<[1], [0], [0], [1], [0, 0, 1, 1], [], []>} : vector<16x32xf32>, vector<32x8xf32>, vector<16x8xf32> -> vector<16x8xf32>
    %c0_96 = arith.constant 0 : index
    %c2_97 = arith.constant 2 : index
    %c0_98 = arith.constant 0 : index
    %c0_99 = arith.constant 0 : index
    %128 = vector.load %arg4[%c0_96, %c2_97, %c0_98, %c0_99] : memref<2x4x1x8xf32, #tpu.memory_space<vmem>>, vector<1x1x1x8xf32>
    %129 = vector.shape_cast %128 : vector<1x1x1x8xf32> to vector<1x8xf32>
    %130 = vector.broadcast %129 : vector<1x8xf32> to vector<16x8xf32>
    %131 = arith.addf %127, %130 : vector<16x8xf32>
    %cst_100 = arith.constant 0.353553385 : f32
    %132 = vector.broadcast %cst_100 : f32 to vector<16x8xf32>
    %133 = arith.mulf %131, %132 : vector<16x8xf32>
    %c0_101 = arith.constant 0 : index
    %c2_102 = arith.constant 2 : index
    %c0_103 = arith.constant 0 : index
    %c0_104 = arith.constant 0 : index
    %134 = vector.load %arg5[%c0_101, %c2_102, %c0_103, %c0_104] : memref<2x4x32x8xf32, #tpu.memory_space<vmem>>, vector<1x1x32x8xf32>
    %135 = vector.shape_cast %134 : vector<1x1x32x8xf32> to vector<32x8xf32>
    %cst_105 = arith.constant dense<0.000000e+00> : vector<16x8xf32>
    %136 = tpu.matmul %43, %135, %cst_105 {dimension_numbers = #tpu.dot_dimension_numbers<[1], [0], [0], [1], [0, 0, 1, 1], [], []>} : vector<16x32xf32>, vector<32x8xf32>, vector<16x8xf32> -> vector<16x8xf32>
    %c0_106 = arith.constant 0 : index
    %c2_107 = arith.constant 2 : index
    %c0_108 = arith.constant 0 : index
    %c0_109 = arith.constant 0 : index
    %137 = vector.load %arg6[%c0_106, %c2_107, %c0_108, %c0_109] : memref<2x4x1x8xf32, #tpu.memory_space<vmem>>, vector<1x1x1x8xf32>
    %138 = vector.shape_cast %137 : vector<1x1x1x8xf32> to vector<1x8xf32>
    %139 = vector.broadcast %138 : vector<1x8xf32> to vector<16x8xf32>
    %140 = arith.addf %136, %139 : vector<16x8xf32>
    %c0_110 = arith.constant 0 : index
    %c2_111 = arith.constant 2 : index
    %c0_112 = arith.constant 0 : index
    %c0_113 = arith.constant 0 : index
    %141 = vector.load %arg7[%c0_110, %c2_111, %c0_112, %c0_113] : memref<2x4x32x8xf32, #tpu.memory_space<vmem>>, vector<1x1x32x8xf32>
    %142 = vector.shape_cast %141 : vector<1x1x32x8xf32> to vector<32x8xf32>
    %cst_114 = arith.constant dense<0.000000e+00> : vector<16x8xf32>
    %143 = tpu.matmul %43, %142, %cst_114 {dimension_numbers = #tpu.dot_dimension_numbers<[1], [0], [0], [1], [0, 0, 1, 1], [], []>} : vector<16x32xf32>, vector<32x8xf32>, vector<16x8xf32> -> vector<16x8xf32>
    %c0_115 = arith.constant 0 : index
    %c2_116 = arith.constant 2 : index
    %c0_117 = arith.constant 0 : index
    %c0_118 = arith.constant 0 : index
    %144 = vector.load %arg8[%c0_115, %c2_116, %c0_117, %c0_118] : memref<2x4x1x8xf32, #tpu.memory_space<vmem>>, vector<1x1x1x8xf32>
    %145 = vector.shape_cast %144 : vector<1x1x1x8xf32> to vector<1x8xf32>
    %146 = vector.broadcast %145 : vector<1x8xf32> to vector<16x8xf32>
    %147 = arith.addf %143, %146 : vector<16x8xf32>
    %cst_119 = arith.constant dense<0.000000e+00> : vector<16x16xf32>
    %148 = tpu.matmul %133, %140, %cst_119 {dimension_numbers = #tpu.dot_dimension_numbers<[1], [1], [0], [0], [0, 0, 1, 0], [], []>} : vector<16x8xf32>, vector<16x8xf32>, vector<16x16xf32> -> vector<16x16xf32>
    %149 = arith.addf %148, %37 : vector<16x16xf32>
    %cst_120 = arith.constant dense<0xFF800000> : vector<16xf32>
    %150 = vector.multi_reduction <maximumf>, %149, %cst_120 [1] : vector<16x16xf32> to vector<16xf32>
    %151 = vector.shape_cast %150 : vector<16xf32> to vector<16x1xf32>
    %152 = vector.broadcast %151 : vector<16x1xf32> to vector<16x16xf32>
    %153 = arith.subf %149, %152 : vector<16x16xf32>
    %154 = math.exp %153 : vector<16x16xf32>
    %cst_121 = arith.constant dense<0.000000e+00> : vector<16xf32>
    %155 = vector.multi_reduction <add>, %154, %cst_121 [1] : vector<16x16xf32> to vector<16xf32>
    %156 = vector.shape_cast %155 : vector<16xf32> to vector<16x1xf32>
    %157 = vector.broadcast %156 : vector<16x1xf32> to vector<16x16xf32>
    %158 = arith.divf %154, %157 : vector<16x16xf32>
    %cst_122 = arith.constant dense<0.000000e+00> : vector<16x8xf32>
    %159 = tpu.matmul %158, %147, %cst_122 {dimension_numbers = #tpu.dot_dimension_numbers<[1], [0], [0], [1], [0, 0, 1, 1], [], []>} : vector<16x16xf32>, vector<16x8xf32>, vector<16x8xf32> -> vector<16x8xf32>
    %c0_123 = arith.constant 0 : index
    %c2_124 = arith.constant 2 : index
    %c0_125 = arith.constant 0 : index
    %c0_126 = arith.constant 0 : index
    %160 = vector.load %arg9[%c0_123, %c2_124, %c0_125, %c0_126] : memref<2x4x8x32xf32, #tpu.memory_space<vmem>>, vector<1x1x8x32xf32>
    %161 = vector.shape_cast %160 : vector<1x1x8x32xf32> to vector<8x32xf32>
    %cst_127 = arith.constant dense<0.000000e+00> : vector<16x32xf32>
    %162 = tpu.matmul %159, %161, %cst_127 {dimension_numbers = #tpu.dot_dimension_numbers<[1], [0], [0], [1], [0, 0, 1, 1], [], []>} : vector<16x8xf32>, vector<8x32xf32>, vector<16x32xf32> -> vector<16x32xf32>
    %163 = arith.addf %124, %162 : vector<16x32xf32>
    %c0_128 = arith.constant 0 : index
    %c3 = arith.constant 3 : index
    %c0_129 = arith.constant 0 : index
    %c0_130 = arith.constant 0 : index
    %164 = vector.load %arg3[%c0_128, %c3, %c0_129, %c0_130] : memref<2x4x32x8xf32, #tpu.memory_space<vmem>>, vector<1x1x32x8xf32>
    %165 = vector.shape_cast %164 : vector<1x1x32x8xf32> to vector<32x8xf32>
    %cst_131 = arith.constant dense<0.000000e+00> : vector<16x8xf32>
    %166 = tpu.matmul %43, %165, %cst_131 {dimension_numbers = #tpu.dot_dimension_numbers<[1], [0], [0], [1], [0, 0, 1, 1], [], []>} : vector<16x32xf32>, vector<32x8xf32>, vector<16x8xf32> -> vector<16x8xf32>
    %c0_132 = arith.constant 0 : index
    %c3_133 = arith.constant 3 : index
    %c0_134 = arith.constant 0 : index
    %c0_135 = arith.constant 0 : index
    %167 = vector.load %arg4[%c0_132, %c3_133, %c0_134, %c0_135] : memref<2x4x1x8xf32, #tpu.memory_space<vmem>>, vector<1x1x1x8xf32>
    %168 = vector.shape_cast %167 : vector<1x1x1x8xf32> to vector<1x8xf32>
    %169 = vector.broadcast %168 : vector<1x8xf32> to vector<16x8xf32>
    %170 = arith.addf %166, %169 : vector<16x8xf32>
    %cst_136 = arith.constant 0.353553385 : f32
    %171 = vector.broadcast %cst_136 : f32 to vector<16x8xf32>
    %172 = arith.mulf %170, %171 : vector<16x8xf32>
    %c0_137 = arith.constant 0 : index
    %c3_138 = arith.constant 3 : index
    %c0_139 = arith.constant 0 : index
    %c0_140 = arith.constant 0 : index
    %173 = vector.load %arg5[%c0_137, %c3_138, %c0_139, %c0_140] : memref<2x4x32x8xf32, #tpu.memory_space<vmem>>, vector<1x1x32x8xf32>
    %174 = vector.shape_cast %173 : vector<1x1x32x8xf32> to vector<32x8xf32>
    %cst_141 = arith.constant dense<0.000000e+00> : vector<16x8xf32>
    %175 = tpu.matmul %43, %174, %cst_141 {dimension_numbers = #tpu.dot_dimension_numbers<[1], [0], [0], [1], [0, 0, 1, 1], [], []>} : vector<16x32xf32>, vector<32x8xf32>, vector<16x8xf32> -> vector<16x8xf32>
    %c0_142 = arith.constant 0 : index
    %c3_143 = arith.constant 3 : index
    %c0_144 = arith.constant 0 : index
    %c0_145 = arith.constant 0 : index
    %176 = vector.load %arg6[%c0_142, %c3_143, %c0_144, %c0_145] : memref<2x4x1x8xf32, #tpu.memory_space<vmem>>, vector<1x1x1x8xf32>
    %177 = vector.shape_cast %176 : vector<1x1x1x8xf32> to vector<1x8xf32>
    %178 = vector.broadcast %177 : vector<1x8xf32> to vector<16x8xf32>
    %179 = arith.addf %175, %178 : vector<16x8xf32>
    %c0_146 = arith.constant 0 : index
    %c3_147 = arith.constant 3 : index
    %c0_148 = arith.constant 0 : index
    %c0_149 = arith.constant 0 : index
    %180 = vector.load %arg7[%c0_146, %c3_147, %c0_148, %c0_149] : memref<2x4x32x8xf32, #tpu.memory_space<vmem>>, vector<1x1x32x8xf32>
    %181 = vector.shape_cast %180 : vector<1x1x32x8xf32> to vector<32x8xf32>
    %cst_150 = arith.constant dense<0.000000e+00> : vector<16x8xf32>
    %182 = tpu.matmul %43, %181, %cst_150 {dimension_numbers = #tpu.dot_dimension_numbers<[1], [0], [0], [1], [0, 0, 1, 1], [], []>} : vector<16x32xf32>, vector<32x8xf32>, vector<16x8xf32> -> vector<16x8xf32>
    %c0_151 = arith.constant 0 : index
    %c3_152 = arith.constant 3 : index
    %c0_153 = arith.constant 0 : index
    %c0_154 = arith.constant 0 : index
    %183 = vector.load %arg8[%c0_151, %c3_152, %c0_153, %c0_154] : memref<2x4x1x8xf32, #tpu.memory_space<vmem>>, vector<1x1x1x8xf32>
    %184 = vector.shape_cast %183 : vector<1x1x1x8xf32> to vector<1x8xf32>
    %185 = vector.broadcast %184 : vector<1x8xf32> to vector<16x8xf32>
    %186 = arith.addf %182, %185 : vector<16x8xf32>
    %cst_155 = arith.constant dense<0.000000e+00> : vector<16x16xf32>
    %187 = tpu.matmul %172, %179, %cst_155 {dimension_numbers = #tpu.dot_dimension_numbers<[1], [1], [0], [0], [0, 0, 1, 0], [], []>} : vector<16x8xf32>, vector<16x8xf32>, vector<16x16xf32> -> vector<16x16xf32>
    %188 = arith.addf %187, %37 : vector<16x16xf32>
    %cst_156 = arith.constant dense<0xFF800000> : vector<16xf32>
    %189 = vector.multi_reduction <maximumf>, %188, %cst_156 [1] : vector<16x16xf32> to vector<16xf32>
    %190 = vector.shape_cast %189 : vector<16xf32> to vector<16x1xf32>
    %191 = vector.broadcast %190 : vector<16x1xf32> to vector<16x16xf32>
    %192 = arith.subf %188, %191 : vector<16x16xf32>
    %193 = math.exp %192 : vector<16x16xf32>
    %cst_157 = arith.constant dense<0.000000e+00> : vector<16xf32>
    %194 = vector.multi_reduction <add>, %193, %cst_157 [1] : vector<16x16xf32> to vector<16xf32>
    %195 = vector.shape_cast %194 : vector<16xf32> to vector<16x1xf32>
    %196 = vector.broadcast %195 : vector<16x1xf32> to vector<16x16xf32>
    %197 = arith.divf %193, %196 : vector<16x16xf32>
    %cst_158 = arith.constant dense<0.000000e+00> : vector<16x8xf32>
    %198 = tpu.matmul %197, %186, %cst_158 {dimension_numbers = #tpu.dot_dimension_numbers<[1], [0], [0], [1], [0, 0, 1, 1], [], []>} : vector<16x16xf32>, vector<16x8xf32>, vector<16x8xf32> -> vector<16x8xf32>
    %c0_159 = arith.constant 0 : index
    %c3_160 = arith.constant 3 : index
    %c0_161 = arith.constant 0 : index
    %c0_162 = arith.constant 0 : index
    %199 = vector.load %arg9[%c0_159, %c3_160, %c0_161, %c0_162] : memref<2x4x8x32xf32, #tpu.memory_space<vmem>>, vector<1x1x8x32xf32>
    %200 = vector.shape_cast %199 : vector<1x1x8x32xf32> to vector<8x32xf32>
    %cst_163 = arith.constant dense<0.000000e+00> : vector<16x32xf32>
    %201 = tpu.matmul %198, %200, %cst_163 {dimension_numbers = #tpu.dot_dimension_numbers<[1], [0], [0], [1], [0, 0, 1, 1], [], []>} : vector<16x8xf32>, vector<8x32xf32>, vector<16x32xf32> -> vector<16x32xf32>
    %202 = arith.addf %163, %201 : vector<16x32xf32>
    %203 = arith.addf %43, %202 : vector<16x32xf32>
    %c0_164 = arith.constant 0 : index
    %c0_165 = arith.constant 0 : index
    %c0_166 = arith.constant 0 : index
    %204 = vector.load %arg11[%c0_164, %c0_165, %c0_166] : memref<2x1x32xf32, #tpu.memory_space<vmem>>, vector<1x1x32xf32>
    %205 = vector.shape_cast %204 : vector<1x1x32xf32> to vector<1x32xf32>
    %c0_167 = arith.constant 0 : index
    %c0_168 = arith.constant 0 : index
    %c0_169 = arith.constant 0 : index
    %206 = vector.load %arg12[%c0_167, %c0_168, %c0_169] : memref<2x1x32xf32, #tpu.memory_space<vmem>>, vector<1x1x32xf32>
    %207 = vector.shape_cast %206 : vector<1x1x32xf32> to vector<1x32xf32>
    %cst_170 = arith.constant dense<0.000000e+00> : vector<16xf32>
    %208 = vector.multi_reduction <add>, %203, %cst_170 [1] : vector<16x32xf32> to vector<16xf32>
    %209 = vector.shape_cast %208 : vector<16xf32> to vector<16x1xf32>
    %cst_171 = arith.constant 3.200000e+01 : f32
    %210 = vector.broadcast %cst_171 : f32 to vector<16x1xf32>
    %211 = arith.divf %209, %210 : vector<16x1xf32>
    %212 = vector.broadcast %211 : vector<16x1xf32> to vector<16x32xf32>
    %213 = arith.subf %203, %212 : vector<16x32xf32>
    %214 = arith.mulf %213, %213 : vector<16x32xf32>
    %cst_172 = arith.constant dense<0.000000e+00> : vector<16xf32>
    %215 = vector.multi_reduction <add>, %214, %cst_172 [1] : vector<16x32xf32> to vector<16xf32>
    %216 = vector.shape_cast %215 : vector<16xf32> to vector<16x1xf32>
    %cst_173 = arith.constant 3.200000e+01 : f32
    %217 = vector.broadcast %cst_173 : f32 to vector<16x1xf32>
    %218 = arith.divf %216, %217 : vector<16x1xf32>
    %cst_174 = arith.constant 9.99999974E-6 : f32
    %219 = vector.broadcast %cst_174 : f32 to vector<16x1xf32>
    %220 = arith.addf %218, %219 : vector<16x1xf32>
    %221 = math.rsqrt %220 : vector<16x1xf32>
    %222 = vector.broadcast %221 : vector<16x1xf32> to vector<16x32xf32>
    %223 = arith.mulf %213, %222 : vector<16x32xf32>
    %224 = vector.broadcast %205 : vector<1x32xf32> to vector<16x32xf32>
    %225 = arith.mulf %223, %224 : vector<16x32xf32>
    %226 = vector.broadcast %207 : vector<1x32xf32> to vector<16x32xf32>
    %227 = arith.addf %225, %226 : vector<16x32xf32>
    %c0_175 = arith.constant 0 : index
    %c0_176 = arith.constant 0 : index
    %c0_177 = arith.constant 0 : index
    %228 = vector.load %arg13[%c0_175, %c0_176, %c0_177] : memref<2x32x64xf32, #tpu.memory_space<vmem>>, vector<1x32x64xf32>
    %229 = vector.shape_cast %228 : vector<1x32x64xf32> to vector<32x64xf32>
    %cst_178 = arith.constant dense<0.000000e+00> : vector<16x64xf32>
    %230 = tpu.matmul %227, %229, %cst_178 {dimension_numbers = #tpu.dot_dimension_numbers<[1], [0], [0], [1], [0, 0, 1, 1], [], []>} : vector<16x32xf32>, vector<32x64xf32>, vector<16x64xf32> -> vector<16x64xf32>
    %c0_179 = arith.constant 0 : index
    %c0_180 = arith.constant 0 : index
    %c0_181 = arith.constant 0 : index
    %231 = vector.load %arg14[%c0_179, %c0_180, %c0_181] : memref<2x1x64xf32, #tpu.memory_space<vmem>>, vector<1x1x64xf32>
    %232 = vector.shape_cast %231 : vector<1x1x64xf32> to vector<1x64xf32>
    %233 = vector.broadcast %232 : vector<1x64xf32> to vector<16x64xf32>
    %234 = arith.addf %230, %233 : vector<16x64xf32>
    %cst_182 = arith.constant 0.000000e+00 : f32
    %235 = vector.broadcast %cst_182 : f32 to vector<16x64xf32>
    %236 = arith.maximumf %234, %235 : vector<16x64xf32>
    %c0_183 = arith.constant 0 : index
    %c0_184 = arith.constant 0 : index
    %c0_185 = arith.constant 0 : index
    %237 = vector.load %arg15[%c0_183, %c0_184, %c0_185] : memref<2x64x32xf32, #tpu.memory_space<vmem>>, vector<1x64x32xf32>
    %238 = vector.shape_cast %237 : vector<1x64x32xf32> to vector<64x32xf32>
    %cst_186 = arith.constant dense<0.000000e+00> : vector<16x32xf32>
    %239 = tpu.matmul %236, %238, %cst_186 {dimension_numbers = #tpu.dot_dimension_numbers<[1], [0], [0], [1], [0, 0, 1, 1], [], []>} : vector<16x64xf32>, vector<64x32xf32>, vector<16x32xf32> -> vector<16x32xf32>
    %c0_187 = arith.constant 0 : index
    %c0_188 = arith.constant 0 : index
    %c0_189 = arith.constant 0 : index
    %240 = vector.load %arg16[%c0_187, %c0_188, %c0_189] : memref<2x1x32xf32, #tpu.memory_space<vmem>>, vector<1x1x32xf32>
    %241 = vector.shape_cast %240 : vector<1x1x32xf32> to vector<1x32xf32>
    %242 = vector.broadcast %241 : vector<1x32xf32> to vector<16x32xf32>
    %243 = arith.addf %239, %242 : vector<16x32xf32>
    %244 = arith.addf %227, %243 : vector<16x32xf32>
    %c0_190 = arith.constant 0 : index
    %c0_191 = arith.constant 0 : index
    %c0_192 = arith.constant 0 : index
    %245 = vector.load %arg17[%c0_190, %c0_191, %c0_192] : memref<2x1x32xf32, #tpu.memory_space<vmem>>, vector<1x1x32xf32>
    %246 = vector.shape_cast %245 : vector<1x1x32xf32> to vector<1x32xf32>
    %c0_193 = arith.constant 0 : index
    %c0_194 = arith.constant 0 : index
    %c0_195 = arith.constant 0 : index
    %247 = vector.load %arg18[%c0_193, %c0_194, %c0_195] : memref<2x1x32xf32, #tpu.memory_space<vmem>>, vector<1x1x32xf32>
    %248 = vector.shape_cast %247 : vector<1x1x32xf32> to vector<1x32xf32>
    %cst_196 = arith.constant dense<0.000000e+00> : vector<16xf32>
    %249 = vector.multi_reduction <add>, %244, %cst_196 [1] : vector<16x32xf32> to vector<16xf32>
    %250 = vector.shape_cast %249 : vector<16xf32> to vector<16x1xf32>
    %cst_197 = arith.constant 3.200000e+01 : f32
    %251 = vector.broadcast %cst_197 : f32 to vector<16x1xf32>
    %252 = arith.divf %250, %251 : vector<16x1xf32>
    %253 = vector.broadcast %252 : vector<16x1xf32> to vector<16x32xf32>
    %254 = arith.subf %244, %253 : vector<16x32xf32>
    %255 = arith.mulf %254, %254 : vector<16x32xf32>
    %cst_198 = arith.constant dense<0.000000e+00> : vector<16xf32>
    %256 = vector.multi_reduction <add>, %255, %cst_198 [1] : vector<16x32xf32> to vector<16xf32>
    %257 = vector.shape_cast %256 : vector<16xf32> to vector<16x1xf32>
    %cst_199 = arith.constant 3.200000e+01 : f32
    %258 = vector.broadcast %cst_199 : f32 to vector<16x1xf32>
    %259 = arith.divf %257, %258 : vector<16x1xf32>
    %cst_200 = arith.constant 9.99999974E-6 : f32
    %260 = vector.broadcast %cst_200 : f32 to vector<16x1xf32>
    %261 = arith.addf %259, %260 : vector<16x1xf32>
    %262 = math.rsqrt %261 : vector<16x1xf32>
    %263 = vector.broadcast %262 : vector<16x1xf32> to vector<16x32xf32>
    %264 = arith.mulf %254, %263 : vector<16x32xf32>
    %265 = vector.broadcast %246 : vector<1x32xf32> to vector<16x32xf32>
    %266 = arith.mulf %264, %265 : vector<16x32xf32>
    %267 = vector.broadcast %248 : vector<1x32xf32> to vector<16x32xf32>
    %268 = arith.addf %266, %267 : vector<16x32xf32>
    %c1_201 = arith.constant 1 : index
    %c0_202 = arith.constant 0 : index
    %c0_203 = arith.constant 0 : index
    %269 = vector.load %arg10[%c1_201, %c0_202, %c0_203] : memref<2x1x32xf32, #tpu.memory_space<vmem>>, vector<1x1x32xf32>
    %270 = vector.shape_cast %269 : vector<1x1x32xf32> to vector<1x32xf32>
    %c1_204 = arith.constant 1 : index
    %c0_205 = arith.constant 0 : index
    %c0_206 = arith.constant 0 : index
    %c0_207 = arith.constant 0 : index
    %271 = vector.load %arg3[%c1_204, %c0_205, %c0_206, %c0_207] : memref<2x4x32x8xf32, #tpu.memory_space<vmem>>, vector<1x1x32x8xf32>
    %272 = vector.shape_cast %271 : vector<1x1x32x8xf32> to vector<32x8xf32>
    %cst_208 = arith.constant dense<0.000000e+00> : vector<16x8xf32>
    %273 = tpu.matmul %268, %272, %cst_208 {dimension_numbers = #tpu.dot_dimension_numbers<[1], [0], [0], [1], [0, 0, 1, 1], [], []>} : vector<16x32xf32>, vector<32x8xf32>, vector<16x8xf32> -> vector<16x8xf32>
    %c1_209 = arith.constant 1 : index
    %c0_210 = arith.constant 0 : index
    %c0_211 = arith.constant 0 : index
    %c0_212 = arith.constant 0 : index
    %274 = vector.load %arg4[%c1_209, %c0_210, %c0_211, %c0_212] : memref<2x4x1x8xf32, #tpu.memory_space<vmem>>, vector<1x1x1x8xf32>
    %275 = vector.shape_cast %274 : vector<1x1x1x8xf32> to vector<1x8xf32>
    %276 = vector.broadcast %275 : vector<1x8xf32> to vector<16x8xf32>
    %277 = arith.addf %273, %276 : vector<16x8xf32>
    %cst_213 = arith.constant 0.353553385 : f32
    %278 = vector.broadcast %cst_213 : f32 to vector<16x8xf32>
    %279 = arith.mulf %277, %278 : vector<16x8xf32>
    %c1_214 = arith.constant 1 : index
    %c0_215 = arith.constant 0 : index
    %c0_216 = arith.constant 0 : index
    %c0_217 = arith.constant 0 : index
    %280 = vector.load %arg5[%c1_214, %c0_215, %c0_216, %c0_217] : memref<2x4x32x8xf32, #tpu.memory_space<vmem>>, vector<1x1x32x8xf32>
    %281 = vector.shape_cast %280 : vector<1x1x32x8xf32> to vector<32x8xf32>
    %cst_218 = arith.constant dense<0.000000e+00> : vector<16x8xf32>
    %282 = tpu.matmul %268, %281, %cst_218 {dimension_numbers = #tpu.dot_dimension_numbers<[1], [0], [0], [1], [0, 0, 1, 1], [], []>} : vector<16x32xf32>, vector<32x8xf32>, vector<16x8xf32> -> vector<16x8xf32>
    %c1_219 = arith.constant 1 : index
    %c0_220 = arith.constant 0 : index
    %c0_221 = arith.constant 0 : index
    %c0_222 = arith.constant 0 : index
    %283 = vector.load %arg6[%c1_219, %c0_220, %c0_221, %c0_222] : memref<2x4x1x8xf32, #tpu.memory_space<vmem>>, vector<1x1x1x8xf32>
    %284 = vector.shape_cast %283 : vector<1x1x1x8xf32> to vector<1x8xf32>
    %285 = vector.broadcast %284 : vector<1x8xf32> to vector<16x8xf32>
    %286 = arith.addf %282, %285 : vector<16x8xf32>
    %c1_223 = arith.constant 1 : index
    %c0_224 = arith.constant 0 : index
    %c0_225 = arith.constant 0 : index
    %c0_226 = arith.constant 0 : index
    %287 = vector.load %arg7[%c1_223, %c0_224, %c0_225, %c0_226] : memref<2x4x32x8xf32, #tpu.memory_space<vmem>>, vector<1x1x32x8xf32>
    %288 = vector.shape_cast %287 : vector<1x1x32x8xf32> to vector<32x8xf32>
    %cst_227 = arith.constant dense<0.000000e+00> : vector<16x8xf32>
    %289 = tpu.matmul %268, %288, %cst_227 {dimension_numbers = #tpu.dot_dimension_numbers<[1], [0], [0], [1], [0, 0, 1, 1], [], []>} : vector<16x32xf32>, vector<32x8xf32>, vector<16x8xf32> -> vector<16x8xf32>
    %c1_228 = arith.constant 1 : index
    %c0_229 = arith.constant 0 : index
    %c0_230 = arith.constant 0 : index
    %c0_231 = arith.constant 0 : index
    %290 = vector.load %arg8[%c1_228, %c0_229, %c0_230, %c0_231] : memref<2x4x1x8xf32, #tpu.memory_space<vmem>>, vector<1x1x1x8xf32>
    %291 = vector.shape_cast %290 : vector<1x1x1x8xf32> to vector<1x8xf32>
    %292 = vector.broadcast %291 : vector<1x8xf32> to vector<16x8xf32>
    %293 = arith.addf %289, %292 : vector<16x8xf32>
    %cst_232 = arith.constant dense<0.000000e+00> : vector<16x16xf32>
    %294 = tpu.matmul %279, %286, %cst_232 {dimension_numbers = #tpu.dot_dimension_numbers<[1], [1], [0], [0], [0, 0, 1, 0], [], []>} : vector<16x8xf32>, vector<16x8xf32>, vector<16x16xf32> -> vector<16x16xf32>
    %295 = arith.addf %294, %37 : vector<16x16xf32>
    %cst_233 = arith.constant dense<0xFF800000> : vector<16xf32>
    %296 = vector.multi_reduction <maximumf>, %295, %cst_233 [1] : vector<16x16xf32> to vector<16xf32>
    %297 = vector.shape_cast %296 : vector<16xf32> to vector<16x1xf32>
    %298 = vector.broadcast %297 : vector<16x1xf32> to vector<16x16xf32>
    %299 = arith.subf %295, %298 : vector<16x16xf32>
    %300 = math.exp %299 : vector<16x16xf32>
    %cst_234 = arith.constant dense<0.000000e+00> : vector<16xf32>
    %301 = vector.multi_reduction <add>, %300, %cst_234 [1] : vector<16x16xf32> to vector<16xf32>
    %302 = vector.shape_cast %301 : vector<16xf32> to vector<16x1xf32>
    %303 = vector.broadcast %302 : vector<16x1xf32> to vector<16x16xf32>
    %304 = arith.divf %300, %303 : vector<16x16xf32>
    %cst_235 = arith.constant dense<0.000000e+00> : vector<16x8xf32>
    %305 = tpu.matmul %304, %293, %cst_235 {dimension_numbers = #tpu.dot_dimension_numbers<[1], [0], [0], [1], [0, 0, 1, 1], [], []>} : vector<16x16xf32>, vector<16x8xf32>, vector<16x8xf32> -> vector<16x8xf32>
    %c1_236 = arith.constant 1 : index
    %c0_237 = arith.constant 0 : index
    %c0_238 = arith.constant 0 : index
    %c0_239 = arith.constant 0 : index
    %306 = vector.load %arg9[%c1_236, %c0_237, %c0_238, %c0_239] : memref<2x4x8x32xf32, #tpu.memory_space<vmem>>, vector<1x1x8x32xf32>
    %307 = vector.shape_cast %306 : vector<1x1x8x32xf32> to vector<8x32xf32>
    %cst_240 = arith.constant dense<0.000000e+00> : vector<16x32xf32>
    %308 = tpu.matmul %305, %307, %cst_240 {dimension_numbers = #tpu.dot_dimension_numbers<[1], [0], [0], [1], [0, 0, 1, 1], [], []>} : vector<16x8xf32>, vector<8x32xf32>, vector<16x32xf32> -> vector<16x32xf32>
    %309 = vector.broadcast %270 : vector<1x32xf32> to vector<16x32xf32>
    %310 = arith.addf %309, %308 : vector<16x32xf32>
    %c1_241 = arith.constant 1 : index
    %c1_242 = arith.constant 1 : index
    %c0_243 = arith.constant 0 : index
    %c0_244 = arith.constant 0 : index
    %311 = vector.load %arg3[%c1_241, %c1_242, %c0_243, %c0_244] : memref<2x4x32x8xf32, #tpu.memory_space<vmem>>, vector<1x1x32x8xf32>
    %312 = vector.shape_cast %311 : vector<1x1x32x8xf32> to vector<32x8xf32>
    %cst_245 = arith.constant dense<0.000000e+00> : vector<16x8xf32>
    %313 = tpu.matmul %268, %312, %cst_245 {dimension_numbers = #tpu.dot_dimension_numbers<[1], [0], [0], [1], [0, 0, 1, 1], [], []>} : vector<16x32xf32>, vector<32x8xf32>, vector<16x8xf32> -> vector<16x8xf32>
    %c1_246 = arith.constant 1 : index
    %c1_247 = arith.constant 1 : index
    %c0_248 = arith.constant 0 : index
    %c0_249 = arith.constant 0 : index
    %314 = vector.load %arg4[%c1_246, %c1_247, %c0_248, %c0_249] : memref<2x4x1x8xf32, #tpu.memory_space<vmem>>, vector<1x1x1x8xf32>
    %315 = vector.shape_cast %314 : vector<1x1x1x8xf32> to vector<1x8xf32>
    %316 = vector.broadcast %315 : vector<1x8xf32> to vector<16x8xf32>
    %317 = arith.addf %313, %316 : vector<16x8xf32>
    %cst_250 = arith.constant 0.353553385 : f32
    %318 = vector.broadcast %cst_250 : f32 to vector<16x8xf32>
    %319 = arith.mulf %317, %318 : vector<16x8xf32>
    %c1_251 = arith.constant 1 : index
    %c1_252 = arith.constant 1 : index
    %c0_253 = arith.constant 0 : index
    %c0_254 = arith.constant 0 : index
    %320 = vector.load %arg5[%c1_251, %c1_252, %c0_253, %c0_254] : memref<2x4x32x8xf32, #tpu.memory_space<vmem>>, vector<1x1x32x8xf32>
    %321 = vector.shape_cast %320 : vector<1x1x32x8xf32> to vector<32x8xf32>
    %cst_255 = arith.constant dense<0.000000e+00> : vector<16x8xf32>
    %322 = tpu.matmul %268, %321, %cst_255 {dimension_numbers = #tpu.dot_dimension_numbers<[1], [0], [0], [1], [0, 0, 1, 1], [], []>} : vector<16x32xf32>, vector<32x8xf32>, vector<16x8xf32> -> vector<16x8xf32>
    %c1_256 = arith.constant 1 : index
    %c1_257 = arith.constant 1 : index
    %c0_258 = arith.constant 0 : index
    %c0_259 = arith.constant 0 : index
    %323 = vector.load %arg6[%c1_256, %c1_257, %c0_258, %c0_259] : memref<2x4x1x8xf32, #tpu.memory_space<vmem>>, vector<1x1x1x8xf32>
    %324 = vector.shape_cast %323 : vector<1x1x1x8xf32> to vector<1x8xf32>
    %325 = vector.broadcast %324 : vector<1x8xf32> to vector<16x8xf32>
    %326 = arith.addf %322, %325 : vector<16x8xf32>
    %c1_260 = arith.constant 1 : index
    %c1_261 = arith.constant 1 : index
    %c0_262 = arith.constant 0 : index
    %c0_263 = arith.constant 0 : index
    %327 = vector.load %arg7[%c1_260, %c1_261, %c0_262, %c0_263] : memref<2x4x32x8xf32, #tpu.memory_space<vmem>>, vector<1x1x32x8xf32>
    %328 = vector.shape_cast %327 : vector<1x1x32x8xf32> to vector<32x8xf32>
    %cst_264 = arith.constant dense<0.000000e+00> : vector<16x8xf32>
    %329 = tpu.matmul %268, %328, %cst_264 {dimension_numbers = #tpu.dot_dimension_numbers<[1], [0], [0], [1], [0, 0, 1, 1], [], []>} : vector<16x32xf32>, vector<32x8xf32>, vector<16x8xf32> -> vector<16x8xf32>
    %c1_265 = arith.constant 1 : index
    %c1_266 = arith.constant 1 : index
    %c0_267 = arith.constant 0 : index
    %c0_268 = arith.constant 0 : index
    %330 = vector.load %arg8[%c1_265, %c1_266, %c0_267, %c0_268] : memref<2x4x1x8xf32, #tpu.memory_space<vmem>>, vector<1x1x1x8xf32>
    %331 = vector.shape_cast %330 : vector<1x1x1x8xf32> to vector<1x8xf32>
    %332 = vector.broadcast %331 : vector<1x8xf32> to vector<16x8xf32>
    %333 = arith.addf %329, %332 : vector<16x8xf32>
    %cst_269 = arith.constant dense<0.000000e+00> : vector<16x16xf32>
    %334 = tpu.matmul %319, %326, %cst_269 {dimension_numbers = #tpu.dot_dimension_numbers<[1], [1], [0], [0], [0, 0, 1, 0], [], []>} : vector<16x8xf32>, vector<16x8xf32>, vector<16x16xf32> -> vector<16x16xf32>
    %335 = arith.addf %334, %37 : vector<16x16xf32>
    %cst_270 = arith.constant dense<0xFF800000> : vector<16xf32>
    %336 = vector.multi_reduction <maximumf>, %335, %cst_270 [1] : vector<16x16xf32> to vector<16xf32>
    %337 = vector.shape_cast %336 : vector<16xf32> to vector<16x1xf32>
    %338 = vector.broadcast %337 : vector<16x1xf32> to vector<16x16xf32>
    %339 = arith.subf %335, %338 : vector<16x16xf32>
    %340 = math.exp %339 : vector<16x16xf32>
    %cst_271 = arith.constant dense<0.000000e+00> : vector<16xf32>
    %341 = vector.multi_reduction <add>, %340, %cst_271 [1] : vector<16x16xf32> to vector<16xf32>
    %342 = vector.shape_cast %341 : vector<16xf32> to vector<16x1xf32>
    %343 = vector.broadcast %342 : vector<16x1xf32> to vector<16x16xf32>
    %344 = arith.divf %340, %343 : vector<16x16xf32>
    %cst_272 = arith.constant dense<0.000000e+00> : vector<16x8xf32>
    %345 = tpu.matmul %344, %333, %cst_272 {dimension_numbers = #tpu.dot_dimension_numbers<[1], [0], [0], [1], [0, 0, 1, 1], [], []>} : vector<16x16xf32>, vector<16x8xf32>, vector<16x8xf32> -> vector<16x8xf32>
    %c1_273 = arith.constant 1 : index
    %c1_274 = arith.constant 1 : index
    %c0_275 = arith.constant 0 : index
    %c0_276 = arith.constant 0 : index
    %346 = vector.load %arg9[%c1_273, %c1_274, %c0_275, %c0_276] : memref<2x4x8x32xf32, #tpu.memory_space<vmem>>, vector<1x1x8x32xf32>
    %347 = vector.shape_cast %346 : vector<1x1x8x32xf32> to vector<8x32xf32>
    %cst_277 = arith.constant dense<0.000000e+00> : vector<16x32xf32>
    %348 = tpu.matmul %345, %347, %cst_277 {dimension_numbers = #tpu.dot_dimension_numbers<[1], [0], [0], [1], [0, 0, 1, 1], [], []>} : vector<16x8xf32>, vector<8x32xf32>, vector<16x32xf32> -> vector<16x32xf32>
    %349 = arith.addf %310, %348 : vector<16x32xf32>
    %c1_278 = arith.constant 1 : index
    %c2_279 = arith.constant 2 : index
    %c0_280 = arith.constant 0 : index
    %c0_281 = arith.constant 0 : index
    %350 = vector.load %arg3[%c1_278, %c2_279, %c0_280, %c0_281] : memref<2x4x32x8xf32, #tpu.memory_space<vmem>>, vector<1x1x32x8xf32>
    %351 = vector.shape_cast %350 : vector<1x1x32x8xf32> to vector<32x8xf32>
    %cst_282 = arith.constant dense<0.000000e+00> : vector<16x8xf32>
    %352 = tpu.matmul %268, %351, %cst_282 {dimension_numbers = #tpu.dot_dimension_numbers<[1], [0], [0], [1], [0, 0, 1, 1], [], []>} : vector<16x32xf32>, vector<32x8xf32>, vector<16x8xf32> -> vector<16x8xf32>
    %c1_283 = arith.constant 1 : index
    %c2_284 = arith.constant 2 : index
    %c0_285 = arith.constant 0 : index
    %c0_286 = arith.constant 0 : index
    %353 = vector.load %arg4[%c1_283, %c2_284, %c0_285, %c0_286] : memref<2x4x1x8xf32, #tpu.memory_space<vmem>>, vector<1x1x1x8xf32>
    %354 = vector.shape_cast %353 : vector<1x1x1x8xf32> to vector<1x8xf32>
    %355 = vector.broadcast %354 : vector<1x8xf32> to vector<16x8xf32>
    %356 = arith.addf %352, %355 : vector<16x8xf32>
    %cst_287 = arith.constant 0.353553385 : f32
    %357 = vector.broadcast %cst_287 : f32 to vector<16x8xf32>
    %358 = arith.mulf %356, %357 : vector<16x8xf32>
    %c1_288 = arith.constant 1 : index
    %c2_289 = arith.constant 2 : index
    %c0_290 = arith.constant 0 : index
    %c0_291 = arith.constant 0 : index
    %359 = vector.load %arg5[%c1_288, %c2_289, %c0_290, %c0_291] : memref<2x4x32x8xf32, #tpu.memory_space<vmem>>, vector<1x1x32x8xf32>
    %360 = vector.shape_cast %359 : vector<1x1x32x8xf32> to vector<32x8xf32>
    %cst_292 = arith.constant dense<0.000000e+00> : vector<16x8xf32>
    %361 = tpu.matmul %268, %360, %cst_292 {dimension_numbers = #tpu.dot_dimension_numbers<[1], [0], [0], [1], [0, 0, 1, 1], [], []>} : vector<16x32xf32>, vector<32x8xf32>, vector<16x8xf32> -> vector<16x8xf32>
    %c1_293 = arith.constant 1 : index
    %c2_294 = arith.constant 2 : index
    %c0_295 = arith.constant 0 : index
    %c0_296 = arith.constant 0 : index
    %362 = vector.load %arg6[%c1_293, %c2_294, %c0_295, %c0_296] : memref<2x4x1x8xf32, #tpu.memory_space<vmem>>, vector<1x1x1x8xf32>
    %363 = vector.shape_cast %362 : vector<1x1x1x8xf32> to vector<1x8xf32>
    %364 = vector.broadcast %363 : vector<1x8xf32> to vector<16x8xf32>
    %365 = arith.addf %361, %364 : vector<16x8xf32>
    %c1_297 = arith.constant 1 : index
    %c2_298 = arith.constant 2 : index
    %c0_299 = arith.constant 0 : index
    %c0_300 = arith.constant 0 : index
    %366 = vector.load %arg7[%c1_297, %c2_298, %c0_299, %c0_300] : memref<2x4x32x8xf32, #tpu.memory_space<vmem>>, vector<1x1x32x8xf32>
    %367 = vector.shape_cast %366 : vector<1x1x32x8xf32> to vector<32x8xf32>
    %cst_301 = arith.constant dense<0.000000e+00> : vector<16x8xf32>
    %368 = tpu.matmul %268, %367, %cst_301 {dimension_numbers = #tpu.dot_dimension_numbers<[1], [0], [0], [1], [0, 0, 1, 1], [], []>} : vector<16x32xf32>, vector<32x8xf32>, vector<16x8xf32> -> vector<16x8xf32>
    %c1_302 = arith.constant 1 : index
    %c2_303 = arith.constant 2 : index
    %c0_304 = arith.constant 0 : index
    %c0_305 = arith.constant 0 : index
    %369 = vector.load %arg8[%c1_302, %c2_303, %c0_304, %c0_305] : memref<2x4x1x8xf32, #tpu.memory_space<vmem>>, vector<1x1x1x8xf32>
    %370 = vector.shape_cast %369 : vector<1x1x1x8xf32> to vector<1x8xf32>
    %371 = vector.broadcast %370 : vector<1x8xf32> to vector<16x8xf32>
    %372 = arith.addf %368, %371 : vector<16x8xf32>
    %cst_306 = arith.constant dense<0.000000e+00> : vector<16x16xf32>
    %373 = tpu.matmul %358, %365, %cst_306 {dimension_numbers = #tpu.dot_dimension_numbers<[1], [1], [0], [0], [0, 0, 1, 0], [], []>} : vector<16x8xf32>, vector<16x8xf32>, vector<16x16xf32> -> vector<16x16xf32>
    %374 = arith.addf %373, %37 : vector<16x16xf32>
    %cst_307 = arith.constant dense<0xFF800000> : vector<16xf32>
    %375 = vector.multi_reduction <maximumf>, %374, %cst_307 [1] : vector<16x16xf32> to vector<16xf32>
    %376 = vector.shape_cast %375 : vector<16xf32> to vector<16x1xf32>
    %377 = vector.broadcast %376 : vector<16x1xf32> to vector<16x16xf32>
    %378 = arith.subf %374, %377 : vector<16x16xf32>
    %379 = math.exp %378 : vector<16x16xf32>
    %cst_308 = arith.constant dense<0.000000e+00> : vector<16xf32>
    %380 = vector.multi_reduction <add>, %379, %cst_308 [1] : vector<16x16xf32> to vector<16xf32>
    %381 = vector.shape_cast %380 : vector<16xf32> to vector<16x1xf32>
    %382 = vector.broadcast %381 : vector<16x1xf32> to vector<16x16xf32>
    %383 = arith.divf %379, %382 : vector<16x16xf32>
    %cst_309 = arith.constant dense<0.000000e+00> : vector<16x8xf32>
    %384 = tpu.matmul %383, %372, %cst_309 {dimension_numbers = #tpu.dot_dimension_numbers<[1], [0], [0], [1], [0, 0, 1, 1], [], []>} : vector<16x16xf32>, vector<16x8xf32>, vector<16x8xf32> -> vector<16x8xf32>
    %c1_310 = arith.constant 1 : index
    %c2_311 = arith.constant 2 : index
    %c0_312 = arith.constant 0 : index
    %c0_313 = arith.constant 0 : index
    %385 = vector.load %arg9[%c1_310, %c2_311, %c0_312, %c0_313] : memref<2x4x8x32xf32, #tpu.memory_space<vmem>>, vector<1x1x8x32xf32>
    %386 = vector.shape_cast %385 : vector<1x1x8x32xf32> to vector<8x32xf32>
    %cst_314 = arith.constant dense<0.000000e+00> : vector<16x32xf32>
    %387 = tpu.matmul %384, %386, %cst_314 {dimension_numbers = #tpu.dot_dimension_numbers<[1], [0], [0], [1], [0, 0, 1, 1], [], []>} : vector<16x8xf32>, vector<8x32xf32>, vector<16x32xf32> -> vector<16x32xf32>
    %388 = arith.addf %349, %387 : vector<16x32xf32>
    %c1_315 = arith.constant 1 : index
    %c3_316 = arith.constant 3 : index
    %c0_317 = arith.constant 0 : index
    %c0_318 = arith.constant 0 : index
    %389 = vector.load %arg3[%c1_315, %c3_316, %c0_317, %c0_318] : memref<2x4x32x8xf32, #tpu.memory_space<vmem>>, vector<1x1x32x8xf32>
    %390 = vector.shape_cast %389 : vector<1x1x32x8xf32> to vector<32x8xf32>
    %cst_319 = arith.constant dense<0.000000e+00> : vector<16x8xf32>
    %391 = tpu.matmul %268, %390, %cst_319 {dimension_numbers = #tpu.dot_dimension_numbers<[1], [0], [0], [1], [0, 0, 1, 1], [], []>} : vector<16x32xf32>, vector<32x8xf32>, vector<16x8xf32> -> vector<16x8xf32>
    %c1_320 = arith.constant 1 : index
    %c3_321 = arith.constant 3 : index
    %c0_322 = arith.constant 0 : index
    %c0_323 = arith.constant 0 : index
    %392 = vector.load %arg4[%c1_320, %c3_321, %c0_322, %c0_323] : memref<2x4x1x8xf32, #tpu.memory_space<vmem>>, vector<1x1x1x8xf32>
    %393 = vector.shape_cast %392 : vector<1x1x1x8xf32> to vector<1x8xf32>
    %394 = vector.broadcast %393 : vector<1x8xf32> to vector<16x8xf32>
    %395 = arith.addf %391, %394 : vector<16x8xf32>
    %cst_324 = arith.constant 0.353553385 : f32
    %396 = vector.broadcast %cst_324 : f32 to vector<16x8xf32>
    %397 = arith.mulf %395, %396 : vector<16x8xf32>
    %c1_325 = arith.constant 1 : index
    %c3_326 = arith.constant 3 : index
    %c0_327 = arith.constant 0 : index
    %c0_328 = arith.constant 0 : index
    %398 = vector.load %arg5[%c1_325, %c3_326, %c0_327, %c0_328] : memref<2x4x32x8xf32, #tpu.memory_space<vmem>>, vector<1x1x32x8xf32>
    %399 = vector.shape_cast %398 : vector<1x1x32x8xf32> to vector<32x8xf32>
    %cst_329 = arith.constant dense<0.000000e+00> : vector<16x8xf32>
    %400 = tpu.matmul %268, %399, %cst_329 {dimension_numbers = #tpu.dot_dimension_numbers<[1], [0], [0], [1], [0, 0, 1, 1], [], []>} : vector<16x32xf32>, vector<32x8xf32>, vector<16x8xf32> -> vector<16x8xf32>
    %c1_330 = arith.constant 1 : index
    %c3_331 = arith.constant 3 : index
    %c0_332 = arith.constant 0 : index
    %c0_333 = arith.constant 0 : index
    %401 = vector.load %arg6[%c1_330, %c3_331, %c0_332, %c0_333] : memref<2x4x1x8xf32, #tpu.memory_space<vmem>>, vector<1x1x1x8xf32>
    %402 = vector.shape_cast %401 : vector<1x1x1x8xf32> to vector<1x8xf32>
    %403 = vector.broadcast %402 : vector<1x8xf32> to vector<16x8xf32>
    %404 = arith.addf %400, %403 : vector<16x8xf32>
    %c1_334 = arith.constant 1 : index
    %c3_335 = arith.constant 3 : index
    %c0_336 = arith.constant 0 : index
    %c0_337 = arith.constant 0 : index
    %405 = vector.load %arg7[%c1_334, %c3_335, %c0_336, %c0_337] : memref<2x4x32x8xf32, #tpu.memory_space<vmem>>, vector<1x1x32x8xf32>
    %406 = vector.shape_cast %405 : vector<1x1x32x8xf32> to vector<32x8xf32>
    %cst_338 = arith.constant dense<0.000000e+00> : vector<16x8xf32>
    %407 = tpu.matmul %268, %406, %cst_338 {dimension_numbers = #tpu.dot_dimension_numbers<[1], [0], [0], [1], [0, 0, 1, 1], [], []>} : vector<16x32xf32>, vector<32x8xf32>, vector<16x8xf32> -> vector<16x8xf32>
    %c1_339 = arith.constant 1 : index
    %c3_340 = arith.constant 3 : index
    %c0_341 = arith.constant 0 : index
    %c0_342 = arith.constant 0 : index
    %408 = vector.load %arg8[%c1_339, %c3_340, %c0_341, %c0_342] : memref<2x4x1x8xf32, #tpu.memory_space<vmem>>, vector<1x1x1x8xf32>
    %409 = vector.shape_cast %408 : vector<1x1x1x8xf32> to vector<1x8xf32>
    %410 = vector.broadcast %409 : vector<1x8xf32> to vector<16x8xf32>
    %411 = arith.addf %407, %410 : vector<16x8xf32>
    %cst_343 = arith.constant dense<0.000000e+00> : vector<16x16xf32>
    %412 = tpu.matmul %397, %404, %cst_343 {dimension_numbers = #tpu.dot_dimension_numbers<[1], [1], [0], [0], [0, 0, 1, 0], [], []>} : vector<16x8xf32>, vector<16x8xf32>, vector<16x16xf32> -> vector<16x16xf32>
    %413 = arith.addf %412, %37 : vector<16x16xf32>
    %cst_344 = arith.constant dense<0xFF800000> : vector<16xf32>
    %414 = vector.multi_reduction <maximumf>, %413, %cst_344 [1] : vector<16x16xf32> to vector<16xf32>
    %415 = vector.shape_cast %414 : vector<16xf32> to vector<16x1xf32>
    %416 = vector.broadcast %415 : vector<16x1xf32> to vector<16x16xf32>
    %417 = arith.subf %413, %416 : vector<16x16xf32>
    %418 = math.exp %417 : vector<16x16xf32>
    %cst_345 = arith.constant dense<0.000000e+00> : vector<16xf32>
    %419 = vector.multi_reduction <add>, %418, %cst_345 [1] : vector<16x16xf32> to vector<16xf32>
    %420 = vector.shape_cast %419 : vector<16xf32> to vector<16x1xf32>
    %421 = vector.broadcast %420 : vector<16x1xf32> to vector<16x16xf32>
    %422 = arith.divf %418, %421 : vector<16x16xf32>
    %cst_346 = arith.constant dense<0.000000e+00> : vector<16x8xf32>
    %423 = tpu.matmul %422, %411, %cst_346 {dimension_numbers = #tpu.dot_dimension_numbers<[1], [0], [0], [1], [0, 0, 1, 1], [], []>} : vector<16x16xf32>, vector<16x8xf32>, vector<16x8xf32> -> vector<16x8xf32>
    %c1_347 = arith.constant 1 : index
    %c3_348 = arith.constant 3 : index
    %c0_349 = arith.constant 0 : index
    %c0_350 = arith.constant 0 : index
    %424 = vector.load %arg9[%c1_347, %c3_348, %c0_349, %c0_350] : memref<2x4x8x32xf32, #tpu.memory_space<vmem>>, vector<1x1x8x32xf32>
    %425 = vector.shape_cast %424 : vector<1x1x8x32xf32> to vector<8x32xf32>
    %cst_351 = arith.constant dense<0.000000e+00> : vector<16x32xf32>
    %426 = tpu.matmul %423, %425, %cst_351 {dimension_numbers = #tpu.dot_dimension_numbers<[1], [0], [0], [1], [0, 0, 1, 1], [], []>} : vector<16x8xf32>, vector<8x32xf32>, vector<16x32xf32> -> vector<16x32xf32>
    %427 = arith.addf %388, %426 : vector<16x32xf32>
    %428 = arith.addf %268, %427 : vector<16x32xf32>
    %c1_352 = arith.constant 1 : index
    %c0_353 = arith.constant 0 : index
    %c0_354 = arith.constant 0 : index
    %429 = vector.load %arg11[%c1_352, %c0_353, %c0_354] : memref<2x1x32xf32, #tpu.memory_space<vmem>>, vector<1x1x32xf32>
    %430 = vector.shape_cast %429 : vector<1x1x32xf32> to vector<1x32xf32>
    %c1_355 = arith.constant 1 : index
    %c0_356 = arith.constant 0 : index
    %c0_357 = arith.constant 0 : index
    %431 = vector.load %arg12[%c1_355, %c0_356, %c0_357] : memref<2x1x32xf32, #tpu.memory_space<vmem>>, vector<1x1x32xf32>
    %432 = vector.shape_cast %431 : vector<1x1x32xf32> to vector<1x32xf32>
    %cst_358 = arith.constant dense<0.000000e+00> : vector<16xf32>
    %433 = vector.multi_reduction <add>, %428, %cst_358 [1] : vector<16x32xf32> to vector<16xf32>
    %434 = vector.shape_cast %433 : vector<16xf32> to vector<16x1xf32>
    %cst_359 = arith.constant 3.200000e+01 : f32
    %435 = vector.broadcast %cst_359 : f32 to vector<16x1xf32>
    %436 = arith.divf %434, %435 : vector<16x1xf32>
    %437 = vector.broadcast %436 : vector<16x1xf32> to vector<16x32xf32>
    %438 = arith.subf %428, %437 : vector<16x32xf32>
    %439 = arith.mulf %438, %438 : vector<16x32xf32>
    %cst_360 = arith.constant dense<0.000000e+00> : vector<16xf32>
    %440 = vector.multi_reduction <add>, %439, %cst_360 [1] : vector<16x32xf32> to vector<16xf32>
    %441 = vector.shape_cast %440 : vector<16xf32> to vector<16x1xf32>
    %cst_361 = arith.constant 3.200000e+01 : f32
    %442 = vector.broadcast %cst_361 : f32 to vector<16x1xf32>
    %443 = arith.divf %441, %442 : vector<16x1xf32>
    %cst_362 = arith.constant 9.99999974E-6 : f32
    %444 = vector.broadcast %cst_362 : f32 to vector<16x1xf32>
    %445 = arith.addf %443, %444 : vector<16x1xf32>
    %446 = math.rsqrt %445 : vector<16x1xf32>
    %447 = vector.broadcast %446 : vector<16x1xf32> to vector<16x32xf32>
    %448 = arith.mulf %438, %447 : vector<16x32xf32>
    %449 = vector.broadcast %430 : vector<1x32xf32> to vector<16x32xf32>
    %450 = arith.mulf %448, %449 : vector<16x32xf32>
    %451 = vector.broadcast %432 : vector<1x32xf32> to vector<16x32xf32>
    %452 = arith.addf %450, %451 : vector<16x32xf32>
    %c1_363 = arith.constant 1 : index
    %c0_364 = arith.constant 0 : index
    %c0_365 = arith.constant 0 : index
    %453 = vector.load %arg13[%c1_363, %c0_364, %c0_365] : memref<2x32x64xf32, #tpu.memory_space<vmem>>, vector<1x32x64xf32>
    %454 = vector.shape_cast %453 : vector<1x32x64xf32> to vector<32x64xf32>
    %cst_366 = arith.constant dense<0.000000e+00> : vector<16x64xf32>
    %455 = tpu.matmul %452, %454, %cst_366 {dimension_numbers = #tpu.dot_dimension_numbers<[1], [0], [0], [1], [0, 0, 1, 1], [], []>} : vector<16x32xf32>, vector<32x64xf32>, vector<16x64xf32> -> vector<16x64xf32>
    %c1_367 = arith.constant 1 : index
    %c0_368 = arith.constant 0 : index
    %c0_369 = arith.constant 0 : index
    %456 = vector.load %arg14[%c1_367, %c0_368, %c0_369] : memref<2x1x64xf32, #tpu.memory_space<vmem>>, vector<1x1x64xf32>
    %457 = vector.shape_cast %456 : vector<1x1x64xf32> to vector<1x64xf32>
    %458 = vector.broadcast %457 : vector<1x64xf32> to vector<16x64xf32>
    %459 = arith.addf %455, %458 : vector<16x64xf32>
    %cst_370 = arith.constant 0.000000e+00 : f32
    %460 = vector.broadcast %cst_370 : f32 to vector<16x64xf32>
    %461 = arith.maximumf %459, %460 : vector<16x64xf32>
    %c1_371 = arith.constant 1 : index
    %c0_372 = arith.constant 0 : index
    %c0_373 = arith.constant 0 : index
    %462 = vector.load %arg15[%c1_371, %c0_372, %c0_373] : memref<2x64x32xf32, #tpu.memory_space<vmem>>, vector<1x64x32xf32>
    %463 = vector.shape_cast %462 : vector<1x64x32xf32> to vector<64x32xf32>
    %cst_374 = arith.constant dense<0.000000e+00> : vector<16x32xf32>
    %464 = tpu.matmul %461, %463, %cst_374 {dimension_numbers = #tpu.dot_dimension_numbers<[1], [0], [0], [1], [0, 0, 1, 1], [], []>} : vector<16x64xf32>, vector<64x32xf32>, vector<16x32xf32> -> vector<16x32xf32>
    %c1_375 = arith.constant 1 : index
    %c0_376 = arith.constant 0 : index
    %c0_377 = arith.constant 0 : index
    %465 = vector.load %arg16[%c1_375, %c0_376, %c0_377] : memref<2x1x32xf32, #tpu.memory_space<vmem>>, vector<1x1x32xf32>
    %466 = vector.shape_cast %465 : vector<1x1x32xf32> to vector<1x32xf32>
    %467 = vector.broadcast %466 : vector<1x32xf32> to vector<16x32xf32>
    %468 = arith.addf %464, %467 : vector<16x32xf32>
    %469 = arith.addf %452, %468 : vector<16x32xf32>
    %c1_378 = arith.constant 1 : index
    %c0_379 = arith.constant 0 : index
    %c0_380 = arith.constant 0 : index
    %470 = vector.load %arg17[%c1_378, %c0_379, %c0_380] : memref<2x1x32xf32, #tpu.memory_space<vmem>>, vector<1x1x32xf32>
    %471 = vector.shape_cast %470 : vector<1x1x32xf32> to vector<1x32xf32>
    %c1_381 = arith.constant 1 : index
    %c0_382 = arith.constant 0 : index
    %c0_383 = arith.constant 0 : index
    %472 = vector.load %arg18[%c1_381, %c0_382, %c0_383] : memref<2x1x32xf32, #tpu.memory_space<vmem>>, vector<1x1x32xf32>
    %473 = vector.shape_cast %472 : vector<1x1x32xf32> to vector<1x32xf32>
    %cst_384 = arith.constant dense<0.000000e+00> : vector<16xf32>
    %474 = vector.multi_reduction <add>, %469, %cst_384 [1] : vector<16x32xf32> to vector<16xf32>
    %475 = vector.shape_cast %474 : vector<16xf32> to vector<16x1xf32>
    %cst_385 = arith.constant 3.200000e+01 : f32
    %476 = vector.broadcast %cst_385 : f32 to vector<16x1xf32>
    %477 = arith.divf %475, %476 : vector<16x1xf32>
    %478 = vector.broadcast %477 : vector<16x1xf32> to vector<16x32xf32>
    %479 = arith.subf %469, %478 : vector<16x32xf32>
    %480 = arith.mulf %479, %479 : vector<16x32xf32>
    %cst_386 = arith.constant dense<0.000000e+00> : vector<16xf32>
    %481 = vector.multi_reduction <add>, %480, %cst_386 [1] : vector<16x32xf32> to vector<16xf32>
    %482 = vector.shape_cast %481 : vector<16xf32> to vector<16x1xf32>
    %cst_387 = arith.constant 3.200000e+01 : f32
    %483 = vector.broadcast %cst_387 : f32 to vector<16x1xf32>
    %484 = arith.divf %482, %483 : vector<16x1xf32>
    %cst_388 = arith.constant 9.99999974E-6 : f32
    %485 = vector.broadcast %cst_388 : f32 to vector<16x1xf32>
    %486 = arith.addf %484, %485 : vector<16x1xf32>
    %487 = math.rsqrt %486 : vector<16x1xf32>
    %488 = vector.broadcast %487 : vector<16x1xf32> to vector<16x32xf32>
    %489 = arith.mulf %479, %488 : vector<16x32xf32>
    %490 = vector.broadcast %471 : vector<1x32xf32> to vector<16x32xf32>
    %491 = arith.mulf %489, %490 : vector<16x32xf32>
    %492 = vector.broadcast %473 : vector<1x32xf32> to vector<16x32xf32>
    %493 = arith.addf %491, %492 : vector<16x32xf32>
    %c0_389 = arith.constant 0 : index
    %c0_390 = arith.constant 0 : index
    %494 = vector.load %arg23[%c0_389, %c0_390] : memref<16x32xf32, #tpu.memory_space<vmem>>, vector<16x32xf32>
    tpu.vector_store %arg23[%c0_389, %c0_390], %493 {strides = array<i32>} : memref<16x32xf32, #tpu.memory_space<vmem>>, vector<16x32xf32>,
    %c0_391 = arith.constant 0 : index
    %c0_392 = arith.constant 0 : index
    %495 = vector.load %arg19[%c0_391, %c0_392] : memref<32x8xf32, #tpu.memory_space<vmem>>, vector<32x8xf32>
    %cst_393 = arith.constant dense<0.000000e+00> : vector<16x8xf32>
    %496 = tpu.matmul %493, %495, %cst_393 {dimension_numbers = #tpu.dot_dimension_numbers<[1], [0], [0], [1], [0, 0, 1, 1], [], []>} : vector<16x32xf32>, vector<32x8xf32>, vector<16x8xf32> -> vector<16x8xf32>
    %c0_394 = arith.constant 0 : index
    %c0_395 = arith.constant 0 : index
    %497 = vector.load %arg20[%c0_394, %c0_395] : memref<1x8xf32, #tpu.memory_space<vmem>>, vector<1x8xf32>
    %498 = vector.broadcast %497 : vector<1x8xf32> to vector<16x8xf32>
    %499 = arith.addf %496, %498 : vector<16x8xf32>
    %c0_396 = arith.constant 0 : index
    %c0_397 = arith.constant 0 : index
    %500 = vector.load %arg24[%c0_396, %c0_397] : memref<16x8xf32, #tpu.memory_space<vmem>>, vector<16x8xf32>
    tpu.vector_store %arg24[%c0_396, %c0_397], %499 {strides = array<i32>} : memref<16x8xf32, #tpu.memory_space<vmem>>, vector<16x8xf32>,
    %c0_398 = arith.constant 0 : index
    %c0_399 = arith.constant 0 : index
    %501 = vector.load %arg21[%c0_398, %c0_399] : memref<32x8xf32, #tpu.memory_space<vmem>>, vector<32x8xf32>
    %cst_400 = arith.constant dense<0.000000e+00> : vector<16x8xf32>
    %502 = tpu.matmul %493, %501, %cst_400 {dimension_numbers = #tpu.dot_dimension_numbers<[1], [0], [0], [1], [0, 0, 1, 1], [], []>} : vector<16x32xf32>, vector<32x8xf32>, vector<16x8xf32> -> vector<16x8xf32>
    %c0_401 = arith.constant 0 : index
    %c0_402 = arith.constant 0 : index
    %503 = vector.load %arg22[%c0_401, %c0_402] : memref<1x8xf32, #tpu.memory_space<vmem>>, vector<1x8xf32>
    %504 = vector.broadcast %503 : vector<1x8xf32> to vector<16x8xf32>
    %505 = arith.addf %502, %504 : vector<16x8xf32>
    %c0_403 = arith.constant 0 : index
    %c0_404 = arith.constant 0 : index
    %506 = vector.load %arg25[%c0_403, %c0_404] : memref<16x8xf32, #tpu.memory_space<vmem>>, vector<16x8xf32>
    tpu.vector_store %arg25[%c0_403, %c0_404], %505 {strides = array<i32>} : memref<16x8xf32, #tpu.memory_space<vmem>>, vector<16x8xf32>,
    %cst_405 = arith.constant 5.000000e-01 : f32
    %507 = vector.broadcast %cst_405 : f32 to vector<16x8xf32>
    %508 = arith.mulf %507, %505 : vector<16x8xf32>
    %509 = math.exp %508 : vector<16x8xf32>
    %c0_406 = arith.constant 0 : index
    %c0_407 = arith.constant 0 : index
    %510 = vector.load %arg26[%c0_406, %c0_407] : memref<16x8xf32, #tpu.memory_space<vmem>>, vector<16x8xf32>
    tpu.vector_store %arg26[%c0_406, %c0_407], %509 {strides = array<i32>} : memref<16x8xf32, #tpu.memory_space<vmem>>, vector<16x8xf32>,
    return
  }
}

</mosaic_0001>

<bundles_post_ra>
// kernel: encoder_t_forward.1
= control target key start
LH: loop header
LB: loop body
LE: loop exit
PB: predicated region body
PF: predicated region fallthrough
CT: control target
= control target key end

     0   :  { %s7672_s0 = inlined_call_operand.vmem [shape: f32[16,16], index: 0, kind: input, shape index: {}]   ;;  %s7673_s1 = inlined_call_operand.vmem [shape: f32[16,32], index: 1, kind: input, shape index: {}]   ;;  %s7674_s2 = inlined_call_operand.vmem [shape: f32[1,32], index: 2, kind: input, shape index: {}]   ;;  %s7675_s3 = inlined_call_operand.vmem [shape: f32[2,4,32,8], index: 3, kind: input, shape index: {}]   ;;  %s7676_s4 = inlined_call_operand.vmem [shape: f32[2,4,1,8], index: 4, kind: input, shape index: {}]   ;;  %s7677_s5 = inlined_call_operand.vmem [shape: f32[2,4,32,8], index: 5, kind: input, shape index: {}]   ;;  %s7678_s6 = inlined_call_operand.vmem [shape: f32[2,4,1,8], index: 6, kind: input, shape index: {}]   ;;  %s7679_s7 = inlined_call_operand.vmem [shape: f32[2,4,32,8], index: 7, kind: input, shape index: {}]   ;;  %s7680_s8 = inlined_call_operand.vmem [shape: f32[2,4,1,8], index: 8, kind: input, shape index: {}]   ;;  %s7681_s9 = inlined_call_operand.vmem [shape: f32[2,4,8,32], index: 9, kind: input, shape index: {}]   ;;  %s7682_s10 = inlined_call_operand.vmem [shape: f32[2,1,32], index: 10, kind: input, shape index: {}]   ;;  %s7683_s11 = inlined_call_operand.vmem [shape: f32[2,1,32], index: 11, kind: input, shape index: {}]   ;;  %s7684_s12 = inlined_call_operand.vmem [shape: f32[2,1,32], index: 12, kind: input, shape index: {}]   ;;  %s7685_s13 = inlined_call_operand.vmem [shape: f32[2,32,64], index: 13, kind: input, shape index: {}]   ;;  %s7686_s14 = inlined_call_operand.vmem [shape: f32[2,1,64], index: 14, kind: input, shape index: {}]   ;;  %s7687_s15 = inlined_call_operand.vmem [shape: f32[2,64,32], index: 15, kind: input, shape index: {}]   ;;  %s7688_s16 = inlined_call_operand.vmem [shape: f32[2,1,32], index: 16, kind: input, shape index: {}]   ;;  %s7689_s17 = inlined_call_operand.vmem [shape: f32[2,1,32], index: 17, kind: input, shape index: {}]   ;;  %s7690_s18 = inlined_call_operand.vmem [shape: f32[2,1,32], index: 18, kind: input, shape index: {}]   ;;  %s7691_s19 = inlined_call_operand.vmem [shape: f32[32,8], index: 19, kind: input, shape index: {}]   ;;  %s7692_s20 = inlined_call_operand.vmem [shape: f32[1,8], index: 20, kind: input, shape index: {}]   ;;  %s7693_s21 = inlined_call_operand.vmem [shape: f32[32,8], index: 21, kind: input, shape index: {}]   ;;  %s7694_s22 = inlined_call_operand.vmem [shape: f32[1,8], index: 22, kind: input, shape index: {}]   ;;  %s7695_s23 = inlined_call_operand.hbm [shape: f32[16,32], index: 23, kind: output, shape index: {0}]   ;;  %s7696_s24 = inlined_call_operand.hbm [shape: f32[16,8], index: 24, kind: output, shape index: {1}]   ;;  %s7697_s25 = inlined_call_operand.hbm [shape: f32[16,8], index: 25, kind: output, shape index: {2}]   ;;  %s7698_s26 = inlined_call_operand.hbm [shape: f32[16,8], index: 26, kind: output, shape index: {3}]  }
   0x1   :  { %7709 = sst [smem:[#allocation12_spill]] %s7672_s0 }
   0x2   :  { %7710 = sst [smem:[#allocation13_spill]] %s7673_s1 }
   0x3   :  { %7711 = sst [smem:[#allocation14_spill]] %s7674_s2 }
   0x4   :  { %7712 = sst [smem:[#allocation15_spill]] %s7675_s3 }
   0x5   :  { %7713 = sst [smem:[#allocation16_spill]] %s7676_s4 }
   0x6   :  { %7714 = sst [smem:[#allocation17_spill]] %s7677_s5 }
   0x7   :  { %7715 = sst [smem:[#allocation18_spill]] %s7678_s6 }
   0x8   :  { %7716 = sst [smem:[#allocation19_spill]] %s7679_s7 }
   0x9   :  { %7717 = sst [smem:[#allocation20_spill]] %s7680_s8 }
   0xa   :  { %7718 = sst [smem:[#allocation21_spill]] %s7681_s9 }
   0xb   :  { %7719 = sst [smem:[#allocation22_spill]] %s7682_s10 }
   0xc   :  { %7720 = sst [smem:[#allocation23_spill]] %s7698_s26 }
   0xd   :  { %32 = vsyncpa [#allocation3], 0 }
   0xe   :  { %33 = vsyncpa [#allocation5], 0  ;;  %s7721_s7 = sld [smem:[#allocation13_spill]]  ;;  %vm137_vm0 = vcmask 130048  }
   0xf   :  { %s7722_s0 = sld [smem:[#allocation12_spill]] }
  0x10   :  { %s7723_s10 = sld [smem:[#allocation15_spill]] }
  0x11   :  { %s7724_s27 = sld [smem:[#allocation17_spill]] }
  0x14   :  { %v129_v0 = vld [vmem:[%s7721_s7 + $0x8] sm:$0xff]  ;;  %v128_v1 = vld [vmem:[%s7721_s7] sm:$0xff] }
  0x15   :  { %v126_v2 = vld [vmem:[%s7722_s0] sm:$0xff]  ;;  %5976 = vmatprep.subr.mxu0 %v129_v0  ;;  %v127_v3 = vld [vmem:[%s7722_s0 + $0x8] sm:$0xff] }
  0x16   :  { %5980 = vmatprep.mubr.msk.f32.mxu0 %vm137_vm0, %v126_v2  ;;  %v223_v4 = vld [vmem:[%s7723_s10 + $0x18] sm:$0xff]  ;;  %5977 = vmatpush3.msra.mxu0 %v129_v0  ;;  %v222_v6 = vld [vmem:[%s7723_s10 + $0x10] sm:$0xff] }
  0x17   :  { %5983 = vmatprep.subr.mxu1 %v223_v4  ;;  %v318_v5 = vld [vmem:[%s7724_s27 + $0x18] sm:$0xff] }
  0x18   :  { %34 = vsyncpa [#allocation8], 0  ;;  %5978 = vmatprep.subr.mxu0 %v128_v1  ;;  %5984 = vmatpush3.msra.mxu1 %v223_v4  ;;  %v317_v7 = vld [vmem:[%s7724_s27 + $0x10] sm:$0xff]  ;;  %v221_v8 = vld [vmem:[%s7723_s10 + $0x8] sm:$0xff]  ;;  %s7725_s7 = sld [smem:[#allocation19_spill]]  ;;  %vm231_vm1 = vcmask 261120   ;;  %v81_v38 = vlaneseq }
  0x19   :  { %5979 = vmatpush3.msra.mxu0 %v128_v1  ;;  %5985 = vmatprep.subr.mxu1 %v222_v6  ;;  %v316_v9 = vld [vmem:[%s7724_s27 + $0x8] sm:$0xff]  ;;  %v220_v10 = vld [vmem:[%s7723_s10] sm:$0xff]  ;;  %s7726_s4 = sld [smem:[#allocation14_spill]]  ;;  %vm487_vm2 = vcmask 64512   ;;  %v6658_v46 = vmov -1e+30  }
  0x1a   :  { %5981 = vmatmul.mubr.msk.f32.vlgmr.msra.gmra.mxu0 %vm137_vm0, %v127_v3  ;;  %5994 = vmatprep.subr.mxu0 %v318_v5  ;;  %v315_v11 = vld [vmem:[%s7724_s27] sm:$0xff]  ;;  %s7727_s3 = sld [smem:[#allocation18_spill]]  ;;  %v82_v39 = vshrl.u32 %v81_v38, 7  ;;  %v109_v41 = vand.u32 127, %v81_v38  ;;  %v5422_v0 = vld [vmem:[%s7723_s10 + $0x38] sm:$0xff]  ;;  %vm2547_vm5 = vcmask 523264  }
  0x1b   :  { %5995 = vmatpush3.msra.mxu0 %v318_v5  ;;  %5986 = vmatpush3.msra.mxu1 %v222_v6  ;;  %s7729_s9 = sld [smem:[#allocation20_spill]]  ;;  %s6659_s26 = smov [#allocation2]  }
  0x1c   :  { %5996 = vmatprep.subr.mxu0 %v317_v7  ;;  %5987 = vmatprep.subr.mxu1 %v221_v8  ;;  %v83_v40 = vadd.s32 8, %v82_v39  ;;  %v88_v42 = vand.u32 1, %v82_v39  ;;  %v114_v44 = vand.u32 1, %v109_v41  ;;  %s7730_s1 = sld [smem:[#allocation21_spill]]  ;;  %s5340_s29 = sshll.u32 %s6659_s26, 4  ;;  %s5341_s29 = int_to_ptr.vmem [resolvable:$true] %s5340_s29 }
  0x1d   :  { %5997 = vmatpush3.msra.mxu0 %v317_v7  ;;  %5988 = vmatpush3.msra.mxu1 %v221_v8  ;;  %v5421_v8 = vld [vmem:[%s7723_s10 + $0x30] sm:$0xff]  ;;  %s7731_s30 = sld [smem:[#allocation22_spill]]  ;;  %s6572_s0 = scalar_lea.vmem %s5341_s29, 256 }
  0x1e   :  { %5998 = vmatprep.subr.mxu0 %v316_v9  ;;  %5989 = vmatprep.subr.mxu1 %v220_v10  ;;  %v404_v12 = vld [vmem:[%s7725_s7 + $0x18] sm:$0xff]  ;;  %v403_v18 = vld [vmem:[%s7725_s7 + $0x10] sm:$0xff]  ;;  %v402_v19 = vld [vmem:[%s7725_s7 + $0x8] sm:$0xff]  ;;  %v95_v43 = vand.u32 1, %v83_v40  ;;  %vm122_vm3 = vcmp.eq.s32.totalorder %v88_v42, %v114_v44  ;;  %p6573_p0 = scmp.ne.s32.totalorder %s5341_s29, %s6572_s0  ;;  %p6577_p1 = scmp.lt.s32.totalorder %s5341_s29, %s5341_s29 }
  0x1f   :  { %5999 = vmatpush3.msra.mxu0 %v316_v9  ;;  %5990 = vmatpush3.msra.mxu1 %v220_v10  ;;  %v5398_v14 = vld [vmem:[%s7726_s4] ss:$0 sm:$0xff]  ;;  %s7728_s4 = sld [smem:[#allocation16_spill]]  ;;  %v6884_v47 = vsel %vm122_vm3, 0.0, %v6658_v46  ;;  %v5420_v9 = vld [vmem:[%s7723_s10 + $0x28] sm:$0xff]  ;;  %p6578_p2 = scmp.lt.s32.totalorder %s6572_s0, %s6572_s0 }
  0x20   :  { %6000 = vmatprep.subr.mxu0 %v315_v11  ;;  %6005 = vmatprep.subr.mxu1 %v404_v12  ;;  %v401_v20 = vld [vmem:[%s7725_s7] sm:$0xff]  ;;  %vm123_vm4 = vcmp.eq.s32.totalorder %v95_v43, %v114_v44 }
  0x21   :  { %6001 = vmatpush3.msra.mxu0 %v315_v11  ;;  %v5404_v21 = vld [vmem:[%s7727_s3] ss:$0 sm:$0xff]  ;;  %v6886_v48 = vsel %vm123_vm4, 0.0, %v6658_v46  ;;  %v5438_v11 = vld [vmem:[%s7725_s7 + $0x38] sm:$0xff]  ;;  %p6579_p3 = por %p6578_p2, %p6577_p1 }
  0x22   :  { %v5407_v32 = vld [vmem:[%s7729_s9] ss:$0 sm:$0xff] }
  0x23   :  { %v678_v1 = vld [vmem:[%s7730_s1] sm:$0xff]  ;;  %p6580_p4 = pnand %p6579_p3, %p6573_p0 }
  0x24   :  { %v5419_v10 = vld [vmem:[%s7723_s10 + $0x20] sm:$0xff] }
  0x25   :  { %v5401_v25 = vld [vmem:[%s7728_s4] ss:$0 sm:$0xff] }
  0xda   :  { %v5982_v13 = vpop.f32.mrf.mxu0 }
  0xdb   :  { %v6846_v17 = vadd.f32 %v5982_v13, %v5398_v14  ;;  %v5436_v13 = vld [vmem:[%s7725_s7 + $0x28] sm:$0xff] }
  0xdc   :  { %v210_v15 = vpop.f32.mrf.mxu0 }
  0xdd   :  { %v6844_v16 = vadd.f32 %v5398_v14, %v210_v15  ;;  %v5435_v14 = vld [vmem:[%s7725_s7 + $0x20] sm:$0xff]  ;;  %v5430_v15 = vld [vmem:[%s7724_s27 + $0x38] sm:$0xff] }
  0xdf   :  { %5991 = vmatprep.mubr.msk.f32.mxu1 %vm231_vm1, %v6844_v16  ;;  %6002 = vmatprep.mubr.msk.f32.mxu0 %vm231_vm1, %v6844_v16 }
  0xe0   :  { %5992 = vmatmul.mubr.msk.f32.vlgmr.msra.gmra.mxu1 %vm231_vm1, %v6846_v17  ;;  %6003 = vmatmul.mubr.msk.f32.vlgmr.msra.gmra.mxu0 %vm231_vm1, %v6846_v17 }
  0xe1   :  { %6006 = vmatpush3.msra.mxu1 %v404_v12  ;;  %6013 = vmatprep.mubr.msk.f32.mxu1 %vm231_vm1, %v6844_v16  ;;  %v5437_v12 = vld [vmem:[%s7725_s7 + $0x30] sm:$0xff] }
  0xe2   :  { %6007 = vmatprep.subr.mxu1 %v403_v18 }
  0xe3   :  { %6008 = vmatpush3.msra.mxu1 %v403_v18 }
  0xe4   :  { %6009 = vmatprep.subr.mxu1 %v402_v19 }
  0xe5   :  { %6010 = vmatpush3.msra.mxu1 %v402_v19 }
  0xe6   :  { %6011 = vmatprep.subr.mxu1 %v401_v20 }
  0xe7   :  { %6012 = vmatpush3.msra.mxu1 %v401_v20  ;;  %v5429_v20 = vld [vmem:[%s7724_s27 + $0x30] sm:$0xff] }
  0xe8   :  { %6014 = vmatmul.mubr.msk.f32.vlgmr.msra.gmra.mxu1 %vm231_vm1, %v6846_v17 }
 0x1a0   :  { %v5993_v22 = vpop.f32.mrf.mxu1  ;;  %v6004_v23 = vpop.f32.mrf.mxu0 }
 0x1a1   :  { %v398_v24 = vadd.f32 %v6004_v23, %v5404_v21  ;;  %v310_v30 = vadd.f32 %v5993_v22, %v5401_v25  ;;  %v5424_v22 = vld [vmem:[%s7728_s4 + $0x1] ss:$0 sm:$0xff] }
 0x1a2   :  { %v304_v26 = vpop.f32.mrf.mxu1  ;;  %v392_v27 = vpop.f32.mrf.mxu0  ;;  %v5427_v23 = vld [vmem:[%s7724_s27 + $0x20] sm:$0xff] }
 0x1a3   :  { %v305_v28 = vadd.f32 %v5401_v25, %v304_v26  ;;  %v393_v29 = vadd.f32 %v5404_v21, %v392_v27  ;;  %6016 = vmatprep.subr.msk.mxu0 %vm487_vm2, %v398_v24  ;;  %v314_v34 = vmul.f32 0.35355338, %v310_v30  ;;  %v5428_v21 = vld [vmem:[%s7724_s27 + $0x28] sm:$0xff] }
 0x1a4   :  { %6017 = vmatpush3.xpose.msk.msra.mxu0 %vm487_vm2, %v398_v24 }
 0x1a5   :  { %v313_v31 = vmul.f32 0.35355338, %v305_v28  ;;  %6018 = vmatprep.subr.msk.mxu0 %vm487_vm2, %v393_v29 }
 0x1a7   :  { %6020 = vmatprep.mubr.msk.f32.mxu0 %vm487_vm2, %v313_v31 }
 0x1a8   :  { %v6015_v33 = vpop.f32.mrf.mxu1  ;;  %6019 = vmatpush3.xpose.msk.msra.mxu0 %vm487_vm2, %v393_v29  ;;  %v5440_v29 = vld [vmem:[%s7729_s9 + $0x1] ss:$0 sm:$0xff] }
 0x1a9   :  { %v484_v35 = vadd.f32 %v6015_v33, %v5407_v32  ;;  %6030 = vmatprep.subr.mxu0 %v678_v1 }
 0x1aa   :  { %v478_v36 = vpop.f32.mrf.mxu1 }
 0x1ab   :  { %v479_v37 = vadd.f32 %v5407_v32, %v478_v36  ;;  %6023 = vmatprep.subr.mxu1 %v484_v35  ;;  %6021 = vmatmul.mubr.msk.f32.vlgmr.msra.gmra.mxu0 %vm487_vm2, %v314_v34  ;;  %v5432_v36 = vld [vmem:[%s7727_s3 + $0x1] ss:$0 sm:$0xff] }
 0x1ac   :  { %6024 = vmatpush3.msra.mxu1 %v484_v35  ;;  %6031 = vmatpush3.msra.mxu0 %v678_v1 }
 0x1ad   :  { %6025 = vmatprep.subr.mxu1 %v479_v37  ;;  %6046 = vmatprep.subr.mxu0 %v5430_v15 }
 0x1ae   :  { %6026 = vmatpush3.msra.mxu1 %v479_v37 }
 0x1af   :  { %6035 = vmatprep.subr.mxu1 %v5422_v0 }
 0x26b   :  { %v6022_v45 = vpop.f32.mrf.mxu0 }
 0x26c   :  { %v572_v51 = vadd.f32 %v6022_v45, %v6886_v48 }
 0x26d   :  { %v566_v49 = vpop.f32.mrf.mxu0 }
 0x26e   :  { %v567_v50 = vadd.f32 %v566_v49, %v6884_v47  ;;  %v578_v53 = vsel %vm137_vm0, %v572_v51, -inf }
 0x270   :  { %v575_v52 = vsel %vm137_vm0, %v567_v50, -inf }
 0x271   :  { %576 = vmax.xlane.f32.xlu0 %v575_v52 }
 0x275   :  { %579 = vmax.xlane.f32.xlu0 %v578_v53 }
 0x2fa   :  { %v577_v54 = vpop.xlane.xlu0 %576 }
 0x2fb   :  { %v581_v55 = vsub.f32 %v567_v50, %v577_v54 }
 0x2fd   :  { %v583_v56 = vmul.f32 1.442695, %v581_v55 }
 0x2fe   :  { %v580_v57 = vpop.xlane.xlu0 %579 }
 0x2ff   :  { %6488 = vpow2.f32 %v583_v56  ;;  %v582_v58 = vsub.f32 %v572_v51, %v580_v57 }
 0x301   :  { %v585_v59 = vmul.f32 1.442695, %v582_v58 }
 0x303   :  { %6490 = vpow2.f32 %v585_v59 }
 0x30c   :  { %v6489_v60 = vpop.eup %6488 }
 0x30d   :  { %v587_v61 = vsel %vm137_vm0, %v6489_v60, 0.0 }
 0x30e   :  { %588 = vadd.xlane.f32.xlu1 %v587_v61  ;;  %v5449_v61 = vld [vmem:[%s7730_s1 + $0x8] sm:$0xff] }
 0x310   :  { %v6491_v62 = vpop.eup %6490 }
 0x311   :  { %v590_v63 = vsel %vm137_vm0, %v6491_v62, 0.0 }
 0x312   :  { %591 = vadd.xlane.f32.xlu1 %v590_v63 }
 0x397   :  { %v589_v2 = vpop.xlane.xlu1 %588 }
 0x398   :  { %6492 = vrcp.f32 %v589_v2 }
 0x39b   :  { %v592_v3 = vpop.xlane.xlu1 %591 }
 0x39c   :  { %6494 = vrcp.f32 %v592_v3 }
 0x3a5   :  { %v6493_v4 = vpop.eup %6492 }
 0x3a6   :  { %v594_v5 = vmul.f32 %v6493_v4, %v6489_v60  ;;  %v5455_v60 = vld [vmem:[%s7723_s10 + $0x58] sm:$0xff]  ;;  %v5454_v4 = vld [vmem:[%s7723_s10 + $0x50] sm:$0xff] }
 0x3a8   :  { %6027 = vmatprep.mubr.msk.f32.mxu1 %vm137_vm0, %v594_v5  ;;  %v5453_v5 = vld [vmem:[%s7723_s10 + $0x48] sm:$0xff] }
 0x3a9   :  { %v6495_v6 = vpop.eup %6494 }
 0x3aa   :  { %v596_v7 = vmul.f32 %v6495_v6, %v6491_v62  ;;  %v5452_v6 = vld [vmem:[%s7723_s10 + $0x40] sm:$0xff] }
 0x3ac   :  { %6028 = vmatmul.mubr.msk.f32.vlgmr.msra.gmra.mxu1 %vm137_vm0, %v596_v7  ;;  %v5471_v7 = vld [vmem:[%s7725_s7 + $0x58] sm:$0xff] }
 0x3ad   :  { %6036 = vmatpush3.msra.mxu1 %v5422_v0  ;;  %6043 = vmatprep.mubr.msk.f32.mxu1 %vm231_vm1, %v6844_v16 }
 0x3ae   :  { %6037 = vmatprep.subr.mxu1 %v5421_v8 }
 0x3af   :  { %6038 = vmatpush3.msra.mxu1 %v5421_v8  ;;  %v5470_v8 = vld [vmem:[%s7725_s7 + $0x50] sm:$0xff] }
 0x3b0   :  { %6039 = vmatprep.subr.mxu1 %v5420_v9 }
 0x3b1   :  { %6040 = vmatpush3.msra.mxu1 %v5420_v9  ;;  %v5469_v9 = vld [vmem:[%s7725_s7 + $0x48] sm:$0xff] }
 0x3b2   :  { %6041 = vmatprep.subr.mxu1 %v5419_v10 }
 0x3b3   :  { %6042 = vmatpush3.msra.mxu1 %v5419_v10  ;;  %v5468_v10 = vld [vmem:[%s7725_s7 + $0x40] sm:$0xff] }
 0x3b4   :  { %6044 = vmatmul.mubr.msk.f32.vlgmr.msra.gmra.mxu1 %vm231_vm1, %v6846_v17  ;;  %6057 = vmatprep.subr.mxu1 %v5438_v11 }
 0x3b5   :  { %6058 = vmatpush3.msra.mxu1 %v5438_v11  ;;  %6065 = vmatprep.mubr.msk.f32.mxu1 %vm231_vm1, %v6844_v16  ;;  %v5463_v11 = vld [vmem:[%s7724_s27 + $0x58] sm:$0xff] }
 0x3b6   :  { %6059 = vmatprep.subr.mxu1 %v5437_v12 }
 0x3b7   :  { %6060 = vmatpush3.msra.mxu1 %v5437_v12 }
 0x3b8   :  { %6061 = vmatprep.subr.mxu1 %v5436_v13 }
 0x3b9   :  { %6062 = vmatpush3.msra.mxu1 %v5436_v13 }
 0x3ba   :  { %6063 = vmatprep.subr.mxu1 %v5435_v14 }
 0x3bb   :  { %6064 = vmatpush3.msra.mxu1 %v5435_v14  ;;  %v5462_v14 = vld [vmem:[%s7724_s27 + $0x50] sm:$0xff] }
 0x3bc   :  { %6066 = vmatmul.mubr.msk.f32.vlgmr.msra.gmra.mxu1 %vm231_vm1, %v6846_v17 }
 0x46c   :  { %v6029_v18 = vpop.f32.mrf.mxu1 }
 0x46e   :  { %v669_v19 = vpop.f32.mrf.mxu1 }
 0x46f   :  { %6032 = vmatprep.mubr.msk.f32.mxu0 %vm487_vm2, %v669_v19  ;;  %v5460_v19 = vld [vmem:[%s7724_s27 + $0x40] sm:$0xff] }
 0x470   :  { %6033 = vmatmul.mubr.msk.f32.vlgmr.msra.gmra.mxu0 %vm487_vm2, %v6029_v18  ;;  %v5457_v18 = vld [vmem:[%s7728_s4 + $0x2] ss:$0 sm:$0xff] }
 0x471   :  { %6047 = vmatpush3.msra.mxu0 %v5430_v15  ;;  %6054 = vmatprep.mubr.msk.f32.mxu0 %vm231_vm1, %v6844_v16  ;;  %v5461_v15 = vld [vmem:[%s7724_s27 + $0x48] sm:$0xff] }
 0x472   :  { %6048 = vmatprep.subr.mxu0 %v5429_v20 }
 0x473   :  { %6049 = vmatpush3.msra.mxu0 %v5429_v20 }
 0x474   :  { %v6045_v24 = vpop.f32.mrf.mxu1  ;;  %6050 = vmatprep.subr.mxu0 %v5428_v21 }
 0x475   :  { %v853_v25 = vadd.f32 %v6045_v24, %v5424_v22  ;;  %6051 = vmatpush3.msra.mxu0 %v5428_v21 }
 0x476   :  { %v847_v26 = vpop.f32.mrf.mxu1  ;;  %6052 = vmatprep.subr.mxu0 %v5427_v23 }
 0x477   :  { %v848_v27 = vadd.f32 %v5424_v22, %v847_v26  ;;  %6053 = vmatpush3.msra.mxu0 %v5427_v23  ;;  %v857_v41 = vmul.f32 0.35355338, %v853_v25  ;;  %v5473_v25 = vld [vmem:[%s7729_s9 + $0x2] ss:$0 sm:$0xff] }
 0x478   :  { %6055 = vmatmul.mubr.msk.f32.vlgmr.msra.gmra.mxu0 %vm231_vm1, %v6846_v17 }
 0x479   :  { %v856_v28 = vmul.f32 0.35355338, %v848_v27 }
 0x47b   :  { %6072 = vmatprep.mubr.msk.f32.mxu0 %vm487_vm2, %v856_v28 }
 0x47c   :  { %v6067_v30 = vpop.f32.mrf.mxu1 }
 0x47d   :  { %v1031_v31 = vadd.f32 %v6067_v30, %v5440_v29  ;;  %v5418_v30 = vld [vmem:[%s7731_s30] ss:$0 sm:$0xff] }
 0x47e   :  { %v1025_v32 = vpop.f32.mrf.mxu1 }
 0x47f   :  { %v1026_v33 = vadd.f32 %v5440_v29, %v1025_v32  ;;  %6075 = vmatprep.subr.mxu1 %v1031_v31 }
 0x480   :  { %6076 = vmatpush3.msra.mxu1 %v1031_v31 }
 0x481   :  { %6077 = vmatprep.subr.mxu1 %v1026_v33 }
 0x482   :  { %6078 = vmatpush3.msra.mxu1 %v1026_v33 }
 0x483   :  { %6087 = vmatprep.subr.mxu1 %v5455_v60 }
 0x530   :  { %v6956_v34 = vpop.f32.mrf.mxu0 }
 0x531   :  { %v767_v31 = vadd.f32 %v6956_v34, %v5418_v30 }
 0x532   :  { %v6958_v35 = vpop.f32.mrf.mxu0 }
 0x533   :  { %v766_v33 = vadd.f32 %v5418_v30, %v6958_v35 }
 0x538   :  { %v6056_v37 = vpop.f32.mrf.mxu0 }
 0x539   :  { %v943_v38 = vadd.f32 %v6056_v37, %v5432_v36 }
 0x53a   :  { %v937_v39 = vpop.f32.mrf.mxu0 }
 0x53b   :  { %v938_v40 = vadd.f32 %v5432_v36, %v937_v39  ;;  %6068 = vmatprep.subr.msk.mxu0 %vm487_vm2, %v943_v38  ;;  %v5465_v39 = vld [vmem:[%s7727_s3 + $0x2] ss:$0 sm:$0xff] }
 0x53c   :  { %6069 = vmatpush3.xpose.msk.msra.mxu0 %vm487_vm2, %v943_v38 }
 0x53d   :  { %6070 = vmatprep.subr.msk.mxu0 %vm487_vm2, %v938_v40 }
 0x540   :  { %6071 = vmatpush3.xpose.msk.msra.mxu0 %vm487_vm2, %v938_v40 }
 0x541   :  { %6082 = vmatprep.subr.mxu0 %v5449_v61 }
 0x543   :  { %6073 = vmatmul.mubr.msk.f32.vlgmr.msra.gmra.mxu0 %vm487_vm2, %v857_v41 }
 0x544   :  { %6083 = vmatpush3.msra.mxu0 %v5449_v61  ;;  %v5488_v61 = vld [vmem:[%s7723_s10 + $0x78] sm:$0xff] }
 0x545   :  { %6098 = vmatprep.subr.mxu0 %v5463_v11 }
 0x603   :  { %v6074_v42 = vpop.f32.mrf.mxu0 }
 0x604   :  { %v1118_v43 = vadd.f32 %v6074_v42, %v6886_v48 }
 0x605   :  { %v1112_v44 = vpop.f32.mrf.mxu0 }
 0x606   :  { %v1113_v45 = vadd.f32 %v1112_v44, %v6884_v47  ;;  %v1124_v46 = vsel %vm137_vm0, %v1118_v43, -inf }
 0x607   :  { %1125 = vmax.xlane.f32.xlu1 %v1124_v46 }
 0x608   :  { %v1121_v49 = vsel %vm137_vm0, %v1113_v45, -inf }
 0x609   :  { %1122 = vmax.xlane.f32.xlu0 %v1121_v49 }
 0x690   :  { %v1126_v50 = vpop.xlane.xlu1 %1125 }
 0x691   :  { %v1128_v51 = vsub.f32 %v1118_v43, %v1126_v50 }
 0x692   :  { %v1123_v52 = vpop.xlane.xlu0 %1122 }
 0x693   :  { %v1131_v53 = vmul.f32 1.442695, %v1128_v51  ;;  %v1127_v54 = vsub.f32 %v1113_v45, %v1123_v52 }
 0x695   :  { %6496 = vpow2.f32 %v1131_v53  ;;  %v1129_v55 = vmul.f32 1.442695, %v1127_v54 }
 0x697   :  { %6498 = vpow2.f32 %v1129_v55 }
 0x6a2   :  { %v6497_v56 = vpop.eup %6496 }
 0x6a3   :  { %v1136_v57 = vsel %vm137_vm0, %v6497_v56, 0.0 }
 0x6a4   :  { %v6499_v58 = vpop.eup %6498  ;;  %1137 = vadd.xlane.f32.xlu1 %v1136_v57 }
 0x6a5   :  { %v1133_v59 = vsel %vm137_vm0, %v6499_v58, 0.0 }
 0x6a6   :  { %1134 = vadd.xlane.f32.xlu0 %v1133_v59 }
 0x72d   :  { %v1138_v62 = vpop.xlane.xlu1 %1137 }
 0x72e   :  { %6500 = vrcp.f32 %v1138_v62  ;;  %v5482_v62 = vld [vmem:[%s7730_s1 + $0x10] sm:$0xff] }
 0x72f   :  { %v1135_v63 = vpop.xlane.xlu0 %1134 }
 0x730   :  { %6502 = vrcp.f32 %v1135_v63 }
 0x73b   :  { %v6501_v0 = vpop.eup %6500 }
 0x73c   :  { %v1142_v3 = vmul.f32 %v6501_v0, %v6497_v56 }
 0x73d   :  { %v6503_v1 = vpop.eup %6502 }
 0x73e   :  { %v1140_v2 = vmul.f32 %v6503_v1, %v6499_v58 }
 0x740   :  { %6079 = vmatprep.mubr.msk.f32.mxu1 %vm137_vm0, %v1140_v2 }
 0x741   :  { %6080 = vmatmul.mubr.msk.f32.vlgmr.msra.gmra.mxu1 %vm137_vm0, %v1142_v3 }
 0x742   :  { %6088 = vmatpush3.msra.mxu1 %v5455_v60  ;;  %6095 = vmatprep.mubr.msk.f32.mxu1 %vm231_vm1, %v6844_v16 }
 0x743   :  { %6089 = vmatprep.subr.mxu1 %v5454_v4 }
 0x744   :  { %6090 = vmatpush3.msra.mxu1 %v5454_v4 }
 0x745   :  { %6091 = vmatprep.subr.mxu1 %v5453_v5 }
 0x746   :  { %6092 = vmatpush3.msra.mxu1 %v5453_v5  ;;  %v5487_v5 = vld [vmem:[%s7723_s10 + $0x70] sm:$0xff] }
 0x747   :  { %6093 = vmatprep.subr.mxu1 %v5452_v6 }
 0x748   :  { %6094 = vmatpush3.msra.mxu1 %v5452_v6  ;;  %v5486_v6 = vld [vmem:[%s7723_s10 + $0x68] sm:$0xff] }
 0x749   :  { %6096 = vmatmul.mubr.msk.f32.vlgmr.msra.gmra.mxu1 %vm231_vm1, %v6846_v17  ;;  %6109 = vmatprep.subr.mxu1 %v5471_v7 }
 0x74a   :  { %6110 = vmatpush3.msra.mxu1 %v5471_v7  ;;  %6117 = vmatprep.mubr.msk.f32.mxu1 %vm231_vm1, %v6844_v16  ;;  %v5485_v7 = vld [vmem:[%s7723_s10 + $0x60] sm:$0xff] }
 0x74b   :  { %6111 = vmatprep.subr.mxu1 %v5470_v8 }
 0x74c   :  { %6112 = vmatpush3.msra.mxu1 %v5470_v8  ;;  %v5504_v8 = vld [vmem:[%s7725_s7 + $0x78] sm:$0xff] }
 0x74d   :  { %6113 = vmatprep.subr.mxu1 %v5469_v9 }
 0x74e   :  { %6114 = vmatpush3.msra.mxu1 %v5469_v9  ;;  %v5503_v9 = vld [vmem:[%s7725_s7 + $0x70] sm:$0xff] }
 0x74f   :  { %6115 = vmatprep.subr.mxu1 %v5468_v10 }
 0x750   :  { %6116 = vmatpush3.msra.mxu1 %v5468_v10  ;;  %v5502_v10 = vld [vmem:[%s7725_s7 + $0x68] sm:$0xff] }
 0x751   :  { %6118 = vmatmul.mubr.msk.f32.vlgmr.msra.gmra.mxu1 %vm231_vm1, %v6846_v17 }
 0x801   :  { %v6081_v12 = vpop.f32.mrf.mxu1 }
 0x803   :  { %v1215_v13 = vpop.f32.mrf.mxu1 }
 0x804   :  { %6084 = vmatprep.mubr.msk.f32.mxu0 %vm487_vm2, %v1215_v13 }
 0x805   :  { %6085 = vmatmul.mubr.msk.f32.vlgmr.msra.gmra.mxu0 %vm487_vm2, %v6081_v12  ;;  %v5496_v12 = vld [vmem:[%s7724_s27 + $0x78] sm:$0xff] }
 0x806   :  { %6099 = vmatpush3.msra.mxu0 %v5463_v11  ;;  %6106 = vmatprep.mubr.msk.f32.mxu0 %vm231_vm1, %v6844_v16  ;;  %v5501_v11 = vld [vmem:[%s7725_s7 + $0x60] sm:$0xff] }
 0x807   :  { %6100 = vmatprep.subr.mxu0 %v5462_v14 }
 0x808   :  { %6101 = vmatpush3.msra.mxu0 %v5462_v14 }
 0x809   :  { %v6097_v20 = vpop.f32.mrf.mxu1  ;;  %6102 = vmatprep.subr.mxu0 %v5461_v15 }
 0x80a   :  { %v1394_v21 = vadd.f32 %v6097_v20, %v5457_v18  ;;  %6103 = vmatpush3.msra.mxu0 %v5461_v15  ;;  %v5495_v15 = vld [vmem:[%s7724_s27 + $0x70] sm:$0xff]  ;;  %v5493_v20 = vld [vmem:[%s7724_s27 + $0x60] sm:$0xff] }
 0x80b   :  { %v1388_v22 = vpop.f32.mrf.mxu1  ;;  %6104 = vmatprep.subr.mxu0 %v5460_v19 }
 0x80c   :  { %v1389_v23 = vadd.f32 %v5457_v18, %v1388_v22  ;;  %6105 = vmatpush3.msra.mxu0 %v5460_v19  ;;  %v1398_v34 = vmul.f32 0.35355338, %v1394_v21  ;;  %v5494_v18 = vld [vmem:[%s7724_s27 + $0x68] sm:$0xff]  ;;  %v5490_v19 = vld [vmem:[%s7728_s4 + $0x3] ss:$0 sm:$0xff] }
 0x80d   :  { %6107 = vmatmul.mubr.msk.f32.vlgmr.msra.gmra.mxu0 %vm231_vm1, %v6846_v17 }
 0x80e   :  { %v1397_v24 = vmul.f32 0.35355338, %v1389_v23 }
 0x810   :  { %6124 = vmatprep.mubr.msk.f32.mxu0 %vm487_vm2, %v1397_v24 }
 0x811   :  { %v6119_v26 = vpop.f32.mrf.mxu1 }
 0x812   :  { %v1572_v27 = vadd.f32 %v6119_v26, %v5473_v25  ;;  %v5506_v26 = vld [vmem:[%s7729_s9 + $0x3] ss:$0 sm:$0xff] }
 0x813   :  { %v1566_v28 = vpop.f32.mrf.mxu1 }
 0x814   :  { %v1567_v29 = vadd.f32 %v5473_v25, %v1566_v28  ;;  %6127 = vmatprep.subr.mxu1 %v1572_v27 }
 0x815   :  { %6128 = vmatpush3.msra.mxu1 %v1572_v27 }
 0x816   :  { %6129 = vmatprep.subr.mxu1 %v1567_v29 }
 0x817   :  { %6130 = vmatpush3.msra.mxu1 %v1567_v29 }
 0x818   :  { %6139 = vmatprep.subr.mxu1 %v5488_v61 }
 0x8c5   :  { %v6086_v32 = vpop.f32.mrf.mxu0 }
 0x8c6   :  { %v7041_v36 = vadd.f32 %v6086_v32, %v767_v31 }
 0x8c7   :  { %v1298_v37 = vpop.f32.mrf.mxu0 }
 0x8c8   :  { %v7043_v38 = vadd.f32 %v1298_v37, %v766_v33 }
 0x8cd   :  { %v6108_v40 = vpop.f32.mrf.mxu0 }
 0x8ce   :  { %v1484_v41 = vadd.f32 %v6108_v40, %v5465_v39 }
 0x8cf   :  { %v1478_v42 = vpop.f32.mrf.mxu0 }
 0x8d0   :  { %v1479_v43 = vadd.f32 %v5465_v39, %v1478_v42  ;;  %6120 = vmatprep.subr.msk.mxu0 %vm487_vm2, %v1484_v41  ;;  %v5498_v39 = vld [vmem:[%s7727_s3 + $0x3] ss:$0 sm:$0xff] }
 0x8d1   :  { %6121 = vmatpush3.xpose.msk.msra.mxu0 %vm487_vm2, %v1484_v41 }
 0x8d2   :  { %6122 = vmatprep.subr.msk.mxu0 %vm487_vm2, %v1479_v43 }
 0x8d5   :  { %6123 = vmatpush3.xpose.msk.msra.mxu0 %vm487_vm2, %v1479_v43 }
 0x8d6   :  { %6134 = vmatprep.subr.mxu0 %v5482_v62 }
 0x8d8   :  { %6125 = vmatmul.mubr.msk.f32.vlgmr.msra.gmra.mxu0 %vm487_vm2, %v1398_v34 }
 0x8d9   :  { %6135 = vmatpush3.msra.mxu0 %v5482_v62 }
 0x8da   :  { %6150 = vmatprep.subr.mxu0 %v5496_v12 }
 0x998   :  { %v6126_v35 = vpop.f32.mrf.mxu0 }
 0x999   :  { %v1659_v44 = vadd.f32 %v6126_v35, %v6886_v48 }
 0x99a   :  { %v1653_v45 = vpop.f32.mrf.mxu0 }
 0x99b   :  { %v1654_v46 = vadd.f32 %v1653_v45, %v6884_v47  ;;  %v1665_v49 = vsel %vm137_vm0, %v1659_v44, -inf }
 0x99c   :  { %1666 = vmax.xlane.f32.xlu1 %v1665_v49 }
 0x99d   :  { %v1662_v50 = vsel %vm137_vm0, %v1654_v46, -inf }
 0x99e   :  { %1663 = vmax.xlane.f32.xlu0 %v1662_v50 }
 0xa25   :  { %v1667_v51 = vpop.xlane.xlu1 %1666 }
 0xa26   :  { %v1669_v52 = vsub.f32 %v1659_v44, %v1667_v51 }
 0xa27   :  { %v1664_v53 = vpop.xlane.xlu0 %1663 }
 0xa28   :  { %v1672_v54 = vmul.f32 1.442695, %v1669_v52  ;;  %v1668_v55 = vsub.f32 %v1654_v46, %v1664_v53 }
 0xa2a   :  { %6504 = vpow2.f32 %v1672_v54  ;;  %v1670_v56 = vmul.f32 1.442695, %v1668_v55 }
 0xa2c   :  { %6506 = vpow2.f32 %v1670_v56 }
 0xa37   :  { %v6505_v57 = vpop.eup %6504 }
 0xa38   :  { %v1677_v58 = vsel %vm137_vm0, %v6505_v57, 0.0 }
 0xa39   :  { %v6507_v59 = vpop.eup %6506  ;;  %1678 = vadd.xlane.f32.xlu1 %v1677_v58 }
 0xa3a   :  { %v1674_v60 = vsel %vm137_vm0, %v6507_v59, 0.0 }
 0xa3b   :  { %1675 = vadd.xlane.f32.xlu0 %v1674_v60 }
 0xac2   :  { %v1679_v63 = vpop.xlane.xlu1 %1678 }
 0xac3   :  { %6508 = vrcp.f32 %v1679_v63 }
 0xac4   :  { %v1676_v0 = vpop.xlane.xlu0 %1675 }
 0xac5   :  { %6510 = vrcp.f32 %v1676_v0 }
 0xad0   :  { %v6509_v1 = vpop.eup %6508 }
 0xad1   :  { %v1683_v4 = vmul.f32 %v6509_v1, %v6505_v57 }
 0xad2   :  { %v6511_v2 = vpop.eup %6510 }
 0xad3   :  { %v1681_v3 = vmul.f32 %v6511_v2, %v6507_v59  ;;  %v5515_v59 = vld [vmem:[%s7730_s1 + $0x18] sm:$0xff] }
 0xad5   :  { %6131 = vmatprep.mubr.msk.f32.mxu1 %vm137_vm0, %v1681_v3 }
 0xad6   :  { %6132 = vmatmul.mubr.msk.f32.vlgmr.msra.gmra.mxu1 %vm137_vm0, %v1683_v4 }
 0xad7   :  { %6140 = vmatpush3.msra.mxu1 %v5488_v61  ;;  %6147 = vmatprep.mubr.msk.f32.mxu1 %vm231_vm1, %v6844_v16 }
 0xad8   :  { %6141 = vmatprep.subr.mxu1 %v5487_v5 }
 0xad9   :  { %6142 = vmatpush3.msra.mxu1 %v5487_v5 }
 0xada   :  { %6143 = vmatprep.subr.mxu1 %v5486_v6 }
 0xadb   :  { %6144 = vmatpush3.msra.mxu1 %v5486_v6 }
 0xadc   :  { %6145 = vmatprep.subr.mxu1 %v5485_v7 }
 0xadd   :  { %6146 = vmatpush3.msra.mxu1 %v5485_v7 }
 0xade   :  { %6148 = vmatmul.mubr.msk.f32.vlgmr.msra.gmra.mxu1 %vm231_vm1, %v6846_v17  ;;  %6161 = vmatprep.subr.mxu1 %v5504_v8 }
 0xadf   :  { %6162 = vmatpush3.msra.mxu1 %v5504_v8  ;;  %6169 = vmatprep.mubr.msk.f32.mxu1 %vm231_vm1, %v6844_v16 }
 0xae0   :  { %6163 = vmatprep.subr.mxu1 %v5503_v9 }
 0xae1   :  { %6164 = vmatpush3.msra.mxu1 %v5503_v9 }
 0xae2   :  { %6165 = vmatprep.subr.mxu1 %v5502_v10 }
 0xae3   :  { %6166 = vmatpush3.msra.mxu1 %v5502_v10 }
 0xae4   :  { %6167 = vmatprep.subr.mxu1 %v5501_v11 }
 0xae5   :  { %6168 = vmatpush3.msra.mxu1 %v5501_v11 }
 0xae6   :  { %6170 = vmatmul.mubr.msk.f32.vlgmr.msra.gmra.mxu1 %vm231_vm1, %v6846_v17 }
 0xb96   :  { %v6133_v13 = vpop.f32.mrf.mxu1 }
 0xb98   :  { %v1756_v14 = vpop.f32.mrf.mxu1 }
 0xb99   :  { %6136 = vmatprep.mubr.msk.f32.mxu0 %vm487_vm2, %v1756_v14 }
 0xb9a   :  { %6137 = vmatmul.mubr.msk.f32.vlgmr.msra.gmra.mxu0 %vm487_vm2, %v6133_v13 }
 0xb9b   :  { %6151 = vmatpush3.msra.mxu0 %v5496_v12  ;;  %6158 = vmatprep.mubr.msk.f32.mxu0 %vm231_vm1, %v6844_v16 }
 0xb9c   :  { %6152 = vmatprep.subr.mxu0 %v5495_v15 }
 0xb9d   :  { %6153 = vmatpush3.msra.mxu0 %v5495_v15 }
 0xb9e   :  { %v6149_v21 = vpop.f32.mrf.mxu1  ;;  %6154 = vmatprep.subr.mxu0 %v5494_v18 }
 0xb9f   :  { %v1935_v22 = vadd.f32 %v6149_v21, %v5490_v19  ;;  %6155 = vmatpush3.msra.mxu0 %v5494_v18 }
 0xba0   :  { %v1929_v23 = vpop.f32.mrf.mxu1  ;;  %6156 = vmatprep.subr.mxu0 %v5493_v20 }
 0xba1   :  { %v1930_v24 = vadd.f32 %v5490_v19, %v1929_v23  ;;  %6157 = vmatpush3.msra.mxu0 %v5493_v20  ;;  %v2440_v23 = vld [vmem:[%s7685_s13 + $0x10] sm:$0xff] }
 0xba2   :  { %6159 = vmatmul.mubr.msk.f32.vlgmr.msra.gmra.mxu0 %vm231_vm1, %v6846_v17 }
 0xba3   :  { %v1938_v25 = vmul.f32 0.35355338, %v1930_v24  ;;  %v2439_v24 = vld [vmem:[%s7685_s13 + $0x8] sm:$0xff] }
 0xba5   :  { %6176 = vmatprep.mubr.msk.f32.mxu0 %vm487_vm2, %v1938_v25  ;;  %v2438_v25 = vld [vmem:[%s7685_s13] sm:$0xff] }
 0xba6   :  { %v6171_v27 = vpop.f32.mrf.mxu1 }
 0xba7   :  { %v2113_v28 = vadd.f32 %v6171_v27, %v5506_v26  ;;  %v2538_v27 = vld [vmem:[%s7687_s15 + $0x30] sm:$0xff] }
 0xba8   :  { %v2107_v29 = vpop.f32.mrf.mxu1 }
 0xba9   :  { %v2108_v30 = vadd.f32 %v5506_v26, %v2107_v29  ;;  %6179 = vmatprep.subr.mxu1 %v2113_v28  ;;  %v2539_v26 = vld [vmem:[%s7687_s15 + $0x38] sm:$0xff]  ;;  %v2536_v29 = vld [vmem:[%s7687_s15 + $0x20] sm:$0xff] }
 0xbaa   :  { %6180 = vmatpush3.msra.mxu1 %v2113_v28  ;;  %v2537_v28 = vld [vmem:[%s7687_s15 + $0x28] sm:$0xff] }
 0xbab   :  { %6181 = vmatprep.subr.mxu1 %v2108_v30 }
 0xbac   :  { %6182 = vmatpush3.msra.mxu1 %v2108_v30 }
 0xc5a   :  { %v6138_v31 = vpop.f32.mrf.mxu0 }
 0xc5b   :  { %v1849_v32 = vadd.f32 %v6138_v31, %v7041_v36  ;;  %v1939_v36 = vmul.f32 0.35355338, %v1935_v22 }
 0xc5c   :  { %v1839_v33 = vpop.f32.mrf.mxu0 }
 0xc5d   :  { %v1848_v37 = vadd.f32 %v1839_v33, %v7043_v38 }
 0xc62   :  { %v6160_v40 = vpop.f32.mrf.mxu0 }
 0xc63   :  { %v2025_v41 = vadd.f32 %v6160_v40, %v5498_v39 }
 0xc64   :  { %v2019_v42 = vpop.f32.mrf.mxu0 }
 0xc65   :  { %v2020_v43 = vadd.f32 %v5498_v39, %v2019_v42  ;;  %6172 = vmatprep.subr.msk.mxu0 %vm487_vm2, %v2025_v41 }
 0xc66   :  { %6173 = vmatpush3.xpose.msk.msra.mxu0 %vm487_vm2, %v2025_v41  ;;  %v5518_v41 = vld [vmem:[%s7683_s11] ss:$0 sm:$0xff] }
 0xc67   :  { %6174 = vmatprep.subr.msk.mxu0 %vm487_vm2, %v2020_v43 }
 0xc6a   :  { %6175 = vmatpush3.xpose.msk.msra.mxu0 %vm487_vm2, %v2020_v43 }
 0xc6b   :  { %6186 = vmatprep.subr.mxu0 %v5515_v59 }
 0xc6d   :  { %6177 = vmatmul.mubr.msk.f32.vlgmr.msra.gmra.mxu0 %vm487_vm2, %v1939_v36 }
 0xc6e   :  { %6187 = vmatpush3.msra.mxu0 %v5515_v59  ;;  %v5523_v59 = vld [vmem:[%s7688_s16] ss:$0 sm:$0xff] }
 0xc6f   :  { %6202 = vmatprep.subr.mxu0 %v2539_v26 }
 0xd2d   :  { %v6178_v38 = vpop.f32.mrf.mxu0 }
 0xd2e   :  { %v2200_v34 = vadd.f32 %v6178_v38, %v6886_v48 }
 0xd2f   :  { %v2194_v35 = vpop.f32.mrf.mxu0 }
 0xd30   :  { %v2195_v44 = vadd.f32 %v2194_v35, %v6884_v47  ;;  %v2206_v45 = vsel %vm137_vm0, %v2200_v34, -inf }
 0xd31   :  { %2207 = vmax.xlane.f32.xlu1 %v2206_v45 }
 0xd32   :  { %v2203_v46 = vsel %vm137_vm0, %v2195_v44, -inf }
 0xd33   :  { %2204 = vmax.xlane.f32.xlu0 %v2203_v46  ;;  %v2535_v46 = vld [vmem:[%s7687_s15 + $0x18] sm:$0xff] }
 0xdba   :  { %v2208_v49 = vpop.xlane.xlu1 %2207 }
 0xdbb   :  { %v2210_v50 = vsub.f32 %v2200_v34, %v2208_v49  ;;  %v5519_v34 = vld [vmem:[%s7684_s12] ss:$0 sm:$0xff]  ;;  %v2534_v49 = vld [vmem:[%s7687_s15 + $0x10] sm:$0xff] }
 0xdbc   :  { %v2205_v51 = vpop.xlane.xlu0 %2204 }
 0xdbd   :  { %v2213_v52 = vmul.f32 1.442695, %v2210_v50  ;;  %v2209_v53 = vsub.f32 %v2195_v44, %v2205_v51  ;;  %v2533_v50 = vld [vmem:[%s7687_s15 + $0x8] sm:$0xff]  ;;  %v2532_v51 = vld [vmem:[%s7687_s15] sm:$0xff] }
 0xdbf   :  { %6512 = vpow2.f32 %v2213_v52  ;;  %v2211_v54 = vmul.f32 1.442695, %v2209_v53  ;;  %v5520_v52 = vld [vmem:[%s7686_s14] ss:$0 sm:$0xff] }
 0xdc1   :  { %6514 = vpow2.f32 %v2211_v54 }
 0xdcc   :  { %v6513_v55 = vpop.eup %6512 }
 0xdcd   :  { %v2218_v56 = vsel %vm137_vm0, %v6513_v55, 0.0 }
 0xdce   :  { %v6515_v57 = vpop.eup %6514  ;;  %2219 = vadd.xlane.f32.xlu1 %v2218_v56 }
 0xdcf   :  { %v2215_v58 = vsel %vm137_vm0, %v6515_v57, 0.0 }
 0xdd0   :  { %2216 = vadd.xlane.f32.xlu0 %v2215_v58 }
 0xe57   :  { %v2220_v60 = vpop.xlane.xlu1 %2219 }
 0xe58   :  { %6516 = vrcp.f32 %v2220_v60 }
 0xe59   :  { %v2217_v61 = vpop.xlane.xlu0 %2216 }
 0xe5a   :  { %6518 = vrcp.f32 %v2217_v61 }
 0xe65   :  { %v6517_v62 = vpop.eup %6516 }
 0xe66   :  { %v2224_v1 = vmul.f32 %v6517_v62, %v6513_v55 }
 0xe67   :  { %v6519_v63 = vpop.eup %6518 }
 0xe68   :  { %v2222_v0 = vmul.f32 %v6519_v63, %v6515_v57 }
 0xe6a   :  { %6183 = vmatprep.mubr.msk.f32.mxu1 %vm137_vm0, %v2222_v0 }
 0xe6b   :  { %6184 = vmatmul.mubr.msk.f32.vlgmr.msra.gmra.mxu1 %vm137_vm0, %v2224_v1 }
 0xf2b   :  { %v6185_v2 = vpop.f32.mrf.mxu1 }
 0xf2d   :  { %v2297_v3 = vpop.f32.mrf.mxu1 }
 0xf2e   :  { %6188 = vmatprep.mubr.msk.f32.mxu0 %vm487_vm2, %v2297_v3 }
 0xf2f   :  { %6189 = vmatmul.mubr.msk.f32.vlgmr.msra.gmra.mxu0 %vm487_vm2, %v6185_v2 }
 0xf30   :  { %6203 = vmatpush3.msra.mxu0 %v2539_v26 }
 0xf31   :  { %6204 = vmatprep.subr.mxu0 %v2538_v27 }
 0xf32   :  { %6205 = vmatpush3.msra.mxu0 %v2538_v27 }
 0xf33   :  { %6206 = vmatprep.subr.mxu0 %v2537_v28 }
 0xf34   :  { %6207 = vmatpush3.msra.mxu0 %v2537_v28 }
 0xf35   :  { %6208 = vmatprep.subr.mxu0 %v2536_v29 }
 0xf36   :  { %6209 = vmatpush3.msra.mxu0 %v2536_v29 }
 0xf37   :  { %6210 = vmatprep.subr.mxu0 %v2535_v46 }
 0xf38   :  { %6211 = vmatpush3.msra.mxu0 %v2535_v46  ;;  %v5534_v46 = vld [vmem:[%s7728_s4 + $0x4] ss:$0 sm:$0xff] }
 0xf39   :  { %6212 = vmatprep.subr.mxu0 %v2534_v49 }
 0xf3a   :  { %6213 = vmatpush3.msra.mxu0 %v2534_v49 }
 0xf3b   :  { %6214 = vmatprep.subr.mxu0 %v2533_v50 }
 0xf3c   :  { %6215 = vmatpush3.msra.mxu0 %v2533_v50 }
 0xf3d   :  { %6216 = vmatprep.subr.mxu0 %v2532_v51 }
 0xf3e   :  { %6217 = vmatpush3.msra.mxu0 %v2532_v51 }
 0xfef   :  { %v6190_v4 = vpop.f32.mrf.mxu0 }
 0xff0   :  { %v2390_v5 = vadd.f32 %v6190_v4, %v1849_v32 }
 0xff1   :  { %v2380_v6 = vpop.f32.mrf.mxu0 }
 0xff2   :  { %v2389_v7 = vadd.f32 %v2380_v6, %v1848_v37  ;;  %v2392_v8 = vadd.f32 %v2390_v5, %v6846_v17 }
 0xff4   :  { %v2398_v9 = vsel %vm231_vm1, %v2392_v8, 0.0  ;;  %v2391_v10 = vadd.f32 %v2389_v7, %v6844_v16  ;;  %v2441_v16 = vld [vmem:[%s7685_s13 + $0x18] sm:$0xff] }
 0xff5   :  { %2399 = vadd.xlane.f32.xlu1 %v2398_v9  ;;  %6191 = vmatprep.subr.mxu1 %v2441_v16 }
 0xff6   :  { %v2395_v11 = vsel %vm231_vm1, %v2391_v10, 0.0  ;;  %6192 = vmatpush3.msra.mxu1 %v2441_v16  ;;  %v5540_v16 = vld [vmem:[%s7724_s27 + $0x98] sm:$0xff] }
 0xff7   :  { %2396 = vadd.xlane.f32.xlu0 %v2395_v11  ;;  %6193 = vmatprep.subr.mxu1 %v2440_v23 }
 0xff8   :  { %6194 = vmatpush3.msra.mxu1 %v2440_v23 }
 0xff9   :  { %6195 = vmatprep.subr.mxu1 %v2439_v24 }
 0xffa   :  { %6196 = vmatpush3.msra.mxu1 %v2439_v24 }
 0xffb   :  { %6197 = vmatprep.subr.mxu1 %v2438_v25 }
 0xffc   :  { %6198 = vmatpush3.msra.mxu1 %v2438_v25 }
0x107e   :  { %v2400_v12 = vpop.xlane.xlu1 %2399 }
0x107f   :  { %v2403_v13 = vmul.f32 0.03125, %v2400_v12 }
0x1080   :  { %v2397_v14 = vpop.xlane.xlu0 %2396 }
0x1081   :  { %v2405_v15 = vsub.f32 %v2392_v8, %v2403_v13  ;;  %v2402_v18 = vmul.f32 0.03125, %v2397_v14  ;;  %v5532_v14 = vld [vmem:[%s7723_s10 + $0x98] sm:$0xff] }
0x1082   :  { %6221 = vmatprep.subr.mxu1 %v5532_v14 }
0x1083   :  { %v2404_v19 = vsub.f32 %v2391_v10, %v2402_v18  ;;  %v2407_v20 = vmul.f32 %v2405_v15, %v2405_v15  ;;  %v5531_v18 = vld [vmem:[%s7723_s10 + $0x90] sm:$0xff] }
0x1085   :  { %v2411_v21 = vsel %vm231_vm1, %v2407_v20, 0.0  ;;  %v2406_v22 = vmul.f32 %v2404_v19, %v2404_v19  ;;  %v5530_v20 = vld [vmem:[%s7723_s10 + $0x88] sm:$0xff] }
0x1086   :  { %2412 = vadd.xlane.f32.xlu1 %v2411_v21  ;;  %v5546_v21 = vld [vmem:[%s7725_s7 + $0x88] sm:$0xff] }
0x1087   :  { %v2408_v17 = vsel %vm231_vm1, %v2406_v22, 0.0  ;;  %v5529_v22 = vld [vmem:[%s7723_s10 + $0x80] sm:$0xff] }
0x1088   :  { %2409 = vadd.xlane.f32.xlu0 %v2408_v17  ;;  %v5545_v17 = vld [vmem:[%s7725_s7 + $0x80] sm:$0xff] }
0x110f   :  { %v2413_v30 = vpop.xlane.xlu1 %2412 }
0x1110   :  { %v2415_v31 = vmul.f32 0.03125, %v2413_v30  ;;  %v5526_v30 = vld [vmem:[%s7689_s17] ss:$0 sm:$0xff] }
0x1111   :  { %v2410_v32 = vpop.xlane.xlu0 %2409 }
0x1112   :  { %v2417_v33 = vadd.f32 1e-05, %v2415_v31  ;;  %v2414_v37 = vmul.f32 0.03125, %v2410_v32 }
0x1114   :  { %6520 = vrsqrt.f32 %v2417_v33  ;;  %v2416_v39 = vadd.f32 1e-05, %v2414_v37 }
0x1116   :  { %6522 = vrsqrt.f32 %v2416_v39  ;;  %v5527_v39 = vld [vmem:[%s7690_s18] ss:$0 sm:$0xff] }
0x1121   :  { %v6521_v40 = vpop.eup %6520 }
0x1122   :  { %v2421_v42 = vmul.f32 %v6521_v40, %v2405_v15  ;;  %v5548_v15 = vld [vmem:[%s7725_s7 + $0x98] sm:$0xff] }
0x1123   :  { %v6523_v43 = vpop.eup %6522  ;;  %6243 = vmatprep.subr.mxu0 %v5548_v15 }
0x1124   :  { %v2420_v36 = vmul.f32 %v6523_v43, %v2404_v19  ;;  %v2429_v38 = vmul.f32 %v5518_v41, %v2421_v42  ;;  %v5547_v19 = vld [vmem:[%s7725_s7 + $0x90] sm:$0xff] }
0x1125   :  { %v5539_v43 = vld [vmem:[%s7724_s27 + $0x90] sm:$0xff] }
0x1126   :  { %v2428_v35 = vmul.f32 %v5518_v41, %v2420_v36  ;;  %v2437_v45 = vadd.f32 %v5519_v34, %v2429_v38  ;;  %v5538_v36 = vld [vmem:[%s7724_s27 + $0x88] sm:$0xff]  ;;  %v5537_v38 = vld [vmem:[%s7724_s27 + $0x80] sm:$0xff] }
0x1128   :  { %v2436_v44 = vadd.f32 %v5519_v34, %v2428_v35  ;;  %v5550_v34 = vld [vmem:[%s7729_s9 + $0x4] ss:$0 sm:$0xff] }
0x112a   :  { %6199 = vmatprep.mubr.msk.f32.mxu1 %vm231_vm1, %v2436_v44 }
0x112b   :  { %6200 = vmatmul.mubr.msk.f32.vlgmr.msra.gmra.mxu1 %vm231_vm1, %v2437_v45 }
0x112c   :  { %6222 = vmatpush3.msra.mxu1 %v5532_v14 }
0x112d   :  { %6223 = vmatprep.subr.mxu1 %v5531_v18 }
0x112e   :  { %6224 = vmatpush3.msra.mxu1 %v5531_v18 }
0x112f   :  { %6225 = vmatprep.subr.mxu1 %v5530_v20 }
0x1130   :  { %6226 = vmatpush3.msra.mxu1 %v5530_v20 }
0x1131   :  { %6227 = vmatprep.subr.mxu1 %v5529_v22 }
0x1132   :  { %6228 = vmatpush3.msra.mxu1 %v5529_v22 }
0x1133   :  { %6232 = vmatprep.subr.mxu1 %v5540_v16 }
0x11eb   :  { %v6201_v53 = vpop.f32.mrf.mxu1 }
0x11ec   :  { %v2527_v54 = vadd.f32 %v6201_v53, %v5520_v52 }
0x11ed   :  { %v2521_v55 = vpop.f32.mrf.mxu1 }
0x11ee   :  { %v2522_v56 = vadd.f32 %v5520_v52, %v2521_v55  ;;  %v2531_v58 = vmax.f32 %v2527_v54, 0.0  ;;  %v5542_v54 = vld [vmem:[%s7727_s3 + $0x4] ss:$0 sm:$0xff] }
0x11f0   :  { %v2530_v57 = vmax.f32 %v2522_v56, 0.0 }
0x11f2   :  { %6218 = vmatprep.mubr.msk.f32.mxu0 %vm2547_vm5, %v2530_v57 }
0x11f3   :  { %6219 = vmatmul.mubr.msk.f32.vlgmr.msra.gmra.mxu0 %vm2547_vm5, %v2531_v58 }
0x11f4   :  { %6244 = vmatpush3.msra.mxu0 %v5548_v15  ;;  %v5584_v15 = vld [vmem:[%s7729_s9 + $0x5] ss:$0 sm:$0xff] }
0x11f5   :  { %6245 = vmatprep.subr.mxu0 %v5547_v19 }
0x11f6   :  { %6246 = vmatpush3.msra.mxu0 %v5547_v19 }
0x11f7   :  { %6247 = vmatprep.subr.mxu0 %v5546_v21 }
0x11f8   :  { %6248 = vmatpush3.msra.mxu0 %v5546_v21 }
0x11f9   :  { %6249 = vmatprep.subr.mxu0 %v5545_v17 }
0x11fa   :  { %6250 = vmatpush3.msra.mxu0 %v5545_v17 }
0x12b3   :  { %v6220_v60 = vpop.f32.mrf.mxu0 }
0x12b4   :  { %v2626_v61 = vadd.f32 %v6220_v60, %v5523_v59  ;;  %v5566_v60 = vld [vmem:[%s7723_s10 + $0xb8] sm:$0xff] }
0x12b5   :  { %v2620_v62 = vpop.f32.mrf.mxu0 }
0x12b6   :  { %v2621_v63 = vadd.f32 %v5523_v59, %v2620_v62  ;;  %v2630_v0 = vadd.f32 %v2626_v61, %v2437_v45  ;;  %v5565_v62 = vld [vmem:[%s7723_s10 + $0xb0] sm:$0xff] }
0x12b8   :  { %v2636_v1 = vsel %vm231_vm1, %v2630_v0, 0.0  ;;  %v2629_v2 = vadd.f32 %v2621_v63, %v2436_v44  ;;  %v5564_v63 = vld [vmem:[%s7723_s10 + $0xa8] sm:$0xff] }
0x12b9   :  { %2637 = vadd.xlane.f32.xlu1 %v2636_v1  ;;  %v5582_v1 = vld [vmem:[%s7725_s7 + $0xb8] sm:$0xff] }
0x12ba   :  { %v2633_v3 = vsel %vm231_vm1, %v2629_v2, 0.0 }
0x12bb   :  { %2634 = vadd.xlane.f32.xlu0 %v2633_v3  ;;  %v5580_v3 = vld [vmem:[%s7725_s7 + $0xa8] sm:$0xff] }
0x1342   :  { %v2638_v4 = vpop.xlane.xlu1 %2637 }
0x1343   :  { %v2640_v5 = vmul.f32 0.03125, %v2638_v4  ;;  %v5579_v4 = vld [vmem:[%s7725_s7 + $0xa0] sm:$0xff] }
0x1344   :  { %v2635_v6 = vpop.xlane.xlu0 %2634 }
0x1345   :  { %v2642_v7 = vsub.f32 %v2630_v0, %v2640_v5  ;;  %v2639_v8 = vmul.f32 0.03125, %v2635_v6  ;;  %v5563_v0 = vld [vmem:[%s7723_s10 + $0xa0] sm:$0xff] }
0x1347   :  { %v2641_v9 = vsub.f32 %v2629_v2, %v2639_v8  ;;  %v2644_v10 = vmul.f32 %v2642_v7, %v2642_v7  ;;  %v5581_v2 = vld [vmem:[%s7725_s7 + $0xb0] sm:$0xff] }
0x1349   :  { %v2648_v11 = vsel %vm231_vm1, %v2644_v10, 0.0  ;;  %v2643_v12 = vmul.f32 %v2641_v9, %v2641_v9 }
0x134a   :  { %2649 = vadd.xlane.f32.xlu1 %v2648_v11  ;;  %v5568_v11 = vld [vmem:[%s7728_s4 + $0x5] ss:$0 sm:$0xff] }
0x134b   :  { %v2645_v13 = vsel %vm231_vm1, %v2643_v12, 0.0 }
0x134c   :  { %2646 = vadd.xlane.f32.xlu0 %v2645_v13 }
0x13d3   :  { %v2650_v23 = vpop.xlane.xlu1 %2649 }
0x13d4   :  { %v2652_v24 = vmul.f32 0.03125, %v2650_v23 }
0x13d5   :  { %v2647_v25 = vpop.xlane.xlu0 %2646 }
0x13d6   :  { %v2654_v26 = vadd.f32 1e-05, %v2652_v24  ;;  %v2651_v27 = vmul.f32 0.03125, %v2647_v25 }
0x13d8   :  { %6524 = vrsqrt.f32 %v2654_v26  ;;  %v2653_v28 = vadd.f32 1e-05, %v2651_v27 }
0x13da   :  { %6526 = vrsqrt.f32 %v2653_v28 }
0x13e5   :  { %v6525_v29 = vpop.eup %6524 }
0x13e6   :  { %v2658_v31 = vmul.f32 %v6525_v29, %v2642_v7 }
0x13e7   :  { %v6527_v32 = vpop.eup %6526 }
0x13e8   :  { %v2657_v33 = vmul.f32 %v6527_v32, %v2641_v9  ;;  %v2666_v37 = vmul.f32 %v5526_v30, %v2658_v31 }
0x13ea   :  { %v2665_v40 = vmul.f32 %v5526_v30, %v2657_v33  ;;  %v7241_v42 = vadd.f32 %v5527_v39, %v2666_v37  ;;  %v5559_v30 = vld [vmem:[%s7730_s1 + $0x20] sm:$0xff] }
0x13ec   :  { %v7239_v41 = vadd.f32 %v5527_v39, %v2665_v40 }
0x13ee   :  { %6229 = vmatprep.mubr.msk.f32.mxu1 %vm231_vm1, %v7239_v41  ;;  %6251 = vmatprep.mubr.msk.f32.mxu0 %vm231_vm1, %v7239_v41 }
0x13ef   :  { %6230 = vmatmul.mubr.msk.f32.vlgmr.msra.gmra.mxu1 %vm231_vm1, %v7241_v42  ;;  %6252 = vmatmul.mubr.msk.f32.vlgmr.msra.gmra.mxu0 %vm231_vm1, %v7241_v42 }
0x13f0   :  { %6233 = vmatpush3.msra.mxu1 %v5540_v16  ;;  %6240 = vmatprep.mubr.msk.f32.mxu1 %vm231_vm1, %v7239_v41 }
0x13f1   :  { %6234 = vmatprep.subr.mxu1 %v5539_v43 }
0x13f2   :  { %6235 = vmatpush3.msra.mxu1 %v5539_v43  ;;  %v5574_v43 = vld [vmem:[%s7724_s27 + $0xb8] sm:$0xff] }
0x13f3   :  { %6236 = vmatprep.subr.mxu1 %v5538_v36 }
0x13f4   :  { %6237 = vmatpush3.msra.mxu1 %v5538_v36 }
0x13f5   :  { %6238 = vmatprep.subr.mxu1 %v5537_v38 }
0x13f6   :  { %6239 = vmatpush3.msra.mxu1 %v5537_v38 }
0x13f7   :  { %6241 = vmatmul.mubr.msk.f32.vlgmr.msra.gmra.mxu1 %vm231_vm1, %v7241_v42 }
0x14af   :  { %v6231_v35 = vpop.f32.mrf.mxu1  ;;  %v6253_v44 = vpop.f32.mrf.mxu0 }
0x14b0   :  { %v2946_v45 = vadd.f32 %v6253_v44, %v5550_v34  ;;  %v2768_v59 = vadd.f32 %v6231_v35, %v5534_v46  ;;  %v5572_v35 = vld [vmem:[%s7724_s27 + $0xa8] sm:$0xff] }
0x14b1   :  { %v2762_v49 = vpop.f32.mrf.mxu1  ;;  %v2940_v50 = vpop.f32.mrf.mxu0 }
0x14b2   :  { %v2763_v51 = vadd.f32 %v5534_v46, %v2762_v49  ;;  %v2941_v52 = vadd.f32 %v5550_v34, %v2940_v50  ;;  %6261 = vmatprep.subr.mxu0 %v2946_v45  ;;  %v2772_v61 = vmul.f32 0.35355338, %v2768_v59  ;;  %v5573_v34 = vld [vmem:[%s7724_s27 + $0xb0] sm:$0xff] }
0x14b3   :  { %6262 = vmatpush3.msra.mxu0 %v2946_v45  ;;  %v5571_v45 = vld [vmem:[%s7724_s27 + $0xa0] sm:$0xff] }
0x14b4   :  { %v2771_v53 = vmul.f32 0.35355338, %v2763_v51  ;;  %6263 = vmatprep.subr.mxu0 %v2941_v52  ;;  %v5576_v51 = vld [vmem:[%s7727_s3 + $0x5] ss:$0 sm:$0xff] }
0x14b5   :  { %6264 = vmatpush3.msra.mxu0 %v2941_v52 }
0x14b6   :  { %6258 = vmatprep.mubr.msk.f32.mxu1 %vm487_vm2, %v2771_v53  ;;  %6268 = vmatprep.subr.mxu0 %v5559_v30 }
0x14b7   :  { %v6242_v55 = vpop.f32.mrf.mxu1 }
0x14b8   :  { %v2858_v56 = vadd.f32 %v6242_v55, %v5542_v54 }
0x14b9   :  { %v2852_v57 = vpop.f32.mrf.mxu1 }
0x14ba   :  { %v2853_v58 = vadd.f32 %v5542_v54, %v2852_v57  ;;  %6254 = vmatprep.subr.msk.mxu1 %vm487_vm2, %v2858_v56 }
0x14bb   :  { %6255 = vmatpush3.xpose.msk.msra.mxu1 %vm487_vm2, %v2858_v56 }
0x14bc   :  { %6256 = vmatprep.subr.msk.mxu1 %vm487_vm2, %v2853_v58 }
0x14bf   :  { %6257 = vmatpush3.xpose.msk.msra.mxu1 %vm487_vm2, %v2853_v58 }
0x14c0   :  { %6273 = vmatprep.subr.mxu1 %v5566_v60 }
0x14c2   :  { %6259 = vmatmul.mubr.msk.f32.vlgmr.msra.gmra.mxu1 %vm487_vm2, %v2772_v61 }
0x14c3   :  { %6274 = vmatpush3.msra.mxu1 %v5566_v60  ;;  %6281 = vmatprep.mubr.msk.f32.mxu1 %vm231_vm1, %v7239_v41 }
0x14c4   :  { %6275 = vmatprep.subr.mxu1 %v5565_v62 }
0x14c5   :  { %6276 = vmatpush3.msra.mxu1 %v5565_v62 }
0x14c6   :  { %6277 = vmatprep.subr.mxu1 %v5564_v63 }
0x14c7   :  { %6278 = vmatpush3.msra.mxu1 %v5564_v63 }
0x14c8   :  { %6279 = vmatprep.subr.mxu1 %v5563_v0 }
0x14c9   :  { %6280 = vmatpush3.msra.mxu1 %v5563_v0 }
0x14ca   :  { %6282 = vmatmul.mubr.msk.f32.vlgmr.msra.gmra.mxu1 %vm231_vm1, %v7241_v42  ;;  %6295 = vmatprep.subr.mxu1 %v5582_v1 }
0x14cb   :  { %6296 = vmatpush3.msra.mxu1 %v5582_v1  ;;  %6303 = vmatprep.mubr.msk.f32.mxu1 %vm231_vm1, %v7239_v41 }
0x14cc   :  { %6297 = vmatprep.subr.mxu1 %v5581_v2 }
0x14cd   :  { %6298 = vmatpush3.msra.mxu1 %v5581_v2 }
0x14ce   :  { %6299 = vmatprep.subr.mxu1 %v5580_v3 }
0x14cf   :  { %6300 = vmatpush3.msra.mxu1 %v5580_v3 }
0x14d0   :  { %6301 = vmatprep.subr.mxu1 %v5579_v4 }
0x14d1   :  { %6302 = vmatpush3.msra.mxu1 %v5579_v4 }
0x14d2   :  { %6304 = vmatmul.mubr.msk.f32.vlgmr.msra.gmra.mxu1 %vm231_vm1, %v7241_v42 }
0x1582   :  { %v6260_v5 = vpop.f32.mrf.mxu1 }
0x1583   :  { %v3033_v6 = vadd.f32 %v6260_v5, %v6886_v48 }
0x1584   :  { %v3027_v7 = vpop.f32.mrf.mxu1 }
0x1585   :  { %v3028_v8 = vadd.f32 %v3027_v7, %v6884_v47  ;;  %v3039_v9 = vsel %vm137_vm0, %v3033_v6, -inf }
0x1586   :  { %3040 = vmax.xlane.f32.xlu1 %v3039_v9  ;;  %v5599_v9 = vld [vmem:[%s7723_s10 + $0xd8] sm:$0xff] }
0x1587   :  { %v3036_v10 = vsel %vm137_vm0, %v3028_v8, -inf }
0x1588   :  { %3037 = vmax.xlane.f32.xlu0 %v3036_v10  ;;  %v5593_v10 = vld [vmem:[%s7730_s1 + $0x28] sm:$0xff] }
0x158a   :  { %v6283_v12 = vpop.f32.mrf.mxu1 }
0x158b   :  { %v7318_v13 = vadd.f32 %v6283_v12, %v5568_v11 }
0x158c   :  { %v3309_v14 = vpop.f32.mrf.mxu1 }
0x158d   :  { %v3310_v44 = vadd.f32 %v5568_v11, %v3309_v14  ;;  %v3319_v56 = vmul.f32 0.35355338, %v7318_v13 }
0x158f   :  { %v3318_v46 = vmul.f32 0.35355338, %v3310_v44 }
0x1592   :  { %v6305_v18 = vpop.f32.mrf.mxu1 }
0x1593   :  { %v3493_v19 = vadd.f32 %v6305_v18, %v5584_v15 }
0x1594   :  { %v3487_v20 = vpop.f32.mrf.mxu1 }
0x1595   :  { %v3488_v21 = vadd.f32 %v5584_v15, %v3487_v20  ;;  %6313 = vmatprep.subr.mxu1 %v3493_v19  ;;  %v5597_v20 = vld [vmem:[%s7723_s10 + $0xc8] sm:$0xff] }
0x1596   :  { %6314 = vmatpush3.msra.mxu1 %v3493_v19  ;;  %v5598_v19 = vld [vmem:[%s7723_s10 + $0xd0] sm:$0xff] }
0x1597   :  { %6315 = vmatprep.subr.mxu1 %v3488_v21 }
0x1598   :  { %6316 = vmatpush3.msra.mxu1 %v3488_v21  ;;  %v5596_v21 = vld [vmem:[%s7723_s10 + $0xc0] sm:$0xff] }
0x1599   :  { %6325 = vmatprep.subr.mxu1 %v5599_v9 }
0x160f   :  { %v3041_v22 = vpop.xlane.xlu1 %3040 }
0x1610   :  { %v3043_v17 = vsub.f32 %v3033_v6, %v3041_v22  ;;  %v5615_v22 = vld [vmem:[%s7725_s7 + $0xd8] sm:$0xff] }
0x1611   :  { %v3038_v16 = vpop.xlane.xlu0 %3037 }
0x1612   :  { %v3046_v23 = vmul.f32 1.442695, %v3043_v17  ;;  %v3042_v24 = vsub.f32 %v3028_v8, %v3038_v16  ;;  %v5614_v17 = vld [vmem:[%s7725_s7 + $0xd0] sm:$0xff]  ;;  %v5613_v16 = vld [vmem:[%s7725_s7 + $0xc8] sm:$0xff] }
0x1614   :  { %6528 = vpow2.f32 %v3046_v23  ;;  %v3044_v25 = vmul.f32 1.442695, %v3042_v24  ;;  %v5612_v23 = vld [vmem:[%s7725_s7 + $0xc0] sm:$0xff]  ;;  %v5607_v24 = vld [vmem:[%s7724_s27 + $0xd8] sm:$0xff] }
0x1616   :  { %6530 = vpow2.f32 %v3044_v25 }
0x1621   :  { %v6529_v26 = vpop.eup %6528 }
0x1622   :  { %v3051_v27 = vsel %vm137_vm0, %v6529_v26, 0.0 }
0x1623   :  { %v6531_v28 = vpop.eup %6530  ;;  %3052 = vadd.xlane.f32.xlu1 %v3051_v27  ;;  %v5606_v27 = vld [vmem:[%s7724_s27 + $0xd0] sm:$0xff] }
0x1624   :  { %v3048_v29 = vsel %vm137_vm0, %v6531_v28, 0.0 }
0x1625   :  { %3049 = vadd.xlane.f32.xlu0 %v3048_v29  ;;  %v5601_v29 = vld [vmem:[%s7728_s4 + $0x6] ss:$0 sm:$0xff] }
0x16ac   :  { %v3053_v31 = vpop.xlane.xlu1 %3052 }
0x16ad   :  { %6532 = vrcp.f32 %v3053_v31 }
0x16ae   :  { %v3050_v32 = vpop.xlane.xlu0 %3049 }
0x16af   :  { %6534 = vrcp.f32 %v3050_v32 }
0x16ba   :  { %v6533_v33 = vpop.eup %6532 }
0x16bb   :  { %v3057_v40 = vmul.f32 %v6533_v33, %v6529_v26 }
0x16bc   :  { %v6535_v37 = vpop.eup %6534 }
0x16bd   :  { %v3055_v39 = vmul.f32 %v6535_v37, %v6531_v28  ;;  %v5605_v28 = vld [vmem:[%s7724_s27 + $0xc8] sm:$0xff] }
0x16bf   :  { %6265 = vmatprep.mubr.msk.f32.mxu0 %vm137_vm0, %v3055_v39 }
0x16c0   :  { %6266 = vmatmul.mubr.msk.f32.vlgmr.msra.gmra.mxu0 %vm137_vm0, %v3057_v40  ;;  %v5617_v40 = vld [vmem:[%s7729_s9 + $0x6] ss:$0 sm:$0xff] }
0x16c1   :  { %6269 = vmatpush3.msra.mxu0 %v5559_v30  ;;  %v5604_v30 = vld [vmem:[%s7724_s27 + $0xc0] sm:$0xff] }
0x16c2   :  { %6284 = vmatprep.subr.mxu0 %v5574_v43 }
0x1780   :  { %v6267_v36 = vpop.f32.mrf.mxu0 }
0x1782   :  { %v3130_v38 = vpop.f32.mrf.mxu0 }
0x1783   :  { %6270 = vmatprep.mubr.msk.f32.mxu0 %vm487_vm2, %v3130_v38 }
0x1784   :  { %6271 = vmatmul.mubr.msk.f32.vlgmr.msra.gmra.mxu0 %vm487_vm2, %v6267_v36 }
0x1785   :  { %6285 = vmatpush3.msra.mxu0 %v5574_v43  ;;  %6292 = vmatprep.mubr.msk.f32.mxu0 %vm231_vm1, %v7239_v41 }
0x1786   :  { %6286 = vmatprep.subr.mxu0 %v5573_v34 }
0x1787   :  { %6287 = vmatpush3.msra.mxu0 %v5573_v34 }
0x1788   :  { %6288 = vmatprep.subr.mxu0 %v5572_v35 }
0x1789   :  { %6289 = vmatpush3.msra.mxu0 %v5572_v35  ;;  %v5562_v35 = vld [vmem:[%s7731_s30 + $0x1] ss:$0 sm:$0xff] }
0x178a   :  { %6290 = vmatprep.subr.mxu0 %v5571_v45 }
0x178b   :  { %6291 = vmatpush3.msra.mxu0 %v5571_v45 }
0x178c   :  { %6293 = vmatmul.mubr.msk.f32.vlgmr.msra.gmra.mxu0 %vm231_vm1, %v7241_v42 }
0x178d   :  { %6310 = vmatprep.mubr.msk.f32.mxu0 %vm487_vm2, %v3318_v46 }
0x1844   :  { %v7349_v49 = vpop.f32.mrf.mxu0 }
0x1845   :  { %v3229_v44 = vadd.f32 %v7349_v49, %v5562_v35 }
0x1846   :  { %v7351_v50 = vpop.f32.mrf.mxu0 }
0x1847   :  { %v3228_v46 = vadd.f32 %v5562_v35, %v7351_v50 }
0x184c   :  { %v6294_v52 = vpop.f32.mrf.mxu0 }
0x184d   :  { %v3405_v53 = vadd.f32 %v6294_v52, %v5576_v51 }
0x184e   :  { %v3399_v54 = vpop.f32.mrf.mxu0 }
0x184f   :  { %v3400_v55 = vadd.f32 %v5576_v51, %v3399_v54  ;;  %6306 = vmatprep.subr.msk.mxu0 %vm487_vm2, %v3405_v53  ;;  %v5609_v54 = vld [vmem:[%s7727_s3 + $0x6] ss:$0 sm:$0xff] }
0x1850   :  { %6307 = vmatpush3.xpose.msk.msra.mxu0 %vm487_vm2, %v3405_v53 }
0x1851   :  { %6308 = vmatprep.subr.msk.mxu0 %vm487_vm2, %v3400_v55 }
0x1854   :  { %6309 = vmatpush3.xpose.msk.msra.mxu0 %vm487_vm2, %v3400_v55 }
0x1855   :  { %6320 = vmatprep.subr.mxu0 %v5593_v10 }
0x1857   :  { %6311 = vmatmul.mubr.msk.f32.vlgmr.msra.gmra.mxu0 %vm487_vm2, %v3319_v56 }
0x1858   :  { %6321 = vmatpush3.msra.mxu0 %v5593_v10  ;;  %v5632_v10 = vld [vmem:[%s7723_s10 + $0xf8] sm:$0xff] }
0x1859   :  { %6336 = vmatprep.subr.mxu0 %v5607_v24 }
0x1917   :  { %v6312_v57 = vpop.f32.mrf.mxu0 }
0x1918   :  { %v3580_v58 = vadd.f32 %v6312_v57, %v6886_v48 }
0x1919   :  { %v3574_v59 = vpop.f32.mrf.mxu0 }
0x191a   :  { %v3575_v60 = vadd.f32 %v3574_v59, %v6884_v47  ;;  %v3586_v61 = vsel %vm137_vm0, %v3580_v58, -inf }
0x191b   :  { %3587 = vmax.xlane.f32.xlu1 %v3586_v61 }
0x191c   :  { %v3583_v62 = vsel %vm137_vm0, %v3575_v60, -inf }
0x191d   :  { %3584 = vmax.xlane.f32.xlu0 %v3583_v62 }
0x19a4   :  { %v3588_v63 = vpop.xlane.xlu1 %3587 }
0x19a5   :  { %v3590_v0 = vsub.f32 %v3580_v58, %v3588_v63 }
0x19a6   :  { %v3585_v1 = vpop.xlane.xlu0 %3584 }
0x19a7   :  { %v3593_v2 = vmul.f32 1.442695, %v3590_v0  ;;  %v3589_v3 = vsub.f32 %v3575_v60, %v3585_v1 }
0x19a9   :  { %6536 = vpow2.f32 %v3593_v2  ;;  %v3591_v4 = vmul.f32 1.442695, %v3589_v3 }
0x19ab   :  { %6538 = vpow2.f32 %v3591_v4 }
0x19b6   :  { %v6537_v5 = vpop.eup %6536 }
0x19b7   :  { %v3598_v6 = vsel %vm137_vm0, %v6537_v5, 0.0 }
0x19b8   :  { %v6539_v7 = vpop.eup %6538  ;;  %3599 = vadd.xlane.f32.xlu1 %v3598_v6 }
0x19b9   :  { %v3595_v8 = vsel %vm137_vm0, %v6539_v7, 0.0 }
0x19ba   :  { %3596 = vadd.xlane.f32.xlu0 %v3595_v8 }
0x1a41   :  { %v3600_v11 = vpop.xlane.xlu1 %3599 }
0x1a42   :  { %6540 = vrcp.f32 %v3600_v11  ;;  %v5626_v11 = vld [vmem:[%s7730_s1 + $0x30] sm:$0xff] }
0x1a43   :  { %v3597_v12 = vpop.xlane.xlu0 %3596 }
0x1a44   :  { %6542 = vrcp.f32 %v3597_v12 }
0x1a4f   :  { %v6541_v13 = vpop.eup %6540 }
0x1a50   :  { %v3604_v18 = vmul.f32 %v6541_v13, %v6537_v5 }
0x1a51   :  { %v6543_v14 = vpop.eup %6542 }
0x1a52   :  { %v3602_v15 = vmul.f32 %v6543_v14, %v6539_v7 }
0x1a54   :  { %6317 = vmatprep.mubr.msk.f32.mxu1 %vm137_vm0, %v3602_v15 }
0x1a55   :  { %6318 = vmatmul.mubr.msk.f32.vlgmr.msra.gmra.mxu1 %vm137_vm0, %v3604_v18 }
0x1a56   :  { %6326 = vmatpush3.msra.mxu1 %v5599_v9  ;;  %6333 = vmatprep.mubr.msk.f32.mxu1 %vm231_vm1, %v7239_v41 }
0x1a57   :  { %6327 = vmatprep.subr.mxu1 %v5598_v19 }
0x1a58   :  { %6328 = vmatpush3.msra.mxu1 %v5598_v19 }
0x1a59   :  { %6329 = vmatprep.subr.mxu1 %v5597_v20 }
0x1a5a   :  { %6330 = vmatpush3.msra.mxu1 %v5597_v20  ;;  %v5631_v20 = vld [vmem:[%s7723_s10 + $0xf0] sm:$0xff] }
0x1a5b   :  { %6331 = vmatprep.subr.mxu1 %v5596_v21 }
0x1a5c   :  { %6332 = vmatpush3.msra.mxu1 %v5596_v21  ;;  %v5630_v21 = vld [vmem:[%s7723_s10 + $0xe8] sm:$0xff] }
0x1a5d   :  { %6334 = vmatmul.mubr.msk.f32.vlgmr.msra.gmra.mxu1 %vm231_vm1, %v7241_v42  ;;  %6347 = vmatprep.subr.mxu1 %v5615_v22 }
0x1a5e   :  { %6348 = vmatpush3.msra.mxu1 %v5615_v22  ;;  %6355 = vmatprep.mubr.msk.f32.mxu1 %vm231_vm1, %v7239_v41  ;;  %v5629_v22 = vld [vmem:[%s7723_s10 + $0xe0] sm:$0xff] }
0x1a5f   :  { %6349 = vmatprep.subr.mxu1 %v5614_v17 }
0x1a60   :  { %6350 = vmatpush3.msra.mxu1 %v5614_v17  ;;  %v5648_v17 = vld [vmem:[%s7725_s7 + $0xf8] sm:$0xff] }
0x1a61   :  { %6351 = vmatprep.subr.mxu1 %v5613_v16 }
0x1a62   :  { %6352 = vmatpush3.msra.mxu1 %v5613_v16  ;;  %v5647_v16 = vld [vmem:[%s7725_s7 + $0xf0] sm:$0xff] }
0x1a63   :  { %6353 = vmatprep.subr.mxu1 %v5612_v23 }
0x1a64   :  { %6354 = vmatpush3.msra.mxu1 %v5612_v23  ;;  %v5646_v23 = vld [vmem:[%s7725_s7 + $0xe8] sm:$0xff] }
0x1a65   :  { %6356 = vmatmul.mubr.msk.f32.vlgmr.msra.gmra.mxu1 %vm231_vm1, %v7241_v42 }
0x1b15   :  { %v6319_v25 = vpop.f32.mrf.mxu1 }
0x1b17   :  { %v3677_v26 = vpop.f32.mrf.mxu1 }
0x1b18   :  { %6322 = vmatprep.mubr.msk.f32.mxu0 %vm487_vm2, %v3677_v26 }
0x1b19   :  { %6323 = vmatmul.mubr.msk.f32.vlgmr.msra.gmra.mxu0 %vm487_vm2, %v6319_v25  ;;  %v5640_v25 = vld [vmem:[%s7724_s27 + $0xf8] sm:$0xff] }
0x1b1a   :  { %6337 = vmatpush3.msra.mxu0 %v5607_v24  ;;  %6344 = vmatprep.mubr.msk.f32.mxu0 %vm231_vm1, %v7239_v41  ;;  %v5645_v24 = vld [vmem:[%s7725_s7 + $0xe0] sm:$0xff] }
0x1b1b   :  { %6338 = vmatprep.subr.mxu0 %v5606_v27 }
0x1b1c   :  { %6339 = vmatpush3.msra.mxu0 %v5606_v27 }
0x1b1d   :  { %v6335_v31 = vpop.f32.mrf.mxu1  ;;  %6340 = vmatprep.subr.mxu0 %v5605_v28 }
0x1b1e   :  { %v3856_v32 = vadd.f32 %v6335_v31, %v5601_v29  ;;  %6341 = vmatpush3.msra.mxu0 %v5605_v28  ;;  %v5639_v28 = vld [vmem:[%s7724_s27 + $0xf0] sm:$0xff]  ;;  %v5637_v31 = vld [vmem:[%s7724_s27 + $0xe0] sm:$0xff] }
0x1b1f   :  { %v3850_v33 = vpop.f32.mrf.mxu1  ;;  %6342 = vmatprep.subr.mxu0 %v5604_v30 }
0x1b20   :  { %v3851_v37 = vadd.f32 %v5601_v29, %v3850_v33  ;;  %6343 = vmatpush3.msra.mxu0 %v5604_v30  ;;  %v3860_v49 = vmul.f32 0.35355338, %v3856_v32  ;;  %v5638_v29 = vld [vmem:[%s7724_s27 + $0xe8] sm:$0xff]  ;;  %v5634_v30 = vld [vmem:[%s7728_s4 + $0x7] ss:$0 sm:$0xff] }
0x1b21   :  { %6345 = vmatmul.mubr.msk.f32.vlgmr.msra.gmra.mxu0 %vm231_vm1, %v7241_v42 }
0x1b22   :  { %v3859_v39 = vmul.f32 0.35355338, %v3851_v37 }
0x1b24   :  { %6362 = vmatprep.mubr.msk.f32.mxu0 %vm487_vm2, %v3859_v39 }
0x1b25   :  { %v6357_v43 = vpop.f32.mrf.mxu1 }
0x1b26   :  { %v4034_v36 = vadd.f32 %v6357_v43, %v5617_v40  ;;  %v5650_v43 = vld [vmem:[%s7729_s9 + $0x7] ss:$0 sm:$0xff] }
0x1b27   :  { %v4028_v38 = vpop.f32.mrf.mxu1 }
0x1b28   :  { %v4029_v34 = vadd.f32 %v5617_v40, %v4028_v38  ;;  %6365 = vmatprep.subr.mxu1 %v4034_v36 }
0x1b29   :  { %6366 = vmatpush3.msra.mxu1 %v4034_v36 }
0x1b2a   :  { %6367 = vmatprep.subr.mxu1 %v4029_v34 }
0x1b2b   :  { %6368 = vmatpush3.msra.mxu1 %v4029_v34 }
0x1b2c   :  { %6377 = vmatprep.subr.mxu1 %v5632_v10 }
0x1bd9   :  { %v6324_v45 = vpop.f32.mrf.mxu0 }
0x1bda   :  { %v7435_v51 = vadd.f32 %v6324_v45, %v3229_v44 }
0x1bdb   :  { %v3760_v52 = vpop.f32.mrf.mxu0 }
0x1bdc   :  { %v7437_v53 = vadd.f32 %v3760_v52, %v3228_v46 }
0x1be1   :  { %v6346_v55 = vpop.f32.mrf.mxu0 }
0x1be2   :  { %v3946_v56 = vadd.f32 %v6346_v55, %v5609_v54 }
0x1be3   :  { %v3940_v57 = vpop.f32.mrf.mxu0 }
0x1be4   :  { %v3941_v58 = vadd.f32 %v5609_v54, %v3940_v57  ;;  %6358 = vmatprep.subr.msk.mxu0 %vm487_vm2, %v3946_v56  ;;  %v5642_v54 = vld [vmem:[%s7727_s3 + $0x7] ss:$0 sm:$0xff] }
0x1be5   :  { %6359 = vmatpush3.xpose.msk.msra.mxu0 %vm487_vm2, %v3946_v56 }
0x1be6   :  { %6360 = vmatprep.subr.msk.mxu0 %vm487_vm2, %v3941_v58 }
0x1be9   :  { %6361 = vmatpush3.xpose.msk.msra.mxu0 %vm487_vm2, %v3941_v58 }
0x1bea   :  { %6372 = vmatprep.subr.mxu0 %v5626_v11 }
0x1bec   :  { %6363 = vmatmul.mubr.msk.f32.vlgmr.msra.gmra.mxu0 %vm487_vm2, %v3860_v49 }
0x1bed   :  { %6373 = vmatpush3.msra.mxu0 %v5626_v11 }
0x1bee   :  { %6388 = vmatprep.subr.mxu0 %v5640_v25 }
0x1cac   :  { %v6364_v50 = vpop.f32.mrf.mxu0 }
0x1cad   :  { %v4121_v59 = vadd.f32 %v6364_v50, %v6886_v48 }
0x1cae   :  { %v4115_v60 = vpop.f32.mrf.mxu0 }
0x1caf   :  { %v4116_v61 = vadd.f32 %v4115_v60, %v6884_v47  ;;  %v4127_v62 = vsel %vm137_vm0, %v4121_v59, -inf }
0x1cb0   :  { %4128 = vmax.xlane.f32.xlu1 %v4127_v62 }
0x1cb1   :  { %v4124_v63 = vsel %vm137_vm0, %v4116_v61, -inf }
0x1cb2   :  { %4125 = vmax.xlane.f32.xlu0 %v4124_v63 }
0x1d39   :  { %v4129_v0 = vpop.xlane.xlu1 %4128 }
0x1d3a   :  { %v4131_v1 = vsub.f32 %v4121_v59, %v4129_v0 }
0x1d3b   :  { %v4126_v2 = vpop.xlane.xlu0 %4125 }
0x1d3c   :  { %v4134_v3 = vmul.f32 1.442695, %v4131_v1  ;;  %v4130_v4 = vsub.f32 %v4116_v61, %v4126_v2 }
0x1d3e   :  { %6544 = vpow2.f32 %v4134_v3  ;;  %v4132_v5 = vmul.f32 1.442695, %v4130_v4 }
0x1d40   :  { %6546 = vpow2.f32 %v4132_v5 }
0x1d4b   :  { %v6545_v6 = vpop.eup %6544 }
0x1d4c   :  { %v4139_v7 = vsel %vm137_vm0, %v6545_v6, 0.0 }
0x1d4d   :  { %v6547_v8 = vpop.eup %6546  ;;  %4140 = vadd.xlane.f32.xlu1 %v4139_v7 }
0x1d4e   :  { %v4136_v9 = vsel %vm137_vm0, %v6547_v8, 0.0 }
0x1d4f   :  { %4137 = vadd.xlane.f32.xlu0 %v4136_v9 }
0x1dd6   :  { %v4141_v12 = vpop.xlane.xlu1 %4140 }
0x1dd7   :  { %6548 = vrcp.f32 %v4141_v12 }
0x1dd8   :  { %v4138_v13 = vpop.xlane.xlu0 %4137 }
0x1dd9   :  { %6550 = vrcp.f32 %v4138_v13 }
0x1de4   :  { %v6549_v14 = vpop.eup %6548 }
0x1de5   :  { %v4145_v19 = vmul.f32 %v6549_v14, %v6545_v6  ;;  %v5659_v6 = vld [vmem:[%s7730_s1 + $0x38] sm:$0xff] }
0x1de6   :  { %v6551_v15 = vpop.eup %6550 }
0x1de7   :  { %v4143_v18 = vmul.f32 %v6551_v15, %v6547_v8 }
0x1de9   :  { %6369 = vmatprep.mubr.msk.f32.mxu1 %vm137_vm0, %v4143_v18 }
0x1dea   :  { %6370 = vmatmul.mubr.msk.f32.vlgmr.msra.gmra.mxu1 %vm137_vm0, %v4145_v19 }
0x1deb   :  { %6378 = vmatpush3.msra.mxu1 %v5632_v10  ;;  %6385 = vmatprep.mubr.msk.f32.mxu1 %vm231_vm1, %v7239_v41 }
0x1dec   :  { %6379 = vmatprep.subr.mxu1 %v5631_v20 }
0x1ded   :  { %6380 = vmatpush3.msra.mxu1 %v5631_v20 }
0x1dee   :  { %6381 = vmatprep.subr.mxu1 %v5630_v21 }
0x1def   :  { %6382 = vmatpush3.msra.mxu1 %v5630_v21 }
0x1df0   :  { %6383 = vmatprep.subr.mxu1 %v5629_v22 }
0x1df1   :  { %6384 = vmatpush3.msra.mxu1 %v5629_v22 }
0x1df2   :  { %6386 = vmatmul.mubr.msk.f32.vlgmr.msra.gmra.mxu1 %vm231_vm1, %v7241_v42  ;;  %6399 = vmatprep.subr.mxu1 %v5648_v17 }
0x1df3   :  { %6400 = vmatpush3.msra.mxu1 %v5648_v17  ;;  %6407 = vmatprep.mubr.msk.f32.mxu1 %vm231_vm1, %v7239_v41 }
0x1df4   :  { %6401 = vmatprep.subr.mxu1 %v5647_v16 }
0x1df5   :  { %6402 = vmatpush3.msra.mxu1 %v5647_v16 }
0x1df6   :  { %6403 = vmatprep.subr.mxu1 %v5646_v23 }
0x1df7   :  { %6404 = vmatpush3.msra.mxu1 %v5646_v23 }
0x1df8   :  { %6405 = vmatprep.subr.mxu1 %v5645_v24 }
0x1df9   :  { %6406 = vmatpush3.msra.mxu1 %v5645_v24 }
0x1dfa   :  { %6408 = vmatmul.mubr.msk.f32.vlgmr.msra.gmra.mxu1 %vm231_vm1, %v7241_v42 }
0x1eaa   :  { %v6371_v26 = vpop.f32.mrf.mxu1 }
0x1eac   :  { %v4218_v27 = vpop.f32.mrf.mxu1 }
0x1ead   :  { %6374 = vmatprep.mubr.msk.f32.mxu0 %vm487_vm2, %v4218_v27 }
0x1eae   :  { %6375 = vmatmul.mubr.msk.f32.vlgmr.msra.gmra.mxu0 %vm487_vm2, %v6371_v26 }
0x1eaf   :  { %6389 = vmatpush3.msra.mxu0 %v5640_v25  ;;  %6396 = vmatprep.mubr.msk.f32.mxu0 %vm231_vm1, %v7239_v41 }
0x1eb0   :  { %6390 = vmatprep.subr.mxu0 %v5639_v28 }
0x1eb1   :  { %6391 = vmatpush3.msra.mxu0 %v5639_v28 }
0x1eb2   :  { %v6387_v32 = vpop.f32.mrf.mxu1  ;;  %6392 = vmatprep.subr.mxu0 %v5638_v29 }
0x1eb3   :  { %v4397_v33 = vadd.f32 %v6387_v32, %v5634_v30  ;;  %6393 = vmatpush3.msra.mxu0 %v5638_v29  ;;  %v5668_v32 = vld [vmem:[%s7685_s13 + $0x30] sm:$0xff] }
0x1eb4   :  { %v4391_v37 = vpop.f32.mrf.mxu1  ;;  %6394 = vmatprep.subr.mxu0 %v5637_v31 }
0x1eb5   :  { %v4392_v39 = vadd.f32 %v5634_v30, %v4391_v37  ;;  %6395 = vmatpush3.msra.mxu0 %v5637_v31  ;;  %v5666_v37 = vld [vmem:[%s7685_s13 + $0x20] sm:$0xff] }
0x1eb6   :  { %6397 = vmatmul.mubr.msk.f32.vlgmr.msra.gmra.mxu0 %vm231_vm1, %v7241_v42 }
0x1eb7   :  { %v4400_v40 = vmul.f32 0.35355338, %v4392_v39  ;;  %v5681_v39 = vld [vmem:[%s7687_s15 + $0x78] sm:$0xff] }
0x1eb9   :  { %6414 = vmatprep.mubr.msk.f32.mxu0 %vm487_vm2, %v4400_v40  ;;  %v5680_v40 = vld [vmem:[%s7687_s15 + $0x70] sm:$0xff] }
0x1eba   :  { %v6409_v36 = vpop.f32.mrf.mxu1 }
0x1ebb   :  { %v4575_v38 = vadd.f32 %v6409_v36, %v5650_v43  ;;  %v5678_v36 = vld [vmem:[%s7687_s15 + $0x60] sm:$0xff] }
0x1ebc   :  { %v4569_v34 = vpop.f32.mrf.mxu1 }
0x1ebd   :  { %v4570_v35 = vadd.f32 %v5650_v43, %v4569_v34  ;;  %6417 = vmatprep.subr.mxu1 %v4575_v38  ;;  %v5679_v43 = vld [vmem:[%s7687_s15 + $0x68] sm:$0xff] }
0x1ebe   :  { %6418 = vmatpush3.msra.mxu1 %v4575_v38 }
0x1ebf   :  { %6419 = vmatprep.subr.mxu1 %v4570_v35 }
0x1ec0   :  { %6420 = vmatpush3.msra.mxu1 %v4570_v35 }
0x1f6e   :  { %v6376_v44 = vpop.f32.mrf.mxu0 }
0x1f6f   :  { %v4311_v45 = vadd.f32 %v6376_v44, %v7435_v51  ;;  %v4401_v51 = vmul.f32 0.35355338, %v4397_v33  ;;  %v5667_v33 = vld [vmem:[%s7685_s13 + $0x28] sm:$0xff] }
0x1f70   :  { %v4301_v46 = vpop.f32.mrf.mxu0 }
0x1f71   :  { %v4310_v52 = vadd.f32 %v4301_v46, %v7437_v53 }
0x1f76   :  { %v6398_v55 = vpop.f32.mrf.mxu0 }
0x1f77   :  { %v4487_v56 = vadd.f32 %v6398_v55, %v5642_v54 }
0x1f78   :  { %v4481_v57 = vpop.f32.mrf.mxu0 }
0x1f79   :  { %v4482_v58 = vadd.f32 %v5642_v54, %v4481_v57  ;;  %6410 = vmatprep.subr.msk.mxu0 %vm487_vm2, %v4487_v56  ;;  %v5664_v54 = vld [vmem:[%s7683_s11 + $0x1] ss:$0 sm:$0xff] }
0x1f7a   :  { %6411 = vmatpush3.xpose.msk.msra.mxu0 %vm487_vm2, %v4487_v56 }
0x1f7b   :  { %6412 = vmatprep.subr.msk.mxu0 %vm487_vm2, %v4482_v58 }
0x1f7e   :  { %6413 = vmatpush3.xpose.msk.msra.mxu0 %vm487_vm2, %v4482_v58 }
0x1f7f   :  { %6424 = vmatprep.subr.mxu0 %v5659_v6 }
0x1f81   :  { %6415 = vmatmul.mubr.msk.f32.vlgmr.msra.gmra.mxu0 %vm487_vm2, %v4401_v51  ;;  %v5665_v51 = vld [vmem:[%s7684_s12 + $0x1] ss:$0 sm:$0xff] }
0x1f82   :  { %6425 = vmatpush3.msra.mxu0 %v5659_v6 }
0x1f83   :  { %6440 = vmatprep.subr.mxu0 %v5681_v39 }
0x2041   :  { %v6416_v53 = vpop.f32.mrf.mxu0 }
0x2042   :  { %v4662_v49 = vadd.f32 %v6416_v53, %v6886_v48 }
0x2043   :  { %v4656_v50 = vpop.f32.mrf.mxu0 }
0x2044   :  { %v4657_v59 = vadd.f32 %v4656_v50, %v6884_v47  ;;  %v4668_v60 = vsel %vm137_vm0, %v4662_v49, -inf }
0x2045   :  { %4669 = vmax.xlane.f32.xlu1 %v4668_v60  ;;  %v5676_v60 = vld [vmem:[%s7687_s15 + $0x50] sm:$0xff] }
0x2046   :  { %v4665_v61 = vsel %vm137_vm0, %v4657_v59, -inf }
0x2047   :  { %4666 = vmax.xlane.f32.xlu0 %v4665_v61  ;;  %v5675_v61 = vld [vmem:[%s7687_s15 + $0x48] sm:$0xff] }
0x20ce   :  { %v4670_v62 = vpop.xlane.xlu1 %4669 }
0x20cf   :  { %v4672_v63 = vsub.f32 %v4662_v49, %v4670_v62  ;;  %v5674_v62 = vld [vmem:[%s7687_s15 + $0x40] sm:$0xff] }
0x20d0   :  { %v4667_v0 = vpop.xlane.xlu0 %4666 }
0x20d1   :  { %v4675_v1 = vmul.f32 1.442695, %v4672_v63  ;;  %v4671_v2 = vsub.f32 %v4657_v59, %v4667_v0  ;;  %v5677_v59 = vld [vmem:[%s7687_s15 + $0x58] sm:$0xff]  ;;  %v5671_v63 = vld [vmem:[%s7686_s14 + $0x1] ss:$0 sm:$0xff] }
0x20d3   :  { %6552 = vpow2.f32 %v4675_v1  ;;  %v4673_v3 = vmul.f32 1.442695, %v4671_v2 }
0x20d5   :  { %6554 = vpow2.f32 %v4673_v3 }
0x20e0   :  { %v6553_v4 = vpop.eup %6552 }
0x20e1   :  { %v4680_v48 = vsel %vm137_vm0, %v6553_v4, 0.0 }
0x20e2   :  { %v6555_v5 = vpop.eup %6554  ;;  %4681 = vadd.xlane.f32.xlu1 %v4680_v48 }
0x20e3   :  { %v4677_v47 = vsel %vm137_vm0, %v6555_v5, 0.0 }
0x20e4   :  { %4678 = vadd.xlane.f32.xlu0 %v4677_v47 }
0x216b   :  { %v4682_v7 = vpop.xlane.xlu1 %4681 }
0x216c   :  { %6556 = vrcp.f32 %v4682_v7 }
0x216d   :  { %v4679_v8 = vpop.xlane.xlu0 %4678 }
0x216e   :  { %6558 = vrcp.f32 %v4679_v8 }
0x2179   :  { %v6557_v9 = vpop.eup %6556 }
0x217a   :  { %v4686_v12 = vmul.f32 %v6557_v9, %v6553_v4 }
0x217b   :  { %v6559_v10 = vpop.eup %6558 }
0x217c   :  { %v4684_v11 = vmul.f32 %v6559_v10, %v6555_v5  ;;  %v5683_v5 = vld [vmem:[%s7688_s16 + $0x1] ss:$0 sm:$0xff] }
0x217e   :  { %6421 = vmatprep.mubr.msk.f32.mxu1 %vm137_vm0, %v4684_v11 }
0x217f   :  { %6422 = vmatmul.mubr.msk.f32.vlgmr.msra.gmra.mxu1 %vm137_vm0, %v4686_v12 }
0x223f   :  { %v6423_v13 = vpop.f32.mrf.mxu1 }
0x2241   :  { %v4759_v14 = vpop.f32.mrf.mxu1 }
0x2242   :  { %6426 = vmatprep.mubr.msk.f32.mxu0 %vm487_vm2, %v4759_v14 }
0x2243   :  { %6427 = vmatmul.mubr.msk.f32.vlgmr.msra.gmra.mxu0 %vm487_vm2, %v6423_v13 }
0x2244   :  { %6441 = vmatpush3.msra.mxu0 %v5681_v39 }
0x2245   :  { %6442 = vmatprep.subr.mxu0 %v5680_v40 }
0x2246   :  { %6443 = vmatpush3.msra.mxu0 %v5680_v40  ;;  %v5689_v40 = vld [vmem:[%s7690_s18 + $0x1] ss:$0 sm:$0xff] }
0x2247   :  { %6444 = vmatprep.subr.mxu0 %v5679_v43 }
0x2248   :  { %6445 = vmatpush3.msra.mxu0 %v5679_v43 }
0x2249   :  { %6446 = vmatprep.subr.mxu0 %v5678_v36 }
0x224a   :  { %6447 = vmatpush3.msra.mxu0 %v5678_v36 }
0x224b   :  { %6448 = vmatprep.subr.mxu0 %v5677_v59 }
0x224c   :  { %6449 = vmatpush3.msra.mxu0 %v5677_v59 }
0x224d   :  { %6450 = vmatprep.subr.mxu0 %v5676_v60 }
0x224e   :  { %6451 = vmatpush3.msra.mxu0 %v5676_v60 }
0x224f   :  { %6452 = vmatprep.subr.mxu0 %v5675_v61 }
0x2250   :  { %6453 = vmatpush3.msra.mxu0 %v5675_v61 }
0x2251   :  { %6454 = vmatprep.subr.mxu0 %v5674_v62 }
0x2252   :  { %6455 = vmatpush3.msra.mxu0 %v5674_v62 }
0x2303   :  { %v6428_v15 = vpop.f32.mrf.mxu0 }
0x2304   :  { %v4852_v18 = vadd.f32 %v6428_v15, %v4311_v45 }
0x2305   :  { %v4842_v19 = vpop.f32.mrf.mxu0 }
0x2306   :  { %v4851_v20 = vadd.f32 %v4842_v19, %v4310_v52  ;;  %v4854_v21 = vadd.f32 %v4852_v18, %v7241_v42 }
0x2308   :  { %v4862_v22 = vsel %vm231_vm1, %v4854_v21, 0.0  ;;  %v4853_v17 = vadd.f32 %v4851_v20, %v7239_v41  ;;  %v5669_v41 = vld [vmem:[%s7685_s13 + $0x38] sm:$0xff] }
0x2309   :  { %4863 = vadd.xlane.f32.xlu1 %v4862_v22  ;;  %6429 = vmatprep.subr.mxu1 %v5669_v41 }
0x230a   :  { %v4859_v16 = vsel %vm231_vm1, %v4853_v17, 0.0  ;;  %6430 = vmatpush3.msra.mxu1 %v5669_v41 }
0x230b   :  { %4860 = vadd.xlane.f32.xlu0 %v4859_v16  ;;  %6431 = vmatprep.subr.mxu1 %v5668_v32 }
0x230c   :  { %6432 = vmatpush3.msra.mxu1 %v5668_v32 }
0x230d   :  { %6433 = vmatprep.subr.mxu1 %v5667_v33 }
0x230e   :  { %6434 = vmatpush3.msra.mxu1 %v5667_v33  ;;  %v5688_v33 = vld [vmem:[%s7689_s17 + $0x1] ss:$0 sm:$0xff] }
0x230f   :  { %6435 = vmatprep.subr.mxu1 %v5666_v37 }
0x2310   :  { %6436 = vmatpush3.msra.mxu1 %v5666_v37 }
0x2392   :  { %v4864_v23 = vpop.xlane.xlu1 %4863 }
0x2393   :  { %v4866_v24 = vmul.f32 0.03125, %v4864_v23  ;;  %v5148_v23 = vld [vmem:[%s7691_s19 + $0x18] sm:$0xff] }
0x2394   :  { %v4861_v25 = vpop.xlane.xlu0 %4860  ;;  %6459 = vmatprep.subr.mxu1 %v5148_v23 }
0x2395   :  { %v4868_v26 = vsub.f32 %v4854_v21, %v4866_v24  ;;  %v4865_v27 = vmul.f32 0.03125, %v4861_v25  ;;  %v5147_v24 = vld [vmem:[%s7691_s19 + $0x10] sm:$0xff]  ;;  %v5146_v25 = vld [vmem:[%s7691_s19 + $0x8] sm:$0xff] }
0x2397   :  { %v4867_v28 = vsub.f32 %v4853_v17, %v4865_v27  ;;  %v4870_v29 = vmul.f32 %v4868_v26, %v4868_v26  ;;  %v5242_v27 = vld [vmem:[%s7693_s21 + $0x18] sm:$0xff] }
0x2399   :  { %v4874_v30 = vsel %vm231_vm1, %v4870_v29, 0.0  ;;  %v4869_v31 = vmul.f32 %v4867_v28, %v4867_v28 }
0x239a   :  { %4875 = vadd.xlane.f32.xlu1 %v4874_v30 }
0x239b   :  { %v4871_v42 = vsel %vm231_vm1, %v4869_v31, 0.0 }
0x239c   :  { %4872 = vadd.xlane.f32.xlu0 %v4871_v42 }
0x2423   :  { %v4876_v38 = vpop.xlane.xlu1 %4875 }
0x2424   :  { %v4878_v34 = vmul.f32 0.03125, %v4876_v38 }
0x2425   :  { %v4873_v35 = vpop.xlane.xlu0 %4872 }
0x2426   :  { %v4880_v44 = vadd.f32 1e-05, %v4878_v34  ;;  %v4877_v45 = vmul.f32 0.03125, %v4873_v35 }
0x2428   :  { %6560 = vrsqrt.f32 %v4880_v44  ;;  %v4879_v46 = vadd.f32 1e-05, %v4877_v45  ;;  %v5241_v44 = vld [vmem:[%s7693_s21 + $0x10] sm:$0xff]  ;;  %v5240_v45 = vld [vmem:[%s7693_s21 + $0x8] sm:$0xff] }
0x242a   :  { %6562 = vrsqrt.f32 %v4879_v46  ;;  %v5239_v46 = vld [vmem:[%s7693_s21] sm:$0xff] }
0x2435   :  { %v6561_v52 = vpop.eup %6560 }
0x2436   :  { %v4884_v55 = vmul.f32 %v6561_v52, %v4868_v26  ;;  %v5145_v26 = vld [vmem:[%s7691_s19] sm:$0xff] }
0x2437   :  { %v6563_v56 = vpop.eup %6562 }
0x2438   :  { %v4883_v57 = vmul.f32 %v6563_v56, %v4867_v28  ;;  %v4892_v58 = vmul.f32 %v5664_v54, %v4884_v55 }
0x243a   :  { %v4891_v53 = vmul.f32 %v5664_v54, %v4883_v57  ;;  %v4900_v50 = vadd.f32 %v5665_v51, %v4892_v58 }
0x243c   :  { %v4899_v49 = vadd.f32 %v5665_v51, %v4891_v53 }
0x243e   :  { %6437 = vmatprep.mubr.msk.f32.mxu1 %vm231_vm1, %v4899_v49 }
0x243f   :  { %6438 = vmatmul.mubr.msk.f32.vlgmr.msra.gmra.mxu1 %vm231_vm1, %v4900_v50 }
0x2440   :  { %6460 = vmatpush3.msra.mxu1 %v5148_v23 }
0x2441   :  { %6461 = vmatprep.subr.mxu1 %v5147_v24 }
0x2442   :  { %6462 = vmatpush3.msra.mxu1 %v5147_v24 }
0x2443   :  { %6463 = vmatprep.subr.mxu1 %v5146_v25 }
0x2444   :  { %6464 = vmatpush3.msra.mxu1 %v5146_v25 }
0x2445   :  { %6465 = vmatprep.subr.mxu1 %v5145_v26 }
0x2446   :  { %6466 = vmatpush3.msra.mxu1 %v5145_v26 }
0x2447   :  { %6470 = vmatprep.subr.mxu1 %v5242_v27 }
0x24ff   :  { %v6439_v0 = vpop.f32.mrf.mxu1 }
0x2500   :  { %v4992_v1 = vadd.f32 %v6439_v0, %v5671_v63 }
0x2501   :  { %v4986_v2 = vpop.f32.mrf.mxu1 }
0x2502   :  { %v4987_v3 = vadd.f32 %v5671_v63, %v4986_v2  ;;  %v4996_v48 = vmax.f32 %v4992_v1, 0.0 }
0x2504   :  { %v4995_v4 = vmax.f32 %v4987_v3, 0.0 }
0x2506   :  { %6456 = vmatprep.mubr.msk.f32.mxu0 %vm2547_vm5, %v4995_v4 }
0x2507   :  { %6457 = vmatmul.mubr.msk.f32.vlgmr.msra.gmra.mxu0 %vm2547_vm5, %v4996_v48 }
0x25c7   :  { %v6458_v47 = vpop.f32.mrf.mxu0 }
0x25c8   :  { %v5092_v6 = vadd.f32 %v6458_v47, %v5683_v5 }
0x25c9   :  { %v5086_v7 = vpop.f32.mrf.mxu0 }
0x25ca   :  { %v5087_v8 = vadd.f32 %v5683_v5, %v5086_v7  ;;  %v5096_v9 = vadd.f32 %v5092_v6, %v4900_v50 }
0x25cc   :  { %v5104_v10 = vsel %vm231_vm1, %v5096_v9, 0.0  ;;  %v5095_v11 = vadd.f32 %v5087_v8, %v4899_v49 }
0x25cd   :  { %5105 = vadd.xlane.f32.xlu1 %v5104_v10 }
0x25ce   :  { %v5101_v12 = vsel %vm231_vm1, %v5095_v11, 0.0 }
0x25cf   :  { %5102 = vadd.xlane.f32.xlu0 %v5101_v12 }
0x2656   :  { %v5106_v13 = vpop.xlane.xlu1 %5105 }
0x2657   :  { %v5108_v14 = vmul.f32 0.03125, %v5106_v13 }
0x2658   :  { %v5103_v15 = vpop.xlane.xlu0 %5102 }
0x2659   :  { %v5110_v18 = vsub.f32 %v5096_v9, %v5108_v14  ;;  %v5107_v19 = vmul.f32 0.03125, %v5103_v15 }
0x265b   :  { %v5109_v20 = vsub.f32 %v5095_v11, %v5107_v19  ;;  %v5112_v21 = vmul.f32 %v5110_v18, %v5110_v18 }
0x265d   :  { %v5116_v22 = vsel %vm231_vm1, %v5112_v21, 0.0  ;;  %v5111_v17 = vmul.f32 %v5109_v20, %v5109_v20 }
0x265e   :  { %5117 = vadd.xlane.f32.xlu1 %v5116_v22 }
0x265f   :  { %v5113_v16 = vsel %vm231_vm1, %v5111_v17, 0.0 }
0x2660   :  { %5114 = vadd.xlane.f32.xlu0 %v5113_v16 }
0x26e7   :  { %v5118_v28 = vpop.xlane.xlu1 %5117 }
0x26e8   :  { %v5120_v29 = vmul.f32 0.03125, %v5118_v28 }
0x26e9   :  { %v5115_v30 = vpop.xlane.xlu0 %5114 }
0x26ea   :  { %v5122_v31 = vadd.f32 1e-05, %v5120_v29  ;;  %v5119_v42 = vmul.f32 0.03125, %v5115_v30 }
0x26ec   :  { %6564 = vrsqrt.f32 %v5122_v31  ;;  %v5121_v41 = vadd.f32 1e-05, %v5119_v42 }
0x26ee   :  { %6566 = vrsqrt.f32 %v5121_v41 }
0x26f9   :  { %v6565_v32 = vpop.eup %6564 }
0x26fa   :  { %v5126_v37 = vmul.f32 %v6565_v32, %v5110_v18 }
0x26fb   :  { %v6567_v39 = vpop.eup %6566 }
0x26fc   :  { %v5125_v43 = vmul.f32 %v6567_v39, %v5109_v20  ;;  %v5134_v36 = vmul.f32 %v5688_v33, %v5126_v37 }
0x26fe   :  { %v5133_v38 = vmul.f32 %v5688_v33, %v5125_v43  ;;  %v5142_v34 = vadd.f32 %v5689_v40, %v5134_v36 }
0x2700   :  { %v5141_v35 = vadd.f32 %v5689_v40, %v5133_v38  ;;  %5144 = vst.msk [vmem:[#allocation2 + $0x8] sm:$0xff] %vm231_vm1, %v5142_v34 }
0x2702   :  { %6467 = vmatprep.mubr.msk.f32.mxu1 %vm231_vm1, %v5141_v35  ;;  %5143 = vst.msk [vmem:[#allocation2] sm:$0xff] %vm231_vm1, %v5141_v35 }
0x2703   :  { %6468 = vmatmul.mubr.msk.f32.vlgmr.msra.gmra.mxu1 %vm231_vm1, %v5142_v34 }
0x2704   :  { %6471 = vmatpush3.msra.mxu1 %v5242_v27  ;;  %6478 = vmatprep.mubr.msk.f32.mxu1 %vm231_vm1, %v5141_v35 }
0x2705   :  { %6472 = vmatprep.subr.mxu1 %v5241_v44 }
0x2706   :  { %6473 = vmatpush3.msra.mxu1 %v5241_v44 }
0x2707   :  { %6474 = vmatprep.subr.mxu1 %v5240_v45 }
0x2708   :  { %6475 = vmatpush3.msra.mxu1 %v5240_v45 }
0x2709   :  { %6476 = vmatprep.subr.mxu1 %v5239_v46 }
0x270a   :  { %6477 = vmatpush3.msra.mxu1 %v5239_v46 }
0x270b   :  { %6479 = vmatmul.mubr.msk.f32.vlgmr.msra.gmra.mxu1 %vm231_vm1, %v5142_v34 }
0x270c   :  { %6583 = shalt.err (!%p6580_p4)
}
0x270d   :  { %s6660_s2 = smov 128   ;;  %s6661_s27 = smov 8   ;;  %v5690_v52 = vld [vmem:[%s7692_s20] ss:$0 sm:$0xff] }
0x270e   :  { %5346 = dma.vmem_to_hbm [thread:$0]  %s5341_s29, 256, %s7695_s23, [#allocation3], %s6660_s2, %s6660_s2, %s6661_s27  }
0x270f   :  { %s6662_s4 = smov [#allocation4]   ;;  %v5693_v58 = vld [vmem:[%s7694_s22] ss:$0 sm:$0xff] }
0x2710   :  { %s5352_s13 = sshll.u32 %s6662_s4, 4  ;;  %s5353_s13 = int_to_ptr.vmem [resolvable:$true] %s5352_s13 }
0x2711   :  { %s6592_s23 = scalar_lea.vmem %s5353_s13, 256  ;;  %p6597_p6 = scmp.lt.s32.totalorder %s5353_s13, %s5353_s13 }
0x2712   :  { %p6593_p5 = scmp.ne.s32.totalorder %s5353_s13, %s6592_s23  ;;  %p6598_p7 = scmp.lt.s32.totalorder %s6592_s23, %s6592_s23 }
0x2714   :  { %p6599_p8 = por %p6598_p7, %p6597_p6 }
0x2716   :  { %p6600_p9 = pnand %p6599_p8, %p6593_p5 }
0x27c3   :  { %v6469_v54 = vpop.f32.mrf.mxu1 }
0x27c4   :  { %v5234_v55 = vadd.f32 %v6469_v54, %v5690_v52 }
0x27c5   :  { %v5228_v56 = vpop.f32.mrf.mxu1 }
0x27c6   :  { %5238 = vst.msk [vmem:[#allocation4 + $0x8] sm:$0xff] %vm487_vm2, %v5234_v55  ;;  %v5229_v57 = vadd.f32 %v5690_v52, %v5228_v56 }
0x27c8   :  { %5237 = vst.msk [vmem:[#allocation4] sm:$0xff] %vm487_vm2, %v5229_v57 }
0x27c9   :  { %6603 = shalt.err (!%p6600_p9)
}
0x27ca   :  { %5358 = dma.vmem_to_hbm [thread:$0]  %s5353_s13, 256, %s7696_s24, [#allocation5], %s6660_s2, %s6660_s2, %s6661_s27  }
0x27cb   :  { %v6480_v51 = vpop.f32.mrf.mxu1  ;;  %s6663_s30 = smov [#allocation6]  }
0x27cc   :  { %s5364_s5 = sshll.u32 %s6663_s30, 4  ;;  %v5322_v53 = vadd.f32 %v6480_v51, %v5693_v58  ;;  %s5365_s5 = int_to_ptr.vmem [resolvable:$true] %s5364_s5 }
0x27cd   :  { %v5316_v49 = vpop.f32.mrf.mxu1  ;;  %s6612_s22 = scalar_lea.vmem %s5365_s5, 256  ;;  %p6617_p11 = scmp.lt.s32.totalorder %s5365_s5, %s5365_s5 }
0x27ce   :  { %5326 = vst.msk [vmem:[#allocation6 + $0x8] sm:$0xff] %vm487_vm2, %v5322_v53  ;;  %v5328_v50 = vmul.f32 0.5, %v5322_v53  ;;  %v5317_v59 = vadd.f32 %v5693_v58, %v5316_v49  ;;  %p6613_p10 = scmp.ne.s32.totalorder %s5365_s5, %s6612_s22  ;;  %p6618_p12 = scmp.lt.s32.totalorder %s6612_s22, %s6612_s22 }
0x27d0   :  { %v5331_v60 = vmul.f32 1.442695, %v5328_v50  ;;  %5325 = vst.msk [vmem:[#allocation6] sm:$0xff] %vm487_vm2, %v5317_v59  ;;  %v5327_v61 = vmul.f32 0.5, %v5317_v59  ;;  %p6619_p13 = por %p6618_p12, %p6617_p11 }
0x27d2   :  { %p6620_p0 = pnand %p6619_p13, %p6613_p10 }
0x27d4   :  { %6623 = shalt.err (!%p6620_p0)
}
0x27d5   :  { %5370 = dma.vmem_to_hbm [thread:$0]  %s5365_s5, 256, %s7697_s25, [#allocation5], %s6660_s2, %s6660_s2, %s6661_s27   ;;  %6568 = vpow2.f32 %v5331_v60  ;;  %v5329_v62 = vmul.f32 1.442695, %v5327_v61 }
0x27d6   :  { %s6664_s19 = smov [#allocation7]  }
0x27d7   :  { %6570 = vpow2.f32 %v5329_v62  ;;  %s5376_s7 = sshll.u32 %s6664_s19, 4  ;;  %s5377_s7 = int_to_ptr.vmem [resolvable:$true] %s5376_s7 }
0x27d8   :  { %s6632_s11 = scalar_lea.vmem %s5377_s7, 256  ;;  %p6637_p2 = scmp.lt.s32.totalorder %s5377_s7, %s5377_s7 }
0x27d9   :  { %p6633_p1 = scmp.ne.s32.totalorder %s5377_s7, %s6632_s11  ;;  %p6638_p3 = scmp.lt.s32.totalorder %s6632_s11, %s6632_s11 }
0x27db   :  { %p6639_p4 = por %p6638_p3, %p6637_p2 }
0x27dd   :  { %p6640_p5 = pnand %p6639_p4, %p6633_p1 }
0x27e2   :  { %v6569_v63 = vpop.eup %6568 }
0x27e3   :  { %5334 = vst.msk [vmem:[#allocation7 + $0x8] sm:$0xff] %vm487_vm2, %v6569_v63 }
0x27e4   :  { %v6571_v0 = vpop.eup %6570 }
0x27e5   :  { %5333 = vst.msk [vmem:[#allocation7] sm:$0xff] %vm487_vm2, %v6571_v0 }
0x27e6   :  { %6643 = shalt.err (!%p6640_p5)
}
0x27e7   :  { %s7732_s12 = sld [smem:[#allocation23_spill]] }
0x27ed   :  { %5382 = dma.vmem_to_hbm [thread:$0]  %s5377_s7, 256, %s7732_s12, [#allocation8], %s6660_s2, %s6660_s2, %s6661_s27  }
0x27ee   :  { %6652 = dma.done.wait [#allocation3], 256  }
0x27ef   :  { %6653 = vsyncadd [#allocation3], 4294967040 }
0x27f0   :  { %6654 = dma.done.wait [#allocation5], 512  }
0x27f1   :  { %6655 = vsyncadd [#allocation5], 4294966784 }
0x27f2   :  { %6656 = dma.done.wait [#allocation8], 256  }
0x27f3   :  { %6657 = vsyncadd [#allocation8], 4294967040 }
0x27f4   :  { %5395 = vsyncpa [#allocation3], 1 }
0x27f5   :  { %5396 = vsyncpa [#allocation5], 1 }
0x27f6   :  { %5397 = vsyncpa [#allocation8], 1 }

</bundles_post_ra>
